<compile_context>
chip_gen: v6e
topology: v6e:2x2x1
jax: 0.10.0
libtpu: 0.0.40
codegen_flags: <defaults>
</compile_context>

<pallas_src>
import jax
import jax.numpy as jnp
import numpy as np
from jax import lax
from jax.experimental import pallas as pl
from jax.experimental.pallas import tpu as pltpu


# ---------------------------------------------------------------------------
# Packing helpers (numpy, done once at init time)
# ---------------------------------------------------------------------------
def _banded_conv_weight(w4, wd):
    """(3,3,Cin,Cout) HWIO -> (3, W*Cin, W*Cout) clipped block-banded matrices.
    Row r of the conv output is  x[r-1]@B[0] + x[r]@B[1] + x[r+1]@B[2]  with the
    left/right zero-pad columns baked into the band (K stays exactly W*Cin)."""
    w_np = np.asarray(w4, np.float32)
    kh, kw, cin, cout = w_np.shape
    band = np.zeros((3, wd, cin, wd, cout), np.float32)
    for ky in range(kh):
        for kx in range(kw):
            for x in range(wd):
                xin = x + kx - 1
                if 0 <= xin < wd:
                    band[ky, xin, :, x, :] = w_np[ky, kx]
    return jnp.asarray(band.reshape(3, wd * cin, wd * cout), jnp.bfloat16)


def _bias_row(b, wd):
    """(Cout,) -> (1, W*Cout) row replicated across W (lane-dense f32 add)."""
    return jnp.asarray(np.tile(np.asarray(b, np.float32), wd).reshape(1, -1))


def _row_shift_selector(n, h, delta):
    """(N*H, N*H) 0/1 matrix: (sel @ x)[i*H+r] = x[i*H+r+delta], 0 if off-image."""
    r = n * h
    m = np.zeros((r, r), np.float32)
    for i in range(n):
        for row in range(h):
            src = row + delta
            if 0 <= src < h:
                m[i * h + row, i * h + src] = 1.0
    return jnp.asarray(m, jnp.bfloat16)


def _col_pool_selector(wd, cout, parity):
    """(W*Cout, (W/2)*Cout) 0/1 right-multiplier selecting column block 2*xo+parity."""
    m = np.zeros((wd * cout, (wd // 2) * cout), np.float32)
    for xo in range(wd // 2):
        for c in range(cout):
            m[(2 * xo + parity) * cout + c, xo * cout + c] = 1.0
    return jnp.asarray(m, jnp.bfloat16)


def _row_pool_selector(n, h, parity):
    """(N*H/2, N*H) 0/1 left-multiplier selecting row 2*ro+parity of each image."""
    m = np.zeros((n * (h // 2), n * h), np.float32)
    for i in range(n):
        for ro in range(h // 2):
            m[i * (h // 2) + ro, i * h + 2 * ro + parity] = 1.0
    return jnp.asarray(m, jnp.bfloat16)


def build_layer_configs(input_dim, depth, filters):
    configs = []
    nf_out = filters
    for i in range(depth):
        if i == 0:
            nf_in = input_dim[-1]
        else:
            nf_in = nf_out
            nf_out *= 2
        configs.append((nf_in, nf_out, True))
    nf_in = nf_out
    nf_out *= 2
    configs.append((nf_in, nf_out, False))
    return configs


def init_encoder_params(key, input_dim, depth, filters):
    """Raw HWIO conv weights + biases per block (for reference + packing)."""
    params = []
    for (cin, cout, pooling) in build_layer_configs(input_dim, depth, filters):
        key, k1, k2, k3, k4 = jax.random.split(key, 5)
        w1 = jax.random.normal(k1, (3, 3, cin, cout), jnp.float32) * (2.0 / (9 * cin)) ** 0.5
        w2 = jax.random.normal(k2, (3, 3, cout, cout), jnp.float32) * (2.0 / (9 * cout)) ** 0.5
        b1 = jax.random.uniform(k3, (cout,), jnp.float32, -0.1, 0.1)
        b2 = jax.random.uniform(k4, (cout,), jnp.float32, -0.1, 0.1)
        params.append((w1, b1, w2, b2, pooling))
    return params


def pack_encoder_params(raw_params, input_dim, batch):
    """Pack raw params into the kernel's banded-weight / selector form."""
    h, w = input_dim[0], input_dim[1]
    layout, arrays = [], []
    for (w1, b1, w2, b2, pooling) in raw_params:
        cin, cout = w1.shape[2], w1.shape[3]
        layout.append(dict(h=h, w=w, cin=cin, cout=cout, pooling=pooling))
        arrays += [
            _banded_conv_weight(w1, w), _bias_row(b1, w),
            _banded_conv_weight(w2, w), _bias_row(b2, w),
            _row_shift_selector(batch, h, -1),   # paired with kernel row 0
            _row_shift_selector(batch, h, +1),   # paired with kernel row 2
        ]
        if pooling:
            arrays += [
                _col_pool_selector(w, cout, 0), _col_pool_selector(w, cout, 1),
                _row_pool_selector(batch, h, 0), _row_pool_selector(batch, h, 1),
            ]
            h //= 2
            w //= 2
    return layout, arrays


# ---------------------------------------------------------------------------
# The fused kernel: matmuls + add/relu/max only (no scratch, no relayouts)
# ---------------------------------------------------------------------------
def _make_encoder_kernel(layout):
    nb = len(layout)

    def kernel(*refs):
        x_ref = refs[0]
        out_refs = refs[len(refs) - nb:]
        pos = 1
        src = x_ref[...]                                   # (N*H0, W0*Cin0) f32
        for bi, blk in enumerate(layout):
            w1_ref, b1_ref, w2_ref, b2_ref, am_ref, ap_ref = refs[pos:pos + 6]
            pos += 6
            if blk["pooling"]:
                ce_ref, co_ref, re_ref, ro_ref = refs[pos:pos + 4]
                pos += 4
            am = am_ref[...]                               # (R, R) bf16
            ap = ap_ref[...]

            def conv3x3_relu(s, w_ref, b_ref, am=am, ap=ap):
                sb = s.astype(jnp.bfloat16)
                sm = jnp.dot(am, sb, preferred_element_type=jnp.float32).astype(jnp.bfloat16)
                sp = jnp.dot(ap, sb, preferred_element_type=jnp.float32).astype(jnp.bfloat16)
                acc = jnp.dot(sm, w_ref[0], preferred_element_type=jnp.float32)
                acc = acc + jnp.dot(sb, w_ref[1], preferred_element_type=jnp.float32)
                acc = acc + jnp.dot(sp, w_ref[2], preferred_element_type=jnp.float32)
                return jnp.maximum(acc + b_ref[...], 0.0)  # (R, W*Cout) f32

            y1 = conv3x3_relu(src, w1_ref, b1_ref)
            y2 = conv3x3_relu(y1, w2_ref, b2_ref)
            out_refs[bi][...] = y2                         # residual, lane-dense

            if blk["pooling"]:
                yb = y2.astype(jnp.bfloat16)
                # 2x2 maxpool: even/odd column-block select + max, then rows.
                pcols = jnp.maximum(
                    jnp.dot(yb, ce_ref[...], preferred_element_type=jnp.float32),
                    jnp.dot(yb, co_ref[...], preferred_element_type=jnp.float32))
                pb = pcols.astype(jnp.bfloat16)
                src = jnp.maximum(
                    jnp.dot(re_ref[...], pb, preferred_element_type=jnp.float32),
                    jnp.dot(ro_ref[...], pb, preferred_element_type=jnp.float32))
            # no pooling (last block): x == residual, handled in the wrapper

    return kernel


def _zero_map(nd):
    def index_map(i):
        return (0,) * nd
    return index_map


def encoder_forward(x_nchw, layout, arrays):
    """Mirrors Encoder.forward: returns (x, encoder_output) in NCHW."""
    n, cin, h, w = x_nchw.shape
    x_flat = jnp.transpose(x_nchw, (0, 2, 3, 1)).astype(jnp.float32).reshape(n * h, w * cin)

    ins = [x_flat] + list(arrays)
    in_specs = [pl.BlockSpec(a.shape, _zero_map(a.ndim)) for a in ins]
    out_shape = tuple(
        jax.ShapeDtypeStruct((n * blk["h"], blk["w"] * blk["cout"]), jnp.float32)
        for blk in layout)
    out_specs = tuple(pl.BlockSpec(s.shape, _zero_map(len(s.shape))) for s in out_shape)

    results = pl.pallas_call(
        _make_encoder_kernel(layout),
        out_shape=out_shape,
        grid=(1,),
        in_specs=in_specs,
        out_specs=out_specs,
        compiler_params=pltpu.CompilerParams(
            dimension_semantics=("arbitrary",),
            vmem_limit_bytes=32 * 1024 * 1024),
    )(*ins)

    residuals = []
    for blk, r in zip(layout, results):
        rr = r.reshape(n, blk["h"], blk["w"], blk["cout"])
        residuals.append(jnp.transpose(rr, (0, 3, 1, 2)))   # NHWC -> NCHW interface
    return residuals[-1], residuals                          # last block: x == residual


# ---------------------------------------------------------------------------
# Pure-JAX reference (for correctness validation)
# ---------------------------------------------------------------------------
def encoder_reference(x_nchw, raw_params):
    x = jnp.transpose(x_nchw, (0, 2, 3, 1)).astype(jnp.float32)
    residuals = []
    for (w1, b1, w2, b2, pooling) in raw_params:
        def conv(z, wt, b):
            dn = lax.conv_dimension_numbers(z.shape, wt.shape, ("NHWC", "HWIO", "NHWC"))
            z = lax.conv_general_dilated(z, wt, (1, 1), "SAME", dimension_numbers=dn,
                                         precision=lax.Precision.HIGHEST)
            return jnp.maximum(z + b, 0.0)
        y = conv(x, w1, b1)
        y = conv(y, w2, b2)
        residuals.append(jnp.transpose(y, (0, 3, 1, 2)))
        x = lax.reduce_window(y, -jnp.inf, lax.max, (1, 2, 2, 1), (1, 2, 2, 1),
                              "VALID") if pooling else y
    return jnp.transpose(x, (0, 3, 1, 2)), residuals


if __name__ == "__main__":
    # config: input_dim=(32, 32, 4), depth=2, filters=8
    #   block0: 4 ->  8 ch @ 32x32, pool -> 16x16
    #   block1: 8 -> 16 ch @ 16x16, pool ->  8x8
    #   block2: 16 -> 32 ch @  8x8, no pool (bottleneck)
    input_dim = (32, 32, 4)
    depth = 2
    filters = 8
    batch = 2

    key = jax.random.PRNGKey(0)
    key_p, key_x = jax.random.split(key)
    raw_params = init_encoder_params(key_p, input_dim, depth, filters)
    layout, arrays = pack_encoder_params(raw_params, input_dim, batch)

    x = jax.random.normal(
        key_x, (batch, input_dim[-1], input_dim[0], input_dim[1]), jnp.float32)

    run = jax.jit(lambda xin, arrs: encoder_forward(xin, layout, arrs))
    out, residuals = run(x, tuple(arrays))
    jax.block_until_ready(out)
    for r in residuals:
        jax.block_until_ready(r)

    # Shape checks (PyTorch Encoder interface)
    assert out.shape == (batch, filters * 2 ** depth, input_dim[0] // 2 ** depth,
                         input_dim[1] // 2 ** depth), out.shape
    assert len(residuals) == depth + 1
    assert residuals[0].shape == (batch, filters, input_dim[0], input_dim[1])

    # Numerical check vs. pure-JAX reference (loose tolerance: bf16 MXU operands)
    ref_x, ref_res = encoder_reference(x, raw_params)
    for got, want in zip(residuals, ref_res):
        np.testing.assert_allclose(np.asarray(got), np.asarray(want), rtol=0.2, atol=0.2)
    np.testing.assert_allclose(np.asarray(out), np.asarray(ref_x), rtol=0.2, atol=0.2)

    print("KERNEL_OK")
</pallas_src>

<mosaic_0001>
module attributes {stable_mosaic.version = 11 : i64} {
  func.func @kernel(%arg0: i32, %arg1: memref<64x128xf32, #tpu.memory_space<vmem>>, %arg2: memref<3x128x256xbf16, #tpu.memory_space<vmem>>, %arg3: memref<1x256xf32, #tpu.memory_space<vmem>>, %arg4: memref<3x256x256xbf16, #tpu.memory_space<vmem>>, %arg5: memref<1x256xf32, #tpu.memory_space<vmem>>, %arg6: memref<64x64xbf16, #tpu.memory_space<vmem>>, %arg7: memref<64x64xbf16, #tpu.memory_space<vmem>>, %arg8: memref<256x128xbf16, #tpu.memory_space<vmem>>, %arg9: memref<256x128xbf16, #tpu.memory_space<vmem>>, %arg10: memref<32x64xbf16, #tpu.memory_space<vmem>>, %arg11: memref<32x64xbf16, #tpu.memory_space<vmem>>, %arg12: memref<3x128x256xbf16, #tpu.memory_space<vmem>>, %arg13: memref<1x256xf32, #tpu.memory_space<vmem>>, %arg14: memref<3x256x256xbf16, #tpu.memory_space<vmem>>, %arg15: memref<1x256xf32, #tpu.memory_space<vmem>>, %arg16: memref<32x32xbf16, #tpu.memory_space<vmem>>, %arg17: memref<32x32xbf16, #tpu.memory_space<vmem>>, %arg18: memref<256x128xbf16, #tpu.memory_space<vmem>>, %arg19: memref<256x128xbf16, #tpu.memory_space<vmem>>, %arg20: memref<16x32xbf16, #tpu.memory_space<vmem>>, %arg21: memref<16x32xbf16, #tpu.memory_space<vmem>>, %arg22: memref<3x128x256xbf16, #tpu.memory_space<vmem>>, %arg23: memref<1x256xf32, #tpu.memory_space<vmem>>, %arg24: memref<3x256x256xbf16, #tpu.memory_space<vmem>>, %arg25: memref<1x256xf32, #tpu.memory_space<vmem>>, %arg26: memref<16x16xbf16, #tpu.memory_space<vmem>>, %arg27: memref<16x16xbf16, #tpu.memory_space<vmem>>, %arg28: memref<64x256xf32, #tpu.memory_space<vmem>>, %arg29: memref<32x256xf32, #tpu.memory_space<vmem>>, %arg30: memref<16x256xf32, #tpu.memory_space<vmem>>) attributes {dimension_semantics = [#tpu.dimension_semantics<arbitrary>], iteration_bounds = array<i64: 1>, scalar_prefetch = 0 : i64, scratch_operands = 0 : i64, tpu.core_type = #tpu.core_type<tc>, window_params = [{pipeline_mode = #tpu.pipeline_mode<synchronous>, transform_indices = @transform_0, window_bounds = array<i64: 64, 128>}, {pipeline_mode = #tpu.pipeline_mode<synchronous>, transform_indices = @transform_1, window_bounds = array<i64: 3, 128, 256>}, {pipeline_mode = #tpu.pipeline_mode<synchronous>, transform_indices = @transform_2, window_bounds = array<i64: 1, 256>}, {pipeline_mode = #tpu.pipeline_mode<synchronous>, transform_indices = @transform_3, window_bounds = array<i64: 3, 256, 256>}, {pipeline_mode = #tpu.pipeline_mode<synchronous>, transform_indices = @transform_4, window_bounds = array<i64: 1, 256>}, {pipeline_mode = #tpu.pipeline_mode<synchronous>, transform_indices = @transform_5, window_bounds = array<i64: 64, 64>}, {pipeline_mode = #tpu.pipeline_mode<synchronous>, transform_indices = @transform_6, window_bounds = array<i64: 64, 64>}, {pipeline_mode = #tpu.pipeline_mode<synchronous>, transform_indices = @transform_7, window_bounds = array<i64: 256, 128>}, {pipeline_mode = #tpu.pipeline_mode<synchronous>, transform_indices = @transform_8, window_bounds = array<i64: 256, 128>}, {pipeline_mode = #tpu.pipeline_mode<synchronous>, transform_indices = @transform_9, window_bounds = array<i64: 32, 64>}, {pipeline_mode = #tpu.pipeline_mode<synchronous>, transform_indices = @transform_10, window_bounds = array<i64: 32, 64>}, {pipeline_mode = #tpu.pipeline_mode<synchronous>, transform_indices = @transform_11, window_bounds = array<i64: 3, 128, 256>}, {pipeline_mode = #tpu.pipeline_mode<synchronous>, transform_indices = @transform_12, window_bounds = array<i64: 1, 256>}, {pipeline_mode = #tpu.pipeline_mode<synchronous>, transform_indices = @transform_13, window_bounds = array<i64: 3, 256, 256>}, {pipeline_mode = #tpu.pipeline_mode<synchronous>, transform_indices = @transform_14, window_bounds = array<i64: 1, 256>}, {pipeline_mode = #tpu.pipeline_mode<synchronous>, transform_indices = @transform_15, window_bounds = array<i64: 32, 32>}, {pipeline_mode = #tpu.pipeline_mode<synchronous>, transform_indices = @transform_16, window_bounds = array<i64: 32, 32>}, {pipeline_mode = #tpu.pipeline_mode<synchronous>, transform_indices = @transform_17, window_bounds = array<i64: 256, 128>}, {pipeline_mode = #tpu.pipeline_mode<synchronous>, transform_indices = @transform_18, window_bounds = array<i64: 256, 128>}, {pipeline_mode = #tpu.pipeline_mode<synchronous>, transform_indices = @transform_19, window_bounds = array<i64: 16, 32>}, {pipeline_mode = #tpu.pipeline_mode<synchronous>, transform_indices = @transform_20, window_bounds = array<i64: 16, 32>}, {pipeline_mode = #tpu.pipeline_mode<synchronous>, transform_indices = @transform_21, window_bounds = array<i64: 3, 128, 256>}, {pipeline_mode = #tpu.pipeline_mode<synchronous>, transform_indices = @transform_22, window_bounds = array<i64: 1, 256>}, {pipeline_mode = #tpu.pipeline_mode<synchronous>, transform_indices = @transform_23, window_bounds = array<i64: 3, 256, 256>}, {pipeline_mode = #tpu.pipeline_mode<synchronous>, transform_indices = @transform_24, window_bounds = array<i64: 1, 256>}, {pipeline_mode = #tpu.pipeline_mode<synchronous>, transform_indices = @transform_25, window_bounds = array<i64: 16, 16>}, {pipeline_mode = #tpu.pipeline_mode<synchronous>, transform_indices = @transform_26, window_bounds = array<i64: 16, 16>}, {pipeline_mode = #tpu.pipeline_mode<synchronous>, transform_indices = @transform_27, window_bounds = array<i64: 64, 256>}, {pipeline_mode = #tpu.pipeline_mode<synchronous>, transform_indices = @transform_28, window_bounds = array<i64: 32, 256>}, {pipeline_mode = #tpu.pipeline_mode<synchronous>, transform_indices = @transform_29, window_bounds = array<i64: 16, 256>}]} {
    %c0 = arith.constant 0 : index
    %c0_0 = arith.constant 0 : index
    %0 = vector.load %arg1[%c0, %c0_0] : memref<64x128xf32, #tpu.memory_space<vmem>>, vector<64x128xf32>
    %c0_1 = arith.constant 0 : index
    %c0_2 = arith.constant 0 : index
    %1 = vector.load %arg6[%c0_1, %c0_2] : memref<64x64xbf16, #tpu.memory_space<vmem>>, vector<64x64xbf16>
    %c0_3 = arith.constant 0 : index
    %c0_4 = arith.constant 0 : index
    %2 = vector.load %arg7[%c0_3, %c0_4] : memref<64x64xbf16, #tpu.memory_space<vmem>>, vector<64x64xbf16>
    %3 = arith.truncf %0 : vector<64x128xf32> to vector<64x128xbf16>
    %cst = arith.constant dense<0.000000e+00> : vector<64x128xf32>
    %4 = tpu.matmul %1, %3, %cst {dimension_numbers = #tpu.dot_dimension_numbers<[1], [0], [0], [1], [0, 0, 1, 1], [], []>} : vector<64x64xbf16>, vector<64x128xbf16>, vector<64x128xf32> -> vector<64x128xf32>
    %5 = arith.truncf %4 : vector<64x128xf32> to vector<64x128xbf16>
    %cst_5 = arith.constant dense<0.000000e+00> : vector<64x128xf32>
    %6 = tpu.matmul %2, %3, %cst_5 {dimension_numbers = #tpu.dot_dimension_numbers<[1], [0], [0], [1], [0, 0, 1, 1], [], []>} : vector<64x64xbf16>, vector<64x128xbf16>, vector<64x128xf32> -> vector<64x128xf32>
    %7 = arith.truncf %6 : vector<64x128xf32> to vector<64x128xbf16>
    %c0_6 = arith.constant 0 : index
    %c0_7 = arith.constant 0 : index
    %c0_8 = arith.constant 0 : index
    %8 = vector.load %arg2[%c0_6, %c0_7, %c0_8] : memref<3x128x256xbf16, #tpu.memory_space<vmem>>, vector<1x128x256xbf16>
    %9 = vector.shape_cast %8 : vector<1x128x256xbf16> to vector<128x256xbf16>
    %cst_9 = arith.constant dense<0.000000e+00> : vector<64x256xf32>
    %10 = tpu.matmul %5, %9, %cst_9 {dimension_numbers = #tpu.dot_dimension_numbers<[1], [0], [0], [1], [0, 0, 1, 1], [], []>} : vector<64x128xbf16>, vector<128x256xbf16>, vector<64x256xf32> -> vector<64x256xf32>
    %c1 = arith.constant 1 : index
    %c0_10 = arith.constant 0 : index
    %c0_11 = arith.constant 0 : index
    %11 = vector.load %arg2[%c1, %c0_10, %c0_11] : memref<3x128x256xbf16, #tpu.memory_space<vmem>>, vector<1x128x256xbf16>
    %12 = vector.shape_cast %11 : vector<1x128x256xbf16> to vector<128x256xbf16>
    %cst_12 = arith.constant dense<0.000000e+00> : vector<64x256xf32>
    %13 = tpu.matmul %3, %12, %cst_12 {dimension_numbers = #tpu.dot_dimension_numbers<[1], [0], [0], [1], [0, 0, 1, 1], [], []>} : vector<64x128xbf16>, vector<128x256xbf16>, vector<64x256xf32> -> vector<64x256xf32>
    %14 = arith.addf %10, %13 : vector<64x256xf32>
    %c2 = arith.constant 2 : index
    %c0_13 = arith.constant 0 : index
    %c0_14 = arith.constant 0 : index
    %15 = vector.load %arg2[%c2, %c0_13, %c0_14] : memref<3x128x256xbf16, #tpu.memory_space<vmem>>, vector<1x128x256xbf16>
    %16 = vector.shape_cast %15 : vector<1x128x256xbf16> to vector<128x256xbf16>
    %cst_15 = arith.constant dense<0.000000e+00> : vector<64x256xf32>
    %17 = tpu.matmul %7, %16, %cst_15 {dimension_numbers = #tpu.dot_dimension_numbers<[1], [0], [0], [1], [0, 0, 1, 1], [], []>} : vector<64x128xbf16>, vector<128x256xbf16>, vector<64x256xf32> -> vector<64x256xf32>
    %18 = arith.addf %14, %17 : vector<64x256xf32>
    %c0_16 = arith.constant 0 : index
    %c0_17 = arith.constant 0 : index
    %19 = vector.load %arg3[%c0_16, %c0_17] : memref<1x256xf32, #tpu.memory_space<vmem>>, vector<1x256xf32>
    %20 = vector.broadcast %19 : vector<1x256xf32> to vector<64x256xf32>
    %21 = arith.addf %18, %20 : vector<64x256xf32>
    %cst_18 = arith.constant 0.000000e+00 : f32
    %22 = vector.broadcast %cst_18 : f32 to vector<64x256xf32>
    %23 = arith.maximumf %21, %22 : vector<64x256xf32>
    %24 = arith.truncf %23 : vector<64x256xf32> to vector<64x256xbf16>
    %cst_19 = arith.constant dense<0.000000e+00> : vector<64x256xf32>
    %25 = tpu.matmul %1, %24, %cst_19 {dimension_numbers = #tpu.dot_dimension_numbers<[1], [0], [0], [1], [0, 0, 1, 1], [], []>} : vector<64x64xbf16>, vector<64x256xbf16>, vector<64x256xf32> -> vector<64x256xf32>
    %26 = arith.truncf %25 : vector<64x256xf32> to vector<64x256xbf16>
    %cst_20 = arith.constant dense<0.000000e+00> : vector<64x256xf32>
    %27 = tpu.matmul %2, %24, %cst_20 {dimension_numbers = #tpu.dot_dimension_numbers<[1], [0], [0], [1], [0, 0, 1, 1], [], []>} : vector<64x64xbf16>, vector<64x256xbf16>, vector<64x256xf32> -> vector<64x256xf32>
    %28 = arith.truncf %27 : vector<64x256xf32> to vector<64x256xbf16>
    %c0_21 = arith.constant 0 : index
    %c0_22 = arith.constant 0 : index
    %c0_23 = arith.constant 0 : index
    %29 = vector.load %arg4[%c0_21, %c0_22, %c0_23] : memref<3x256x256xbf16, #tpu.memory_space<vmem>>, vector<1x256x256xbf16>
    %30 = vector.shape_cast %29 : vector<1x256x256xbf16> to vector<256x256xbf16>
    %cst_24 = arith.constant dense<0.000000e+00> : vector<64x256xf32>
    %31 = tpu.matmul %26, %30, %cst_24 {dimension_numbers = #tpu.dot_dimension_numbers<[1], [0], [0], [1], [0, 0, 1, 1], [], []>} : vector<64x256xbf16>, vector<256x256xbf16>, vector<64x256xf32> -> vector<64x256xf32>
    %c1_25 = arith.constant 1 : index
    %c0_26 = arith.constant 0 : index
    %c0_27 = arith.constant 0 : index
    %32 = vector.load %arg4[%c1_25, %c0_26, %c0_27] : memref<3x256x256xbf16, #tpu.memory_space<vmem>>, vector<1x256x256xbf16>
    %33 = vector.shape_cast %32 : vector<1x256x256xbf16> to vector<256x256xbf16>
    %cst_28 = arith.constant dense<0.000000e+00> : vector<64x256xf32>
    %34 = tpu.matmul %24, %33, %cst_28 {dimension_numbers = #tpu.dot_dimension_numbers<[1], [0], [0], [1], [0, 0, 1, 1], [], []>} : vector<64x256xbf16>, vector<256x256xbf16>, vector<64x256xf32> -> vector<64x256xf32>
    %35 = arith.addf %31, %34 : vector<64x256xf32>
    %c2_29 = arith.constant 2 : index
    %c0_30 = arith.constant 0 : index
    %c0_31 = arith.constant 0 : index
    %36 = vector.load %arg4[%c2_29, %c0_30, %c0_31] : memref<3x256x256xbf16, #tpu.memory_space<vmem>>, vector<1x256x256xbf16>
    %37 = vector.shape_cast %36 : vector<1x256x256xbf16> to vector<256x256xbf16>
    %cst_32 = arith.constant dense<0.000000e+00> : vector<64x256xf32>
    %38 = tpu.matmul %28, %37, %cst_32 {dimension_numbers = #tpu.dot_dimension_numbers<[1], [0], [0], [1], [0, 0, 1, 1], [], []>} : vector<64x256xbf16>, vector<256x256xbf16>, vector<64x256xf32> -> vector<64x256xf32>
    %39 = arith.addf %35, %38 : vector<64x256xf32>
    %c0_33 = arith.constant 0 : index
    %c0_34 = arith.constant 0 : index
    %40 = vector.load %arg5[%c0_33, %c0_34] : memref<1x256xf32, #tpu.memory_space<vmem>>, vector<1x256xf32>
    %41 = vector.broadcast %40 : vector<1x256xf32> to vector<64x256xf32>
    %42 = arith.addf %39, %41 : vector<64x256xf32>
    %cst_35 = arith.constant 0.000000e+00 : f32
    %43 = vector.broadcast %cst_35 : f32 to vector<64x256xf32>
    %44 = arith.maximumf %42, %43 : vector<64x256xf32>
    %c0_36 = arith.constant 0 : index
    %c0_37 = arith.constant 0 : index
    %45 = vector.load %arg28[%c0_36, %c0_37] : memref<64x256xf32, #tpu.memory_space<vmem>>, vector<64x256xf32>
    tpu.vector_store %arg28[%c0_36, %c0_37], %44 {strides = array<i32>} : memref<64x256xf32, #tpu.memory_space<vmem>>, vector<64x256xf32>,
    %46 = arith.truncf %44 : vector<64x256xf32> to vector<64x256xbf16>
    %c0_38 = arith.constant 0 : index
    %c0_39 = arith.constant 0 : index
    %47 = vector.load %arg8[%c0_38, %c0_39] : memref<256x128xbf16, #tpu.memory_space<vmem>>, vector<256x128xbf16>
    %cst_40 = arith.constant dense<0.000000e+00> : vector<64x128xf32>
    %48 = tpu.matmul %46, %47, %cst_40 {dimension_numbers = #tpu.dot_dimension_numbers<[1], [0], [0], [1], [0, 0, 1, 1], [], []>} : vector<64x256xbf16>, vector<256x128xbf16>, vector<64x128xf32> -> vector<64x128xf32>
    %c0_41 = arith.constant 0 : index
    %c0_42 = arith.constant 0 : index
    %49 = vector.load %arg9[%c0_41, %c0_42] : memref<256x128xbf16, #tpu.memory_space<vmem>>, vector<256x128xbf16>
    %cst_43 = arith.constant dense<0.000000e+00> : vector<64x128xf32>
    %50 = tpu.matmul %46, %49, %cst_43 {dimension_numbers = #tpu.dot_dimension_numbers<[1], [0], [0], [1], [0, 0, 1, 1], [], []>} : vector<64x256xbf16>, vector<256x128xbf16>, vector<64x128xf32> -> vector<64x128xf32>
    %51 = arith.maximumf %48, %50 : vector<64x128xf32>
    %52 = arith.truncf %51 : vector<64x128xf32> to vector<64x128xbf16>
    %c0_44 = arith.constant 0 : index
    %c0_45 = arith.constant 0 : index
    %53 = vector.load %arg10[%c0_44, %c0_45] : memref<32x64xbf16, #tpu.memory_space<vmem>>, vector<32x64xbf16>
    %cst_46 = arith.constant dense<0.000000e+00> : vector<32x128xf32>
    %54 = tpu.matmul %53, %52, %cst_46 {dimension_numbers = #tpu.dot_dimension_numbers<[1], [0], [0], [1], [0, 0, 1, 1], [], []>} : vector<32x64xbf16>, vector<64x128xbf16>, vector<32x128xf32> -> vector<32x128xf32>
    %c0_47 = arith.constant 0 : index
    %c0_48 = arith.constant 0 : index
    %55 = vector.load %arg11[%c0_47, %c0_48] : memref<32x64xbf16, #tpu.memory_space<vmem>>, vector<32x64xbf16>
    %cst_49 = arith.constant dense<0.000000e+00> : vector<32x128xf32>
    %56 = tpu.matmul %55, %52, %cst_49 {dimension_numbers = #tpu.dot_dimension_numbers<[1], [0], [0], [1], [0, 0, 1, 1], [], []>} : vector<32x64xbf16>, vector<64x128xbf16>, vector<32x128xf32> -> vector<32x128xf32>
    %57 = arith.maximumf %54, %56 : vector<32x128xf32>
    %c0_50 = arith.constant 0 : index
    %c0_51 = arith.constant 0 : index
    %58 = vector.load %arg16[%c0_50, %c0_51] : memref<32x32xbf16, #tpu.memory_space<vmem>>, vector<32x32xbf16>
    %c0_52 = arith.constant 0 : index
    %c0_53 = arith.constant 0 : index
    %59 = vector.load %arg17[%c0_52, %c0_53] : memref<32x32xbf16, #tpu.memory_space<vmem>>, vector<32x32xbf16>
    %60 = arith.truncf %57 : vector<32x128xf32> to vector<32x128xbf16>
    %cst_54 = arith.constant dense<0.000000e+00> : vector<32x128xf32>
    %61 = tpu.matmul %58, %60, %cst_54 {dimension_numbers = #tpu.dot_dimension_numbers<[1], [0], [0], [1], [0, 0, 1, 1], [], []>} : vector<32x32xbf16>, vector<32x128xbf16>, vector<32x128xf32> -> vector<32x128xf32>
    %62 = arith.truncf %61 : vector<32x128xf32> to vector<32x128xbf16>
    %cst_55 = arith.constant dense<0.000000e+00> : vector<32x128xf32>
    %63 = tpu.matmul %59, %60, %cst_55 {dimension_numbers = #tpu.dot_dimension_numbers<[1], [0], [0], [1], [0, 0, 1, 1], [], []>} : vector<32x32xbf16>, vector<32x128xbf16>, vector<32x128xf32> -> vector<32x128xf32>
    %64 = arith.truncf %63 : vector<32x128xf32> to vector<32x128xbf16>
    %c0_56 = arith.constant 0 : index
    %c0_57 = arith.constant 0 : index
    %c0_58 = arith.constant 0 : index
    %65 = vector.load %arg12[%c0_56, %c0_57, %c0_58] : memref<3x128x256xbf16, #tpu.memory_space<vmem>>, vector<1x128x256xbf16>
    %66 = vector.shape_cast %65 : vector<1x128x256xbf16> to vector<128x256xbf16>
    %cst_59 = arith.constant dense<0.000000e+00> : vector<32x256xf32>
    %67 = tpu.matmul %62, %66, %cst_59 {dimension_numbers = #tpu.dot_dimension_numbers<[1], [0], [0], [1], [0, 0, 1, 1], [], []>} : vector<32x128xbf16>, vector<128x256xbf16>, vector<32x256xf32> -> vector<32x256xf32>
    %c1_60 = arith.constant 1 : index
    %c0_61 = arith.constant 0 : index
    %c0_62 = arith.constant 0 : index
    %68 = vector.load %arg12[%c1_60, %c0_61, %c0_62] : memref<3x128x256xbf16, #tpu.memory_space<vmem>>, vector<1x128x256xbf16>
    %69 = vector.shape_cast %68 : vector<1x128x256xbf16> to vector<128x256xbf16>
    %cst_63 = arith.constant dense<0.000000e+00> : vector<32x256xf32>
    %70 = tpu.matmul %60, %69, %cst_63 {dimension_numbers = #tpu.dot_dimension_numbers<[1], [0], [0], [1], [0, 0, 1, 1], [], []>} : vector<32x128xbf16>, vector<128x256xbf16>, vector<32x256xf32> -> vector<32x256xf32>
    %71 = arith.addf %67, %70 : vector<32x256xf32>
    %c2_64 = arith.constant 2 : index
    %c0_65 = arith.constant 0 : index
    %c0_66 = arith.constant 0 : index
    %72 = vector.load %arg12[%c2_64, %c0_65, %c0_66] : memref<3x128x256xbf16, #tpu.memory_space<vmem>>, vector<1x128x256xbf16>
    %73 = vector.shape_cast %72 : vector<1x128x256xbf16> to vector<128x256xbf16>
    %cst_67 = arith.constant dense<0.000000e+00> : vector<32x256xf32>
    %74 = tpu.matmul %64, %73, %cst_67 {dimension_numbers = #tpu.dot_dimension_numbers<[1], [0], [0], [1], [0, 0, 1, 1], [], []>} : vector<32x128xbf16>, vector<128x256xbf16>, vector<32x256xf32> -> vector<32x256xf32>
    %75 = arith.addf %71, %74 : vector<32x256xf32>
    %c0_68 = arith.constant 0 : index
    %c0_69 = arith.constant 0 : index
    %76 = vector.load %arg13[%c0_68, %c0_69] : memref<1x256xf32, #tpu.memory_space<vmem>>, vector<1x256xf32>
    %77 = vector.broadcast %76 : vector<1x256xf32> to vector<32x256xf32>
    %78 = arith.addf %75, %77 : vector<32x256xf32>
    %cst_70 = arith.constant 0.000000e+00 : f32
    %79 = vector.broadcast %cst_70 : f32 to vector<32x256xf32>
    %80 = arith.maximumf %78, %79 : vector<32x256xf32>
    %81 = arith.truncf %80 : vector<32x256xf32> to vector<32x256xbf16>
    %cst_71 = arith.constant dense<0.000000e+00> : vector<32x256xf32>
    %82 = tpu.matmul %58, %81, %cst_71 {dimension_numbers = #tpu.dot_dimension_numbers<[1], [0], [0], [1], [0, 0, 1, 1], [], []>} : vector<32x32xbf16>, vector<32x256xbf16>, vector<32x256xf32> -> vector<32x256xf32>
    %83 = arith.truncf %82 : vector<32x256xf32> to vector<32x256xbf16>
    %cst_72 = arith.constant dense<0.000000e+00> : vector<32x256xf32>
    %84 = tpu.matmul %59, %81, %cst_72 {dimension_numbers = #tpu.dot_dimension_numbers<[1], [0], [0], [1], [0, 0, 1, 1], [], []>} : vector<32x32xbf16>, vector<32x256xbf16>, vector<32x256xf32> -> vector<32x256xf32>
    %85 = arith.truncf %84 : vector<32x256xf32> to vector<32x256xbf16>
    %c0_73 = arith.constant 0 : index
    %c0_74 = arith.constant 0 : index
    %c0_75 = arith.constant 0 : index
    %86 = vector.load %arg14[%c0_73, %c0_74, %c0_75] : memref<3x256x256xbf16, #tpu.memory_space<vmem>>, vector<1x256x256xbf16>
    %87 = vector.shape_cast %86 : vector<1x256x256xbf16> to vector<256x256xbf16>
    %cst_76 = arith.constant dense<0.000000e+00> : vector<32x256xf32>
    %88 = tpu.matmul %83, %87, %cst_76 {dimension_numbers = #tpu.dot_dimension_numbers<[1], [0], [0], [1], [0, 0, 1, 1], [], []>} : vector<32x256xbf16>, vector<256x256xbf16>, vector<32x256xf32> -> vector<32x256xf32>
    %c1_77 = arith.constant 1 : index
    %c0_78 = arith.constant 0 : index
    %c0_79 = arith.constant 0 : index
    %89 = vector.load %arg14[%c1_77, %c0_78, %c0_79] : memref<3x256x256xbf16, #tpu.memory_space<vmem>>, vector<1x256x256xbf16>
    %90 = vector.shape_cast %89 : vector<1x256x256xbf16> to vector<256x256xbf16>
    %cst_80 = arith.constant dense<0.000000e+00> : vector<32x256xf32>
    %91 = tpu.matmul %81, %90, %cst_80 {dimension_numbers = #tpu.dot_dimension_numbers<[1], [0], [0], [1], [0, 0, 1, 1], [], []>} : vector<32x256xbf16>, vector<256x256xbf16>, vector<32x256xf32> -> vector<32x256xf32>
    %92 = arith.addf %88, %91 : vector<32x256xf32>
    %c2_81 = arith.constant 2 : index
    %c0_82 = arith.constant 0 : index
    %c0_83 = arith.constant 0 : index
    %93 = vector.load %arg14[%c2_81, %c0_82, %c0_83] : memref<3x256x256xbf16, #tpu.memory_space<vmem>>, vector<1x256x256xbf16>
    %94 = vector.shape_cast %93 : vector<1x256x256xbf16> to vector<256x256xbf16>
    %cst_84 = arith.constant dense<0.000000e+00> : vector<32x256xf32>
    %95 = tpu.matmul %85, %94, %cst_84 {dimension_numbers = #tpu.dot_dimension_numbers<[1], [0], [0], [1], [0, 0, 1, 1], [], []>} : vector<32x256xbf16>, vector<256x256xbf16>, vector<32x256xf32> -> vector<32x256xf32>
    %96 = arith.addf %92, %95 : vector<32x256xf32>
    %c0_85 = arith.constant 0 : index
    %c0_86 = arith.constant 0 : index
    %97 = vector.load %arg15[%c0_85, %c0_86] : memref<1x256xf32, #tpu.memory_space<vmem>>, vector<1x256xf32>
    %98 = vector.broadcast %97 : vector<1x256xf32> to vector<32x256xf32>
    %99 = arith.addf %96, %98 : vector<32x256xf32>
    %cst_87 = arith.constant 0.000000e+00 : f32
    %100 = vector.broadcast %cst_87 : f32 to vector<32x256xf32>
    %101 = arith.maximumf %99, %100 : vector<32x256xf32>
    %c0_88 = arith.constant 0 : index
    %c0_89 = arith.constant 0 : index
    %102 = vector.load %arg29[%c0_88, %c0_89] : memref<32x256xf32, #tpu.memory_space<vmem>>, vector<32x256xf32>
    tpu.vector_store %arg29[%c0_88, %c0_89], %101 {strides = array<i32>} : memref<32x256xf32, #tpu.memory_space<vmem>>, vector<32x256xf32>,
    %103 = arith.truncf %101 : vector<32x256xf32> to vector<32x256xbf16>
    %c0_90 = arith.constant 0 : index
    %c0_91 = arith.constant 0 : index
    %104 = vector.load %arg18[%c0_90, %c0_91] : memref<256x128xbf16, #tpu.memory_space<vmem>>, vector<256x128xbf16>
    %cst_92 = arith.constant dense<0.000000e+00> : vector<32x128xf32>
    %105 = tpu.matmul %103, %104, %cst_92 {dimension_numbers = #tpu.dot_dimension_numbers<[1], [0], [0], [1], [0, 0, 1, 1], [], []>} : vector<32x256xbf16>, vector<256x128xbf16>, vector<32x128xf32> -> vector<32x128xf32>
    %c0_93 = arith.constant 0 : index
    %c0_94 = arith.constant 0 : index
    %106 = vector.load %arg19[%c0_93, %c0_94] : memref<256x128xbf16, #tpu.memory_space<vmem>>, vector<256x128xbf16>
    %cst_95 = arith.constant dense<0.000000e+00> : vector<32x128xf32>
    %107 = tpu.matmul %103, %106, %cst_95 {dimension_numbers = #tpu.dot_dimension_numbers<[1], [0], [0], [1], [0, 0, 1, 1], [], []>} : vector<32x256xbf16>, vector<256x128xbf16>, vector<32x128xf32> -> vector<32x128xf32>
    %108 = arith.maximumf %105, %107 : vector<32x128xf32>
    %109 = arith.truncf %108 : vector<32x128xf32> to vector<32x128xbf16>
    %c0_96 = arith.constant 0 : index
    %c0_97 = arith.constant 0 : index
    %110 = vector.load %arg20[%c0_96, %c0_97] : memref<16x32xbf16, #tpu.memory_space<vmem>>, vector<16x32xbf16>
    %cst_98 = arith.constant dense<0.000000e+00> : vector<16x128xf32>
    %111 = tpu.matmul %110, %109, %cst_98 {dimension_numbers = #tpu.dot_dimension_numbers<[1], [0], [0], [1], [0, 0, 1, 1], [], []>} : vector<16x32xbf16>, vector<32x128xbf16>, vector<16x128xf32> -> vector<16x128xf32>
    %c0_99 = arith.constant 0 : index
    %c0_100 = arith.constant 0 : index
    %112 = vector.load %arg21[%c0_99, %c0_100] : memref<16x32xbf16, #tpu.memory_space<vmem>>, vector<16x32xbf16>
    %cst_101 = arith.constant dense<0.000000e+00> : vector<16x128xf32>
    %113 = tpu.matmul %112, %109, %cst_101 {dimension_numbers = #tpu.dot_dimension_numbers<[1], [0], [0], [1], [0, 0, 1, 1], [], []>} : vector<16x32xbf16>, vector<32x128xbf16>, vector<16x128xf32> -> vector<16x128xf32>
    %114 = arith.maximumf %111, %113 : vector<16x128xf32>
    %c0_102 = arith.constant 0 : index
    %c0_103 = arith.constant 0 : index
    %115 = vector.load %arg26[%c0_102, %c0_103] : memref<16x16xbf16, #tpu.memory_space<vmem>>, vector<16x16xbf16>
    %c0_104 = arith.constant 0 : index
    %c0_105 = arith.constant 0 : index
    %116 = vector.load %arg27[%c0_104, %c0_105] : memref<16x16xbf16, #tpu.memory_space<vmem>>, vector<16x16xbf16>
    %117 = arith.truncf %114 : vector<16x128xf32> to vector<16x128xbf16>
    %cst_106 = arith.constant dense<0.000000e+00> : vector<16x128xf32>
    %118 = tpu.matmul %115, %117, %cst_106 {dimension_numbers = #tpu.dot_dimension_numbers<[1], [0], [0], [1], [0, 0, 1, 1], [], []>} : vector<16x16xbf16>, vector<16x128xbf16>, vector<16x128xf32> -> vector<16x128xf32>
    %119 = arith.truncf %118 : vector<16x128xf32> to vector<16x128xbf16>
    %cst_107 = arith.constant dense<0.000000e+00> : vector<16x128xf32>
    %120 = tpu.matmul %116, %117, %cst_107 {dimension_numbers = #tpu.dot_dimension_numbers<[1], [0], [0], [1], [0, 0, 1, 1], [], []>} : vector<16x16xbf16>, vector<16x128xbf16>, vector<16x128xf32> -> vector<16x128xf32>
    %121 = arith.truncf %120 : vector<16x128xf32> to vector<16x128xbf16>
    %c0_108 = arith.constant 0 : index
    %c0_109 = arith.constant 0 : index
    %c0_110 = arith.constant 0 : index
    %122 = vector.load %arg22[%c0_108, %c0_109, %c0_110] : memref<3x128x256xbf16, #tpu.memory_space<vmem>>, vector<1x128x256xbf16>
    %123 = vector.shape_cast %122 : vector<1x128x256xbf16> to vector<128x256xbf16>
    %cst_111 = arith.constant dense<0.000000e+00> : vector<16x256xf32>
    %124 = tpu.matmul %119, %123, %cst_111 {dimension_numbers = #tpu.dot_dimension_numbers<[1], [0], [0], [1], [0, 0, 1, 1], [], []>} : vector<16x128xbf16>, vector<128x256xbf16>, vector<16x256xf32> -> vector<16x256xf32>
    %c1_112 = arith.constant 1 : index
    %c0_113 = arith.constant 0 : index
    %c0_114 = arith.constant 0 : index
    %125 = vector.load %arg22[%c1_112, %c0_113, %c0_114] : memref<3x128x256xbf16, #tpu.memory_space<vmem>>, vector<1x128x256xbf16>
    %126 = vector.shape_cast %125 : vector<1x128x256xbf16> to vector<128x256xbf16>
    %cst_115 = arith.constant dense<0.000000e+00> : vector<16x256xf32>
    %127 = tpu.matmul %117, %126, %cst_115 {dimension_numbers = #tpu.dot_dimension_numbers<[1], [0], [0], [1], [0, 0, 1, 1], [], []>} : vector<16x128xbf16>, vector<128x256xbf16>, vector<16x256xf32> -> vector<16x256xf32>
    %128 = arith.addf %124, %127 : vector<16x256xf32>
    %c2_116 = arith.constant 2 : index
    %c0_117 = arith.constant 0 : index
    %c0_118 = arith.constant 0 : index
    %129 = vector.load %arg22[%c2_116, %c0_117, %c0_118] : memref<3x128x256xbf16, #tpu.memory_space<vmem>>, vector<1x128x256xbf16>
    %130 = vector.shape_cast %129 : vector<1x128x256xbf16> to vector<128x256xbf16>
    %cst_119 = arith.constant dense<0.000000e+00> : vector<16x256xf32>
    %131 = tpu.matmul %121, %130, %cst_119 {dimension_numbers = #tpu.dot_dimension_numbers<[1], [0], [0], [1], [0, 0, 1, 1], [], []>} : vector<16x128xbf16>, vector<128x256xbf16>, vector<16x256xf32> -> vector<16x256xf32>
    %132 = arith.addf %128, %131 : vector<16x256xf32>
    %c0_120 = arith.constant 0 : index
    %c0_121 = arith.constant 0 : index
    %133 = vector.load %arg23[%c0_120, %c0_121] : memref<1x256xf32, #tpu.memory_space<vmem>>, vector<1x256xf32>
    %134 = vector.broadcast %133 : vector<1x256xf32> to vector<16x256xf32>
    %135 = arith.addf %132, %134 : vector<16x256xf32>
    %cst_122 = arith.constant 0.000000e+00 : f32
    %136 = vector.broadcast %cst_122 : f32 to vector<16x256xf32>
    %137 = arith.maximumf %135, %136 : vector<16x256xf32>
    %138 = arith.truncf %137 : vector<16x256xf32> to vector<16x256xbf16>
    %cst_123 = arith.constant dense<0.000000e+00> : vector<16x256xf32>
    %139 = tpu.matmul %115, %138, %cst_123 {dimension_numbers = #tpu.dot_dimension_numbers<[1], [0], [0], [1], [0, 0, 1, 1], [], []>} : vector<16x16xbf16>, vector<16x256xbf16>, vector<16x256xf32> -> vector<16x256xf32>
    %140 = arith.truncf %139 : vector<16x256xf32> to vector<16x256xbf16>
    %cst_124 = arith.constant dense<0.000000e+00> : vector<16x256xf32>
    %141 = tpu.matmul %116, %138, %cst_124 {dimension_numbers = #tpu.dot_dimension_numbers<[1], [0], [0], [1], [0, 0, 1, 1], [], []>} : vector<16x16xbf16>, vector<16x256xbf16>, vector<16x256xf32> -> vector<16x256xf32>
    %142 = arith.truncf %141 : vector<16x256xf32> to vector<16x256xbf16>
    %c0_125 = arith.constant 0 : index
    %c0_126 = arith.constant 0 : index
    %c0_127 = arith.constant 0 : index
    %143 = vector.load %arg24[%c0_125, %c0_126, %c0_127] : memref<3x256x256xbf16, #tpu.memory_space<vmem>>, vector<1x256x256xbf16>
    %144 = vector.shape_cast %143 : vector<1x256x256xbf16> to vector<256x256xbf16>
    %cst_128 = arith.constant dense<0.000000e+00> : vector<16x256xf32>
    %145 = tpu.matmul %140, %144, %cst_128 {dimension_numbers = #tpu.dot_dimension_numbers<[1], [0], [0], [1], [0, 0, 1, 1], [], []>} : vector<16x256xbf16>, vector<256x256xbf16>, vector<16x256xf32> -> vector<16x256xf32>
    %c1_129 = arith.constant 1 : index
    %c0_130 = arith.constant 0 : index
    %c0_131 = arith.constant 0 : index
    %146 = vector.load %arg24[%c1_129, %c0_130, %c0_131] : memref<3x256x256xbf16, #tpu.memory_space<vmem>>, vector<1x256x256xbf16>
    %147 = vector.shape_cast %146 : vector<1x256x256xbf16> to vector<256x256xbf16>
    %cst_132 = arith.constant dense<0.000000e+00> : vector<16x256xf32>
    %148 = tpu.matmul %138, %147, %cst_132 {dimension_numbers = #tpu.dot_dimension_numbers<[1], [0], [0], [1], [0, 0, 1, 1], [], []>} : vector<16x256xbf16>, vector<256x256xbf16>, vector<16x256xf32> -> vector<16x256xf32>
    %149 = arith.addf %145, %148 : vector<16x256xf32>
    %c2_133 = arith.constant 2 : index
    %c0_134 = arith.constant 0 : index
    %c0_135 = arith.constant 0 : index
    %150 = vector.load %arg24[%c2_133, %c0_134, %c0_135] : memref<3x256x256xbf16, #tpu.memory_space<vmem>>, vector<1x256x256xbf16>
    %151 = vector.shape_cast %150 : vector<1x256x256xbf16> to vector<256x256xbf16>
    %cst_136 = arith.constant dense<0.000000e+00> : vector<16x256xf32>
    %152 = tpu.matmul %142, %151, %cst_136 {dimension_numbers = #tpu.dot_dimension_numbers<[1], [0], [0], [1], [0, 0, 1, 1], [], []>} : vector<16x256xbf16>, vector<256x256xbf16>, vector<16x256xf32> -> vector<16x256xf32>
    %153 = arith.addf %149, %152 : vector<16x256xf32>
    %c0_137 = arith.constant 0 : index
    %c0_138 = arith.constant 0 : index
    %154 = vector.load %arg25[%c0_137, %c0_138] : memref<1x256xf32, #tpu.memory_space<vmem>>, vector<1x256xf32>
    %155 = vector.broadcast %154 : vector<1x256xf32> to vector<16x256xf32>
    %156 = arith.addf %153, %155 : vector<16x256xf32>
    %cst_139 = arith.constant 0.000000e+00 : f32
    %157 = vector.broadcast %cst_139 : f32 to vector<16x256xf32>
    %158 = arith.maximumf %156, %157 : vector<16x256xf32>
    %c0_140 = arith.constant 0 : index
    %c0_141 = arith.constant 0 : index
    %159 = vector.load %arg30[%c0_140, %c0_141] : memref<16x256xf32, #tpu.memory_space<vmem>>, vector<16x256xf32>
    tpu.vector_store %arg30[%c0_140, %c0_141], %158 {strides = array<i32>} : memref<16x256xf32, #tpu.memory_space<vmem>>, vector<16x256xf32>,
    return
  }
  func.func @transform_0(%arg0: i32) -> (i32, i32) {
    %c0_i32 = arith.constant 0 : i32
    %c0_i32_0 = arith.constant 0 : i32
    %c0_i32_1 = arith.constant 0 : i32
    return %c0_i32, %c0_i32_0 : i32, i32
  }
  func.func @transform_1(%arg0: i32) -> (i32, i32, i32) {
    %c0_i32 = arith.constant 0 : i32
    %c0_i32_0 = arith.constant 0 : i32
    %c0_i32_1 = arith.constant 0 : i32
    %c0_i32_2 = arith.constant 0 : i32
    return %c0_i32, %c0_i32_0, %c0_i32_1 : i32, i32, i32
  }
  func.func @transform_2(%arg0: i32) -> (i32, i32) {
    %c0_i32 = arith.constant 0 : i32
    %c0_i32_0 = arith.constant 0 : i32
    %c0_i32_1 = arith.constant 0 : i32
    return %c0_i32, %c0_i32_0 : i32, i32
  }
  func.func @transform_3(%arg0: i32) -> (i32, i32, i32) {
    %c0_i32 = arith.constant 0 : i32
    %c0_i32_0 = arith.constant 0 : i32
    %c0_i32_1 = arith.constant 0 : i32
    %c0_i32_2 = arith.constant 0 : i32
    return %c0_i32, %c0_i32_0, %c0_i32_1 : i32, i32, i32
  }
  func.func @transform_4(%arg0: i32) -> (i32, i32) {
    %c0_i32 = arith.constant 0 : i32
    %c0_i32_0 = arith.constant 0 : i32
    %c0_i32_1 = arith.constant 0 : i32
    return %c0_i32, %c0_i32_0 : i32, i32
  }
  func.func @transform_5(%arg0: i32) -> (i32, i32) {
    %c0_i32 = arith.constant 0 : i32
    %c0_i32_0 = arith.constant 0 : i32
    %c0_i32_1 = arith.constant 0 : i32
    return %c0_i32, %c0_i32_0 : i32, i32
  }
  func.func @transform_6(%arg0: i32) -> (i32, i32) {
    %c0_i32 = arith.constant 0 : i32
    %c0_i32_0 = arith.constant 0 : i32
    %c0_i32_1 = arith.constant 0 : i32
    return %c0_i32, %c0_i32_0 : i32, i32
  }
  func.func @transform_7(%arg0: i32) -> (i32, i32) {
    %c0_i32 = arith.constant 0 : i32
    %c0_i32_0 = arith.constant 0 : i32
    %c0_i32_1 = arith.constant 0 : i32
    return %c0_i32, %c0_i32_0 : i32, i32
  }
  func.func @transform_8(%arg0: i32) -> (i32, i32) {
    %c0_i32 = arith.constant 0 : i32
    %c0_i32_0 = arith.constant 0 : i32
    %c0_i32_1 = arith.constant 0 : i32
    return %c0_i32, %c0_i32_0 : i32, i32
  }
  func.func @transform_9(%arg0: i32) -> (i32, i32) {
    %c0_i32 = arith.constant 0 : i32
    %c0_i32_0 = arith.constant 0 : i32
    %c0_i32_1 = arith.constant 0 : i32
    return %c0_i32, %c0_i32_0 : i32, i32
  }
  func.func @transform_10(%arg0: i32) -> (i32, i32) {
    %c0_i32 = arith.constant 0 : i32
    %c0_i32_0 = arith.constant 0 : i32
    %c0_i32_1 = arith.constant 0 : i32
    return %c0_i32, %c0_i32_0 : i32, i32
  }
  func.func @transform_11(%arg0: i32) -> (i32, i32, i32) {
    %c0_i32 = arith.constant 0 : i32
    %c0_i32_0 = arith.constant 0 : i32
    %c0_i32_1 = arith.constant 0 : i32
    %c0_i32_2 = arith.constant 0 : i32
    return %c0_i32, %c0_i32_0, %c0_i32_1 : i32, i32, i32
  }
  func.func @transform_12(%arg0: i32) -> (i32, i32) {
    %c0_i32 = arith.constant 0 : i32
    %c0_i32_0 = arith.constant 0 : i32
    %c0_i32_1 = arith.constant 0 : i32
    return %c0_i32, %c0_i32_0 : i32, i32
  }
  func.func @transform_13(%arg0: i32) -> (i32, i32, i32) {
    %c0_i32 = arith.constant 0 : i32
    %c0_i32_0 = arith.constant 0 : i32
    %c0_i32_1 = arith.constant 0 : i32
    %c0_i32_2 = arith.constant 0 : i32
    return %c0_i32, %c0_i32_0, %c0_i32_1 : i32, i32, i32
  }
  func.func @transform_14(%arg0: i32) -> (i32, i32) {
    %c0_i32 = arith.constant 0 : i32
    %c0_i32_0 = arith.constant 0 : i32
    %c0_i32_1 = arith.constant 0 : i32
    return %c0_i32, %c0_i32_0 : i32, i32
  }
  func.func @transform_15(%arg0: i32) -> (i32, i32) {
    %c0_i32 = arith.constant 0 : i32
    %c0_i32_0 = arith.constant 0 : i32
    %c0_i32_1 = arith.constant 0 : i32
    return %c0_i32, %c0_i32_0 : i32, i32
  }
  func.func @transform_16(%arg0: i32) -> (i32, i32) {
    %c0_i32 = arith.constant 0 : i32
    %c0_i32_0 = arith.constant 0 : i32
    %c0_i32_1 = arith.constant 0 : i32
    return %c0_i32, %c0_i32_0 : i32, i32
  }
  func.func @transform_17(%arg0: i32) -> (i32, i32) {
    %c0_i32 = arith.constant 0 : i32
    %c0_i32_0 = arith.constant 0 : i32
    %c0_i32_1 = arith.constant 0 : i32
    return %c0_i32, %c0_i32_0 : i32, i32
  }
  func.func @transform_18(%arg0: i32) -> (i32, i32) {
    %c0_i32 = arith.constant 0 : i32
    %c0_i32_0 = arith.constant 0 : i32
    %c0_i32_1 = arith.constant 0 : i32
    return %c0_i32, %c0_i32_0 : i32, i32
  }
  func.func @transform_19(%arg0: i32) -> (i32, i32) {
    %c0_i32 = arith.constant 0 : i32
    %c0_i32_0 = arith.constant 0 : i32
    %c0_i32_1 = arith.constant 0 : i32
    return %c0_i32, %c0_i32_0 : i32, i32
  }
  func.func @transform_20(%arg0: i32) -> (i32, i32) {
    %c0_i32 = arith.constant 0 : i32
    %c0_i32_0 = arith.constant 0 : i32
    %c0_i32_1 = arith.constant 0 : i32
    return %c0_i32, %c0_i32_0 : i32, i32
  }
  func.func @transform_21(%arg0: i32) -> (i32, i32, i32) {
    %c0_i32 = arith.constant 0 : i32
    %c0_i32_0 = arith.constant 0 : i32
    %c0_i32_1 = arith.constant 0 : i32
    %c0_i32_2 = arith.constant 0 : i32
    return %c0_i32, %c0_i32_0, %c0_i32_1 : i32, i32, i32
  }
  func.func @transform_22(%arg0: i32) -> (i32, i32) {
    %c0_i32 = arith.constant 0 : i32
    %c0_i32_0 = arith.constant 0 : i32
    %c0_i32_1 = arith.constant 0 : i32
    return %c0_i32, %c0_i32_0 : i32, i32
  }
  func.func @transform_23(%arg0: i32) -> (i32, i32, i32) {
    %c0_i32 = arith.constant 0 : i32
    %c0_i32_0 = arith.constant 0 : i32
    %c0_i32_1 = arith.constant 0 : i32
    %c0_i32_2 = arith.constant 0 : i32
    return %c0_i32, %c0_i32_0, %c0_i32_1 : i32, i32, i32
  }
  func.func @transform_24(%arg0: i32) -> (i32, i32) {
    %c0_i32 = arith.constant 0 : i32
    %c0_i32_0 = arith.constant 0 : i32
    %c0_i32_1 = arith.constant 0 : i32
    return %c0_i32, %c0_i32_0 : i32, i32
  }
  func.func @transform_25(%arg0: i32) -> (i32, i32) {
    %c0_i32 = arith.constant 0 : i32
    %c0_i32_0 = arith.constant 0 : i32
    %c0_i32_1 = arith.constant 0 : i32
    return %c0_i32, %c0_i32_0 : i32, i32
  }
  func.func @transform_26(%arg0: i32) -> (i32, i32) {
    %c0_i32 = arith.constant 0 : i32
    %c0_i32_0 = arith.constant 0 : i32
    %c0_i32_1 = arith.constant 0 : i32
    return %c0_i32, %c0_i32_0 : i32, i32
  }
  func.func @transform_27(%arg0: i32) -> (i32, i32) {
    %c0_i32 = arith.constant 0 : i32
    %c0_i32_0 = arith.constant 0 : i32
    %c0_i32_1 = arith.constant 0 : i32
    return %c0_i32, %c0_i32_0 : i32, i32
  }
  func.func @transform_28(%arg0: i32) -> (i32, i32) {
    %c0_i32 = arith.constant 0 : i32
    %c0_i32_0 = arith.constant 0 : i32
    %c0_i32_1 = arith.constant 0 : i32
    return %c0_i32, %c0_i32_0 : i32, i32
  }
  func.func @transform_29(%arg0: i32) -> (i32, i32) {
    %c0_i32 = arith.constant 0 : i32
    %c0_i32_0 = arith.constant 0 : i32
    %c0_i32_1 = arith.constant 0 : i32
    return %c0_i32, %c0_i32_0 : i32, i32
  }
}

</mosaic_0001>

<bundles_post_ra>
// kernel: _lambda_.1
= control target key start
LH: loop header
LB: loop body
LE: loop exit
PB: predicated region body
PF: predicated region fallthrough
CT: control target
= control target key end

     0   :  { %s8201_s6 = smov 1   ;;  %s8202_s10 = smov 2   ;;  %s8952_s0 = inlined_call_operand.smem [shape: u32[30], index: -1, kind: input, shape index: {}] }
   0x1   :  { %s8262_s5 = sld [smem:[%s8952_s0]]   ;;  %s8203_s14 = smov 3  }
   0x2   :  { %s8267_s9 = sld [smem:[%s8952_s0 + %s8201_s6]]   ;;  %s8204_s18 = smov 4  }
   0x3   :  { %s8272_s13 = sld [smem:[%s8952_s0 + %s8202_s10]]   ;;  %s8205_s22 = smov 5  }
   0x4   :  { %s8277_s17 = sld [smem:[%s8952_s0 + %s8203_s14]]   ;;  %s8206_s26 = smov 6  }
   0x5   :  { %s8282_s21 = sld [smem:[%s8952_s0 + %s8204_s18]]   ;;  %s8207_s30 = smov 7  }
   0x6   :  { %s8287_s25 = sld [smem:[%s8952_s0 + %s8205_s22]]   ;;  %s8208_s4 = smov 8  }
   0x7   :  { %8961 = sst [smem:[#allocation37_spill]] %s8262_s5  ;;  %s8209_s10 = smov 9  }
   0x8   :  { %s8292_s29 = sld [smem:[%s8952_s0 + %s8206_s26]]   ;;  %s8210_s15 = smov 10  }
   0x9   :  { %8962 = sst [smem:[#allocation38_spill]] %s8272_s13  ;;  %s8211_s20 = smov 11  }
   0xa   :  { %8963 = sst [smem:[#allocation39_spill]] %s8277_s17  ;;  %s8212_s26 = smov 12  }
   0xb   :  { %s8297_s3 = sld [smem:[%s8952_s0 + %s8207_s30]]   ;;  %s8213_s1 = smov 13  }
   0xc   :  { %8964 = sst [smem:[#allocation40_spill]] %s8287_s25  ;;  %s8214_s7 = smov 14  }
   0xd   :  { %s8302_s8 = sld [smem:[%s8952_s0 + %s8208_s4]]   ;;  %s8216_s22 = smov 16  }
   0xe   :  { %8965 = sst [smem:[#allocation41_spill]] %s8292_s29  ;;  %s8217_s28 = smov 17  }
   0xf   :  { %s8307_s14 = sld [smem:[%s8952_s0 + %s8209_s10]]  }
  0x10   :  { %s8312_s19 = sld [smem:[%s8952_s0 + %s8210_s15]]   ;;  %s8215_s15 = smov 15  }
  0x11   :  { %8966 = sst [smem:[#allocation42_spill]] %s8297_s3 }
  0x12   :  { %s8317_s24 = sld [smem:[%s8952_s0 + %s8211_s20]]  }
  0x13   :  { %8967 = sst [smem:[#allocation43_spill]] %s8302_s8 }
  0x14   :  { %s8322_s30 = sld [smem:[%s8952_s0 + %s8212_s26]]  }
  0x15   :  { %8968 = sst [smem:[#allocation44_spill]] %s8307_s14 }
  0x16   :  { %8969 = sst [smem:[#allocation45_spill]] %s8312_s19 }
  0x17   :  { %s8327_s6 = sld [smem:[%s8952_s0 + %s8213_s1]]  }
  0x18   :  { %s8332_s12 = sld [smem:[%s8952_s0 + %s8214_s7]]   ;;  %s8218_s7 = smov 18  }
  0x19   :  { %s8337_s20 = sld [smem:[%s8952_s0 + %s8215_s15]]   ;;  %s8219_s15 = smov 19  }
  0x1a   :  { %s8342_s27 = sld [smem:[%s8952_s0 + %s8216_s22]]   ;;  %s8220_s22 = smov 20  }
  0x1b   :  { %s8347_s4 = sld [smem:[%s8952_s0 + %s8217_s28]]   ;;  %s8221_s28 = smov 21  }
  0x1c   :  { %s8352_s19 = sld [smem:[%s8952_s0 + %s8218_s7]]   ;;  %s8222_s7 = smov 22  }
  0x1d   :  { %s8357_s14 = sld [smem:[%s8952_s0 + %s8219_s15]]   ;;  %s8223_s15 = smov 23  }
  0x1e   :  { %s8362_s8 = sld [smem:[%s8952_s0 + %s8220_s22]]   ;;  %s8224_s22 = smov 24  }
  0x1f   :  { %s8367_s3 = sld [smem:[%s8952_s0 + %s8221_s28]]   ;;  %s8225_s28 = smov 25  }
  0x20   :  { %s8372_s17 = sld [smem:[%s8952_s0 + %s8222_s7]]   ;;  %s8226_s7 = smov 26  }
  0x21   :  { %s8382_s13 = sld [smem:[%s8952_s0 + %s8224_s22]]   ;;  %s8228_s22 = smov 28  }
  0x22   :  { %s8387_s29 = sld [smem:[%s8952_s0 + %s8225_s28]]   ;;  %s8229_s28 = smov 29  }
  0x23   :  { %8970 = sst [smem:[#allocation46_spill]] %s8357_s14 }
  0x24   :  { %s8377_s14 = sld [smem:[%s8952_s0 + %s8223_s15]]   ;;  %s8227_s15 = smov 27  }
  0x25   :  { %s8392_s25 = sld [smem:[%s8952_s0 + %s8226_s7]]  }
  0x26   :  { %8971 = sst [smem:[#allocation47_spill]] %s8372_s17 }
  0x27   :  { %8972 = sst [smem:[#allocation48_spill]] %s8382_s13 }
  0x28   :  { %s8397_s5 = sld [smem:[%s8952_s0 + %s8227_s15]]  }
  0x29   :  { %s8402_s13 = sld [smem:[%s8952_s0 + %s8228_s22]]  }
  0x2a   :  { %s8407_s17 = sld [smem:[%s8952_s0 + %s8229_s28]]  }
  0x2b   :  { %65 = vsyncpa [#allocation3], 0 }
  0x2c   :  { %66 = vsyncpa [#allocation5], 0 }
  0x2d   :  { %67 = vsyncpa [#allocation8], 0 }
  0x2e   :  { %68 = vsyncpa [#allocation11], 0 }
  0x2f   :  { %69 = vsyncpa [#allocation14], 0 }
  0x30   :  { %70 = vsyncpa [#allocation17], 0 }
  0x31   :  { %71 = vsyncpa [#allocation20], 0 }
  0x32   :  { %72 = vsyncpa [#allocation23], 0 }
  0x33   :  { %73 = vsyncpa [#allocation26], 0  ;;  %s8230_s7 = smov [#allocation4]   ;;  %s8231_s11 = smov [#allocation7]  }
  0x34   :  { %s98_s10 = sshll.u32 %s8230_s7, 4  ;;  %s132_s15 = sshll.u32 %s8231_s11, 4  ;;  %s99_s10 = int_to_ptr.vmem [resolvable:$true] %s98_s10  ;;  %s133_s15 = int_to_ptr.vmem [resolvable:$true] %s132_s15 }
  0x35   :  { %s7851_s16 = scalar_lea.vmem %s99_s10, 32  ;;  %p7856_p1 = scmp.lt.s32.totalorder %s99_s10, %s99_s10 }
  0x36   :  { %p7852_p0 = scmp.ne.s32.totalorder %s99_s10, %s7851_s16  ;;  %p7857_p2 = scmp.lt.s32.totalorder %s7851_s16, %s7851_s16 }
  0x38   :  { %p7858_p3 = por %p7857_p2, %p7856_p1 }
  0x3a   :  { %p7859_p4 = pnand %p7858_p3, %p7852_p0 }
  0x3c   :  { %7862 = shalt.err (!%p7859_p4)
}
  0x3d   :  { %101 = dma.hbm_to_vmem [thread:$0]  %s8282_s21, 32, %s99_s10, [#allocation5]  }
  0x3e   :  { %s7871_s0 = scalar_lea.vmem %s133_s15, 32  ;;  %p7876_p6 = scmp.lt.s32.totalorder %s133_s15, %s133_s15 }
  0x3f   :  { %p7872_p5 = scmp.ne.s32.totalorder %s133_s15, %s7871_s0  ;;  %p7877_p7 = scmp.lt.s32.totalorder %s7871_s0, %s7871_s0 }
  0x41   :  { %p7878_p8 = por %p7877_p7, %p7876_p6 }
  0x43   :  { %p7879_p9 = pnand %p7878_p8, %p7872_p5 }
  0x45   :  { %7882 = shalt.err (!%p7879_p9)
}
  0x46   :  { %135 = dma.hbm_to_vmem [thread:$0]  %s8322_s30, 32, %s133_s15, [#allocation8]  }
  0x47   :  { %s8232_s18 = smov [#allocation10]  }
  0x48   :  { %s154_s22 = sshll.u32 %s8232_s18, 4  ;;  %s155_s22 = int_to_ptr.vmem [resolvable:$true] %s154_s22 }
  0x49   :  { %s7891_s23 = scalar_lea.vmem %s155_s22, 32  ;;  %p7896_p11 = scmp.lt.s32.totalorder %s155_s22, %s155_s22 }
  0x4a   :  { %p7892_p10 = scmp.ne.s32.totalorder %s155_s22, %s7891_s23  ;;  %p7897_p12 = scmp.lt.s32.totalorder %s7891_s23, %s7891_s23 }
  0x4c   :  { %p7898_p13 = por %p7897_p12, %p7896_p11 }
  0x4e   :  { %p7899_p0 = pnand %p7898_p13, %p7892_p10 }
  0x50   :  { %7902 = shalt.err (!%p7899_p0)
}
  0x51   :  { %157 = dma.hbm_to_vmem [thread:$0]  %s8332_s12, 32, %s155_s22, [#allocation11]  }
  0x52   :  { %s8233_s21 = smov [#allocation13]   ;;  %s8234_s28 = smov [#allocation16]  }
  0x53   :  { %s175_s26 = sshll.u32 %s8233_s21, 4  ;;  %s199_s1 = sshll.u32 %s8234_s28, 4  ;;  %s176_s26 = int_to_ptr.vmem [resolvable:$true] %s175_s26  ;;  %s200_s1 = int_to_ptr.vmem [resolvable:$true] %s199_s1 }
  0x54   :  { %s7911_s2 = scalar_lea.vmem %s176_s26, 256  ;;  %p7916_p2 = scmp.lt.s32.totalorder %s176_s26, %s176_s26 }
  0x55   :  { %p7912_p1 = scmp.ne.s32.totalorder %s176_s26, %s7911_s2  ;;  %p7917_p3 = scmp.lt.s32.totalorder %s7911_s2, %s7911_s2 }
  0x57   :  { %p7918_p4 = por %p7917_p3, %p7916_p2 }
  0x59   :  { %p7919_p5 = pnand %p7918_p4, %p7912_p1 }
  0x5b   :  { %7922 = shalt.err (!%p7919_p5)
}
  0x5c   :  { %s8235_s30 = smov 64   ;;  %s8236_s7 = smov 4  }
  0x5d   :  { %181 = dma.hbm_to_vmem [thread:$0]  %s8342_s27, 256, %s176_s26, [#allocation14], %s8235_s30, %s8235_s30, %s8236_s7  }
  0x5e   :  { %s7931_s12 = scalar_lea.vmem %s200_s1, 2048  ;;  %p7936_p7 = scmp.lt.s32.totalorder %s200_s1, %s200_s1 }
  0x5f   :  { %p7932_p6 = scmp.ne.s32.totalorder %s200_s1, %s7931_s12  ;;  %p7937_p8 = scmp.lt.s32.totalorder %s7931_s12, %s7931_s12 }
  0x61   :  { %p7938_p9 = por %p7937_p8, %p7936_p7 }
  0x63   :  { %p7939_p10 = pnand %p7938_p9, %p7932_p6 }
  0x65   :  { %7942 = shalt.err (!%p7939_p10)
}
  0x66   :  { %205 = dma.hbm_to_vmem [thread:$0]  %s8352_s19, 2048, %s200_s1, [#allocation17], %s8235_s30, %s8235_s30, %s8236_s7  }
  0x67   :  { %s8237_s10 = smov [#allocation19]   ;;  %s8238_s15 = smov [#allocation22]  }
  0x68   :  { %s225_s11 = sshll.u32 %s8237_s10, 4  ;;  %s247_s16 = sshll.u32 %s8238_s15, 4  ;;  %s226_s11 = int_to_ptr.vmem [resolvable:$true] %s225_s11  ;;  %s248_s16 = int_to_ptr.vmem [resolvable:$true] %s247_s16 }
  0x69   :  { %s7951_s0 = scalar_lea.vmem %s226_s11, 6144  ;;  %p7956_p12 = scmp.lt.s32.totalorder %s226_s11, %s226_s11 }
  0x6a   :  { %p7952_p11 = scmp.ne.s32.totalorder %s226_s11, %s7951_s0  ;;  %p7957_p13 = scmp.lt.s32.totalorder %s7951_s0, %s7951_s0 }
  0x6c   :  { %p7958_p0 = por %p7957_p13, %p7956_p12 }
  0x6e   :  { %p7959_p1 = pnand %p7958_p0, %p7952_p11 }
  0x70   :  { %7962 = shalt.err (!%p7959_p1)
}
  0x71   :  { %s8239_s27 = smov 128   ;;  %s8240_s18 = smov 8  }
  0x72   :  { %231 = dma.hbm_to_vmem [thread:$0]  %s8367_s3, 6144, %s226_s11, [#allocation20], %s8239_s27, %s8239_s27, %s8240_s18  }
  0x73   :  { %s7971_s19 = scalar_lea.vmem %s248_s16, 12288  ;;  %p7976_p3 = scmp.lt.s32.totalorder %s248_s16, %s248_s16 }
  0x74   :  { %p7972_p2 = scmp.ne.s32.totalorder %s248_s16, %s7971_s19  ;;  %p7977_p4 = scmp.lt.s32.totalorder %s7971_s19, %s7971_s19 }
  0x76   :  { %p7978_p5 = por %p7977_p4, %p7976_p3 }
  0x78   :  { %p7979_p6 = pnand %p7978_p5, %p7972_p2 }
  0x7a   :  { %7982 = shalt.err (!%p7979_p6)
}
  0x7b   :  { %253 = dma.hbm_to_vmem [thread:$0]  %s8377_s14, 12288, %s248_s16, [#allocation23], %s8239_s27, %s8239_s27, %s8240_s18  }
  0x7c   :  { %s8241_s22 = smov [#allocation25]   ;;  %s8242_s21 = smov [#allocation2]  }
  0x7d   :  { %s269_s23 = sshll.u32 %s8241_s22, 4  ;;  %s81_s26 = sshll.u32 %s8242_s21, 4  ;;  %s270_s23 = int_to_ptr.vmem [resolvable:$true] %s269_s23  ;;  %s82_s26 = int_to_ptr.vmem [resolvable:$true] %s81_s26 }
  0x7e   :  { %s7991_s28 = scalar_lea.vmem %s270_s23, 128  ;;  %p7996_p8 = scmp.lt.s32.totalorder %s270_s23, %s270_s23 }
  0x7f   :  { %p7992_p7 = scmp.ne.s32.totalorder %s270_s23, %s7991_s28  ;;  %p7997_p9 = scmp.lt.s32.totalorder %s7991_s28, %s7991_s28 }
  0x81   :  { %p7998_p10 = por %p7997_p9, %p7996_p8 }
  0x83   :  { %p7999_p11 = pnand %p7998_p10, %p7992_p7 }
  0x85   :  { %8002 = shalt.err (!%p7999_p11)
}
  0x86   :  { %275 = dma.hbm_to_vmem [thread:$0]  %s8387_s29, 128, %s270_s23, [#allocation26], %s8235_s30, %s8235_s30, %s8236_s7  }
  0x87   :  { %s8011_s3 = scalar_lea.vmem %s82_s26, 6144  ;;  %p8016_p13 = scmp.lt.s32.totalorder %s82_s26, %s82_s26 }
  0x88   :  { %p8012_p12 = scmp.ne.s32.totalorder %s82_s26, %s8011_s3  ;;  %p8017_p0 = scmp.lt.s32.totalorder %s8011_s3, %s8011_s3 }
  0x8a   :  { %p8018_p1 = por %p8017_p0, %p8016_p13 }
  0x8c   :  { %p8019_p2 = pnand %p8018_p1, %p8012_p12 }
  0x8e   :  { %8022 = shalt.err (!%p8019_p2)
}
  0x8f   :  { %87 = dma.hbm_to_vmem [thread:$0]  %s8267_s9, 6144, %s82_s26, [#allocation3], %s8239_s27, %s8239_s27, %s8240_s18  }
  0x90   :  { %s8243_s14 = smov [#allocation6]   ;;  %s8244_s2 = smov [#allocation9]  }
  0x91   :  { %s119_s1 = sshll.u32 %s8243_s14, 4  ;;  %s141_s12 = sshll.u32 %s8244_s2, 4  ;;  %s120_s1 = int_to_ptr.vmem [resolvable:$true] %s119_s1  ;;  %s142_s12 = int_to_ptr.vmem [resolvable:$true] %s141_s12 }
  0x92   :  { %s8031_s10 = scalar_lea.vmem %s120_s1, 6144  ;;  %p8036_p4 = scmp.lt.s32.totalorder %s120_s1, %s120_s1 }
  0x93   :  { %p8032_p3 = scmp.ne.s32.totalorder %s120_s1, %s8031_s10  ;;  %p8037_p5 = scmp.lt.s32.totalorder %s8031_s10, %s8031_s10 }
  0x95   :  { %p8038_p6 = por %p8037_p5, %p8036_p4 }
  0x97   :  { %p8039_p7 = pnand %p8038_p6, %p8032_p3 }
  0x99   :  { %8042 = shalt.err (!%p8039_p7)
}
  0x9a   :  { %125 = dma.hbm_to_vmem [thread:$0]  %s8317_s24, 6144, %s120_s1, [#allocation5], %s8239_s27, %s8239_s27, %s8240_s18  }
  0x9b   :  { %s8051_s29 = scalar_lea.vmem %s142_s12, 12288  ;;  %p8056_p9 = scmp.lt.s32.totalorder %s142_s12, %s142_s12 }
  0x9c   :  { %p8052_p8 = scmp.ne.s32.totalorder %s142_s12, %s8051_s29  ;;  %p8057_p10 = scmp.lt.s32.totalorder %s8051_s29, %s8051_s29 }
  0x9e   :  { %p8058_p11 = por %p8057_p10, %p8056_p9 }
  0xa0   :  { %p8059_p12 = pnand %p8058_p11, %p8052_p8 }
  0xa2   :  { %8062 = shalt.err (!%p8059_p12)
}
  0xa3   :  { %147 = dma.hbm_to_vmem [thread:$0]  %s8327_s6, 12288, %s142_s12, [#allocation8], %s8239_s27, %s8239_s27, %s8240_s18  }
  0xa4   :  { %s8245_s9 = smov [#allocation12]   ;;  %s8246_s15 = smov [#allocation15]  }
  0xa5   :  { %s163_s11 = sshll.u32 %s8245_s9, 4  ;;  %s187_s16 = sshll.u32 %s8246_s15, 4  ;;  %s164_s11 = int_to_ptr.vmem [resolvable:$true] %s163_s11  ;;  %s188_s16 = int_to_ptr.vmem [resolvable:$true] %s187_s16 }
  0xa6   :  { %s8071_s0 = scalar_lea.vmem %s164_s11, 256  ;;  %p8076_p0 = scmp.lt.s32.totalorder %s164_s11, %s164_s11 }
  0xa7   :  { %p8072_p13 = scmp.ne.s32.totalorder %s164_s11, %s8071_s0  ;;  %p8077_p1 = scmp.lt.s32.totalorder %s8071_s0, %s8071_s0 }
  0xa9   :  { %p8078_p2 = por %p8077_p1, %p8076_p0 }
  0xab   :  { %p8079_p3 = pnand %p8078_p2, %p8072_p13 }
  0xad   :  { %8082 = shalt.err (!%p8079_p3)
}
  0xae   :  { %169 = dma.hbm_to_vmem [thread:$0]  %s8337_s20, 256, %s164_s11, [#allocation11], %s8235_s30, %s8235_s30, %s8236_s7  }
  0xaf   :  { %s8091_s24 = scalar_lea.vmem %s188_s16, 2048  ;;  %p8096_p5 = scmp.lt.s32.totalorder %s188_s16, %s188_s16 }
  0xb0   :  { %p8092_p4 = scmp.ne.s32.totalorder %s188_s16, %s8091_s24  ;;  %p8097_p6 = scmp.lt.s32.totalorder %s8091_s24, %s8091_s24 }
  0xb2   :  { %p8098_p7 = por %p8097_p6, %p8096_p5 }
  0xb4   :  { %p8099_p8 = pnand %p8098_p7, %p8092_p4 }
  0xb6   :  { %8102 = shalt.err (!%p8099_p8)
}
  0xb7   :  { %193 = dma.hbm_to_vmem [thread:$0]  %s8347_s4, 2048, %s188_s16, [#allocation14], %s8235_s30, %s8235_s30, %s8236_s7  }
  0xb8   :  { %s8247_s6 = smov [#allocation18]   ;;  %s8248_s18 = smov [#allocation21]  }
  0xb9   :  { %s213_s27 = sshll.u32 %s8247_s6, 4  ;;  %s238_s19 = sshll.u32 %s8248_s18, 4  ;;  %s214_s27 = int_to_ptr.vmem [resolvable:$true] %s213_s27  ;;  %s239_s19 = int_to_ptr.vmem [resolvable:$true] %s238_s19 }
  0xba   :  { %s8111_s22 = scalar_lea.vmem %s214_s27, 128  ;;  %p8116_p10 = scmp.lt.s32.totalorder %s214_s27, %s214_s27 }
  0xbb   :  { %p8112_p9 = scmp.ne.s32.totalorder %s214_s27, %s8111_s22  ;;  %p8117_p11 = scmp.lt.s32.totalorder %s8111_s22, %s8111_s22 }
  0xbd   :  { %p8118_p12 = por %p8117_p11, %p8116_p10 }
  0xbf   :  { %p8119_p13 = pnand %p8118_p12, %p8112_p9 }
  0xc1   :  { %8122 = shalt.err (!%p8119_p13)
}
  0xc2   :  { %219 = dma.hbm_to_vmem [thread:$0]  %s8362_s8, 128, %s214_s27, [#allocation17], %s8235_s30, %s8235_s30, %s8236_s7  }
  0xc3   :  { %s8131_s20 = scalar_lea.vmem %s239_s19, 32  ;;  %p8136_p1 = scmp.lt.s32.totalorder %s239_s19, %s239_s19 }
  0xc4   :  { %p8132_p0 = scmp.ne.s32.totalorder %s239_s19, %s8131_s20  ;;  %p8137_p2 = scmp.lt.s32.totalorder %s8131_s20, %s8131_s20 }
  0xc6   :  { %p8138_p3 = por %p8137_p2, %p8136_p1 }
  0xc8   :  { %p8139_p4 = pnand %p8138_p3, %p8132_p0 }
  0xca   :  { %8142 = shalt.err (!%p8139_p4)
}
  0xcb   :  { %s8973_s4 = sld [smem:[#allocation47_spill]]  ;;  %s8249_s23 = smov [#allocation24]  }
  0xcc   :  { %s260_s21 = sshll.u32 %s8249_s23, 4  ;;  %s8250_s26 = smov [#allocation27]   ;;  %s261_s21 = int_to_ptr.vmem [resolvable:$true] %s260_s21 }
  0xcd   :  { %s281_s28 = sshll.u32 %s8250_s26, 4  ;;  %s8151_s3 = scalar_lea.vmem %s261_s21, 32  ;;  %s282_s28 = int_to_ptr.vmem [resolvable:$true] %s281_s28 }
  0xce   :  { %p8152_p5 = scmp.ne.s32.totalorder %s261_s21, %s8151_s3  ;;  %p8156_p6 = scmp.lt.s32.totalorder %s261_s21, %s261_s21 }
  0xcf   :  { %p8157_p7 = scmp.lt.s32.totalorder %s8151_s3, %s8151_s3 }
  0xd1   :  { %241 = dma.hbm_to_vmem [thread:$0]  %s8973_s4, 32, %s239_s19, [#allocation20]  }
  0xd2   :  { %p8158_p8 = por %p8157_p7, %p8156_p6 }
  0xd4   :  { %p8159_p9 = pnand %p8158_p8, %p8152_p5 }
  0xd6   :  { %8162 = shalt.err (!%p8159_p9)
}
  0xd7   :  { %s8974_s8 = sld [smem:[#allocation48_spill]]  ;;  %s8171_s14 = scalar_lea.vmem %s282_s28, 128 }
  0xd8   :  { %p8172_p10 = scmp.ne.s32.totalorder %s282_s28, %s8171_s14  ;;  %p8176_p11 = scmp.lt.s32.totalorder %s282_s28, %s282_s28 }
  0xd9   :  { %p8177_p12 = scmp.lt.s32.totalorder %s8171_s14, %s8171_s14 }
  0xdb   :  { %p8178_p13 = por %p8177_p12, %p8176_p11 }
  0xdd   :  { %263 = dma.hbm_to_vmem [thread:$0]  %s8974_s8, 32, %s261_s21, [#allocation23]  }
  0xde   :  { %p8179_p0 = pnand %p8178_p13, %p8172_p10 }
  0xe0   :  { %8182 = shalt.err (!%p8179_p0)
}
  0xe1   :  { %287 = dma.hbm_to_vmem [thread:$0]  %s8392_s25, 128, %s282_s28, [#allocation26], %s8235_s30, %s8235_s30, %s8236_s7  }
  0xe2   :  { %8183 = dma.done.wait [#allocation3], 6144  }
  0xe3   :  { %8184 = vsyncadd [#allocation3], 4294961152 }
  0xe4   :  { %8185 = dma.done.wait [#allocation5], 6176  }
  0xe5   :  { %8186 = vsyncadd [#allocation5], 4294961120 }
  0xe6   :  { %8187 = dma.done.wait [#allocation8], 12320  }
  0xe7   :  { %8188 = vsyncadd [#allocation8], 4294954976 }
  0xe8   :  { %8189 = dma.done.wait [#allocation11], 288  }
  0xe9   :  { %8190 = vsyncadd [#allocation11], 4294967008 }
  0xea   :  { %8191 = dma.done.wait [#allocation14], 2304  }
  0xeb   :  { %8192 = vsyncadd [#allocation14], 4294964992 }
  0xec   :  { %8193 = dma.done.wait [#allocation17], 2176  }
  0xed   :  { %8194 = vsyncadd [#allocation17], 4294965120 }
  0xee   :  { %8195 = dma.done.wait [#allocation20], 6176  }
  0xef   :  { %8196 = vsyncadd [#allocation20], 4294961120 }
  0xf0   :  { %8197 = dma.done.wait [#allocation23], 12320  }
  0xf1   :  { %8198 = vsyncadd [#allocation23], 4294954976 }
  0xf2   :  { %8199 = dma.done.wait [#allocation26], 256  }
  0xf3   :  { %8200 = vsyncadd [#allocation26], 4294967040  ;;  %s8975_s1 = sld [smem:[#allocation37_spill]]  ;;  %vm388_vm0 = vcmask 523264   ;;  %v7113_v14 = vld [vmem:[#allocation2 + $0xf4] ss:$8 sps:$4 sm:$0xff]  }
  0xf4   :  { %s8976_s25 = sld [smem:[#allocation40_spill]]  ;;  %v7111_v19 = vld [vmem:[#allocation2 + $0xf0] ss:$8 sps:$4 sm:$0xff]   ;;  %v7116_v20 = vld [vmem:[#allocation2 + $0xe4] ss:$8 sps:$4 sm:$0xff]   ;;  %v8251_v33 = vmov 0  }
  0xf5   :  { %s8977_s30 = sld [smem:[#allocation41_spill]]  ;;  %v7114_v21 = vld [vmem:[#allocation2 + $0xe0] ss:$8 sps:$4 sm:$0xff]   ;;  %v7119_v23 = vld [vmem:[#allocation2 + $0xd4] ss:$8 sps:$4 sm:$0xff]   ;;  %vm2751_vm1 = vcmask 261120  }
  0xf6   :  { %v7135_v24 = vld [vmem:[#allocation2 + $0x70] ss:$8 sps:$4 sm:$0xff]   ;;  %v7137_v25 = vld [vmem:[#allocation2 + $0x74] ss:$8 sps:$4 sm:$0xff]   ;;  %v7141_v28 = vld [vmem:[#allocation2 + $0x60] ss:$8 sps:$4 sm:$0xff]  }
  0xf7   :  { %v7117_v27 = vld [vmem:[#allocation2 + $0xd0] ss:$8 sps:$4 sm:$0xff]   ;;  %v7143_v29 = vld [vmem:[#allocation2 + $0x64] ss:$8 sps:$4 sm:$0xff]   ;;  %v7149_v31 = vld [vmem:[#allocation2 + $0x54] ss:$8 sps:$4 sm:$0xff]  }
  0xf8   :  { %v7122_v30 = vld [vmem:[#allocation2 + $0xc4] ss:$8 sps:$4 sm:$0xff]   ;;  %v7120_v32 = vld [vmem:[#allocation2 + $0xc0] ss:$8 sps:$4 sm:$0xff]   ;;  %v7147_v34 = vld [vmem:[#allocation2 + $0x50] ss:$8 sps:$4 sm:$0xff]  }
  0xf9   :  { %v346_v0 = vld [vmem:[%s8975_s1 + $0x30] sm:$0xff]  ;;  %v347_v1 = vld [vmem:[%s8975_s1 + $0x38] sm:$0xff]  ;;  %v344_v2 = vld [vmem:[%s8975_s1 + $0x20] sm:$0xff]  ;;  %s8978_s7 = sld [smem:[#allocation38_spill]]  ;;  %vm8253_vm2 = vmmov 0   ;;  %vm4738_vm3 = vcmask 130048  }
  0xfa   :  { %v8465_v3 = vpack.c.bf16 %v347_v1, %v346_v0  ;;  %v345_v4 = vld [vmem:[%s8975_s1 + $0x28] sm:$0xff]  ;;  %v342_v6 = vld [vmem:[%s8975_s1 + $0x10] sm:$0xff]  ;;  %v343_v7 = vld [vmem:[%s8975_s1 + $0x18] sm:$0xff]  ;;  %s8979_s2 = sld [smem:[#allocation39_spill]] }
  0xfb   :  { %v8468_v5 = vpack.c.bf16 %v345_v4, %v344_v2  ;;  %v7103_v8 = vld [vmem:[%s8976_s25] sm:$0xff]   ;;  %v8480_v10 = vpack.c.bf16 %v343_v7, %v342_v6  ;;  %v341_v12 = vld [vmem:[%s8975_s1 + $0x8] sm:$0xff]  ;;  %v7107_v17 = vld [vmem:[%s8976_s25 + $0x10] sm:$0xff]   ;;  %s8980_s12 = sld [smem:[#allocation42_spill]] }
  0xfc   :  { %6950 = vmatprep.subr.bf16.mxu0 %v8465_v3  ;;  %6966 = vmatprep.subr.bf16.mxu1 %v8465_v3  ;;  %v7104_v9 = vld [vmem:[%s8977_s30] sm:$0xff]   ;;  %v7105_v15 = vld [vmem:[%s8976_s25 + $0x8] sm:$0xff]   ;;  %v7109_v18 = vld [vmem:[%s8977_s30 + $0x10] sm:$0xff]   ;;  %s8981_s10 = sld [smem:[#allocation43_spill]] }
  0xfd   :  { %6951 = vmatpush3.bf16.msra.mxu0 %v8465_v3  ;;  %6967 = vmatpush3.bf16.msra.mxu1 %v8465_v3  ;;  %v340_v11 = vld [vmem:[%s8975_s1] sm:$0xff]  ;;  %v7106_v16 = vld [vmem:[%s8977_s30 + $0x8] sm:$0xff]   ;;  %v7108_v22 = vld [vmem:[%s8976_s25 + $0x18] sm:$0xff]   ;;  %s8982_s29 = sld [smem:[#allocation44_spill]] }
  0xfe   :  { %6952 = vmatprep.subr.bf16.mxu0 %v8468_v5  ;;  %6968 = vmatprep.subr.bf16.mxu1 %v8468_v5  ;;  %v8490_v13 = vpack.c.bf16 %v341_v12, %v340_v11  ;;  %v7110_v26 = vld [vmem:[%s8977_s30 + $0x18] sm:$0xff]   ;;  %v7155_v36 = vld [vmem:[#allocation2 + $0x44] ss:$8 sps:$4 sm:$0xff]   ;;  %v7153_v38 = vld [vmem:[#allocation2 + $0x40] ss:$8 sps:$4 sm:$0xff]  }
  0xff   :  { %6958 = vmatprep.mubr.msk.bf16.mxu0 %vm388_vm0, %v7103_v8  ;;  %6974 = vmatprep.mubr.msk.bf16.mxu1 %vm388_vm0, %v7104_v9  ;;  %v7125_v35 = vld [vmem:[#allocation2 + $0xb4] ss:$8 sps:$4 sm:$0xff]   ;;  %v7123_v37 = vld [vmem:[#allocation2 + $0xb0] ss:$8 sps:$4 sm:$0xff]   ;;  %v7128_v39 = vld [vmem:[#allocation2 + $0xa4] ss:$8 sps:$4 sm:$0xff]  }
 0x100   :  { %v7161_v40 = vld [vmem:[#allocation2 + $0x34] ss:$8 sps:$4 sm:$0xff]   ;;  %v7126_v41 = vld [vmem:[#allocation2 + $0xa0] ss:$8 sps:$4 sm:$0xff]   ;;  %v7159_v43 = vld [vmem:[#allocation2 + $0x30] ss:$8 sps:$4 sm:$0xff]  }
 0x101   :  { %6953 = vmatpush3.bf16.msra.mxu0 %v8468_v5  ;;  %6969 = vmatpush3.bf16.msra.mxu1 %v8468_v5  ;;  %v7131_v42 = vld [vmem:[#allocation2 + $0x94] ss:$8 sps:$4 sm:$0xff]   ;;  %v7167_v44 = vld [vmem:[#allocation2 + $0x24] ss:$8 sps:$4 sm:$0xff]   ;;  %v7129_v45 = vld [vmem:[#allocation2 + $0x90] ss:$8 sps:$4 sm:$0xff]  }
 0x102   :  { %6954 = vmatprep.subr.bf16.mxu0 %v8480_v10  ;;  %6970 = vmatprep.subr.bf16.mxu1 %v8480_v10  ;;  %v7165_v46 = vld [vmem:[#allocation2 + $0x20] ss:$8 sps:$4 sm:$0xff]   ;;  %v7134_v47 = vld [vmem:[#allocation2 + $0x84] ss:$8 sps:$4 sm:$0xff]   ;;  %v7140_v49 = vld [vmem:[#allocation2 + $0x174] ss:$8 sps:$4 sm:$0xff]  }
 0x103   :  { %v7132_v48 = vld [vmem:[#allocation2 + $0x80] ss:$8 sps:$4 sm:$0xff]   ;;  %v7138_v50 = vld [vmem:[#allocation2 + $0x170] ss:$8 sps:$4 sm:$0xff]   ;;  %v7146_v51 = vld [vmem:[#allocation2 + $0x164] ss:$8 sps:$4 sm:$0xff]  }
 0x104   :  { %v7144_v52 = vld [vmem:[#allocation2 + $0x160] ss:$8 sps:$4 sm:$0xff]   ;;  %v7152_v53 = vld [vmem:[#allocation2 + $0x154] ss:$8 sps:$4 sm:$0xff]   ;;  %v7150_v54 = vld [vmem:[#allocation2 + $0x150] ss:$8 sps:$4 sm:$0xff]  }
 0x105   :  { %6955 = vmatpush3.bf16.msra.mxu0 %v8480_v10  ;;  %6971 = vmatpush3.bf16.msra.mxu1 %v8480_v10  ;;  %v7158_v55 = vld [vmem:[#allocation2 + $0x144] ss:$8 sps:$4 sm:$0xff]   ;;  %v7156_v56 = vld [vmem:[#allocation2 + $0x140] ss:$8 sps:$4 sm:$0xff]   ;;  %v7164_v57 = vld [vmem:[#allocation2 + $0x134] ss:$8 sps:$4 sm:$0xff]  }
 0x106   :  { %6956 = vmatprep.subr.bf16.mxu0 %v8490_v13  ;;  %6972 = vmatprep.subr.bf16.mxu1 %v8490_v13  ;;  %v7162_v58 = vld [vmem:[#allocation2 + $0x130] ss:$8 sps:$4 sm:$0xff]   ;;  %v7170_v59 = vld [vmem:[#allocation2 + $0x124] ss:$8 sps:$4 sm:$0xff]   ;;  %v7168_v60 = vld [vmem:[#allocation2 + $0x120] ss:$8 sps:$4 sm:$0xff]  }
 0x107   :  { %v7173_v61 = vld [vmem:[#allocation2 + $0x14] ss:$8 sps:$4 sm:$0xff]   ;;  %v7171_v63 = vld [vmem:[#allocation2 + $0x10] ss:$8 sps:$4 sm:$0xff]   ;;  %v7179_v1 = vld [vmem:[#allocation2 + $0x4] ss:$8 sps:$4 sm:$0xff]  }
 0x108   :  { %v7176_v62 = vld [vmem:[#allocation2 + $0x114] ss:$8 sps:$4 sm:$0xff]   ;;  %v7174_v0 = vld [vmem:[#allocation2 + $0x110] ss:$8 sps:$4 sm:$0xff]   ;;  %v7182_v2 = vld [vmem:[#allocation2 + $0x104] ss:$8 sps:$4 sm:$0xff]  }
 0x109   :  { %6957 = vmatpush3.bf16.msra.mxu0 %v8490_v13  ;;  %6973 = vmatpush3.bf16.msra.mxu1 %v8490_v13  ;;  %v7177_v4 = vld [vmem:[#allocation2] ss:$8 sps:$4 sm:$0xff]  }
 0x10a   :  { %684 = vmatprep.subr.bf16.mxu0 %v7113_v14  ;;  %837 = vmatprep.subr.bf16.mxu1 %v7137_v25 }
 0x10c   :  { %6959 = vmatmul.mubr.msk.bf16.vlgmr.msra.gmra.mxu0 %vm388_vm0, %v7105_v15  ;;  %6975 = vmatmul.mubr.msk.bf16.vlgmr.msra.gmra.mxu1 %vm388_vm0, %v7106_v16 }
 0x10d   :  { %6962 = vmatprep.mubr.msk.bf16.mxu0 %vm388_vm0, %v7107_v17  ;;  %6978 = vmatprep.mubr.msk.bf16.mxu1 %vm388_vm0, %v7109_v18 }
 0x10e   :  { %685 = vmatpush1.bf16.msra.mxu0 %v7111_v19  ;;  %838 = vmatpush1.bf16.msra.mxu1 %v7135_v24 }
 0x10f   :  { %686 = vmatprep.subr.bf16.mxu0 %v7116_v20  ;;  %839 = vmatprep.subr.bf16.mxu1 %v7143_v29 }
 0x112   :  { %687 = vmatpush1.bf16.msra.mxu0 %v7114_v21  ;;  %840 = vmatpush1.bf16.msra.mxu1 %v7141_v28 }
 0x113   :  { %688 = vmatprep.subr.bf16.mxu0 %v7119_v23  ;;  %841 = vmatprep.subr.bf16.mxu1 %v7149_v31 }
 0x114   :  { %6963 = vmatmul.mubr.msk.bf16.gmra.mxu0 %vm388_vm0, %v7108_v22  ;;  %6979 = vmatmul.mubr.msk.bf16.gmra.mxu1 %vm388_vm0, %v7110_v26 }
 0x115   :  { %716 = vmatprep.mubr.bf16.mxu0 %v8251_v33  ;;  %869 = vmatprep.mubr.bf16.mxu1 %v8251_v33 }
 0x116   :  { %689 = vmatpush1.bf16.msra.mxu0 %v7117_v27  ;;  %842 = vmatpush1.bf16.msra.mxu1 %v7147_v34 }
 0x117   :  { %690 = vmatprep.subr.bf16.mxu0 %v7122_v30  ;;  %843 = vmatprep.subr.bf16.mxu1 %v7155_v36 }
 0x11a   :  { %691 = vmatpush1.bf16.msra.mxu0 %v7120_v32  ;;  %844 = vmatpush1.bf16.msra.mxu1 %v7153_v38 }
 0x11b   :  { %692 = vmatprep.subr.bf16.mxu0 %v7125_v35  ;;  %845 = vmatprep.subr.bf16.mxu1 %v7161_v40 }
 0x11e   :  { %693 = vmatpush1.bf16.msra.mxu0 %v7123_v37  ;;  %846 = vmatpush1.bf16.msra.mxu1 %v7159_v43 }
 0x11f   :  { %694 = vmatprep.subr.bf16.mxu0 %v7128_v39  ;;  %847 = vmatprep.subr.bf16.mxu1 %v7167_v44 }
 0x122   :  { %695 = vmatpush1.bf16.msra.mxu0 %v7126_v41  ;;  %848 = vmatpush1.bf16.msra.mxu1 %v7165_v46 }
 0x123   :  { %696 = vmatprep.subr.bf16.mxu0 %v7131_v42  ;;  %849 = vmatprep.subr.bf16.mxu1 %v7173_v61 }
 0x126   :  { %697 = vmatpush1.bf16.msra.mxu0 %v7129_v45  ;;  %850 = vmatpush1.bf16.msra.mxu1 %v7171_v63 }
 0x127   :  { %698 = vmatprep.subr.bf16.mxu0 %v7134_v47  ;;  %851 = vmatprep.subr.bf16.mxu1 %v7179_v1 }
 0x12a   :  { %699 = vmatpush1.bf16.msra.mxu0 %v7132_v48  ;;  %852 = vmatpush1.bf16.msra.mxu1 %v7177_v4 }
 0x12b   :  { %1007 = vmatprep.subr.bf16.mxu0 %v7140_v49 }
 0x12d   :  { %717 = vmatmul.mubr.bf16.vlgmr.msra.gmra.mxu0 %v8490_v13 }
 0x12e   :  { %1008 = vmatpush1.bf16.msra.mxu0 %v7138_v50  ;;  %726 = vmatprep.mubr.bf16.mxu0 %v8251_v33 }
 0x12f   :  { %1009 = vmatprep.subr.bf16.mxu0 %v7146_v51 }
 0x132   :  { %1010 = vmatpush1.bf16.msra.mxu0 %v7144_v52 }
 0x133   :  { %1011 = vmatprep.subr.bf16.mxu0 %v7152_v53 }
 0x135   :  { %727 = vmatmul.mubr.bf16.gmra.mxu0 %v8480_v10 }
 0x136   :  { %1012 = vmatpush1.bf16.msra.mxu0 %v7150_v54  ;;  %736 = vmatprep.mubr.bf16.mxu0 %v8251_v33 }
 0x137   :  { %1013 = vmatprep.subr.bf16.mxu0 %v7158_v55 }
 0x13a   :  { %1014 = vmatpush1.bf16.msra.mxu0 %v7156_v56 }
 0x13b   :  { %1015 = vmatprep.subr.bf16.mxu0 %v7164_v57 }
 0x13d   :  { %737 = vmatmul.mubr.bf16.gmra.mxu0 %v8468_v5  ;;  %v7180_v5 = vld [vmem:[#allocation2 + $0x100] ss:$8 sps:$4 sm:$0xff]  }
 0x13e   :  { %1016 = vmatpush1.bf16.msra.mxu0 %v7162_v58  ;;  %746 = vmatprep.mubr.bf16.mxu0 %v8251_v33 }
 0x13f   :  { %1017 = vmatprep.subr.bf16.mxu0 %v7170_v59 }
 0x142   :  { %1018 = vmatpush1.bf16.msra.mxu0 %v7168_v60 }
 0x143   :  { %1019 = vmatprep.subr.bf16.mxu0 %v7176_v62 }
 0x145   :  { %747 = vmatmul.mubr.bf16.gmra.mxu0 %v8465_v3 }
 0x146   :  { %1039 = vmatprep.mubr.bf16.mxu0 %v8251_v33  ;;  %1020 = vmatpush1.bf16.msra.mxu0 %v7174_v0  ;;  %v1098_v0 = vlaneseq }
 0x147   :  { %1021 = vmatprep.subr.bf16.mxu0 %v7182_v2 }
 0x14a   :  { %1022 = vmatpush1.bf16.msra.mxu0 %v7180_v5 }
 0x1cc   :  { %v6960_v6 = vpop.f32.mrf.mxu0  ;;  %v6976_v3 = vpop.f32.mrf.mxu1 }
 0x1ce   :  { %v435_v7 = vpop.f32.mrf.mxu0  ;;  %v536_v8 = vpop.f32.mrf.mxu1 }
 0x1d0   :  { %v6961_v9 = vpop.f32.mrf.mxu0  ;;  %v6977_v10 = vpop.f32.mrf.mxu1 }
 0x1d1   :  { %v467_v19 = vpack.c.bf16 %v6961_v9, %v6960_v6  ;;  %v568_v20 = vpack.c.bf16 %v6977_v10, %v6976_v3  ;;  %v1099_v6 = vshrl.u32 %v1098_v0, 7 }
 0x1d2   :  { %v438_v11 = vpop.f32.mrf.mxu0  ;;  %v539_v12 = vpop.f32.mrf.mxu1 }
 0x1d3   :  { %v466_v13 = vpack.c.bf16 %v438_v11, %v435_v7  ;;  %v567_v14 = vpack.c.bf16 %v539_v12, %v536_v8  ;;  %v8552_v10 = vsub.s32 0, %v1099_v6  ;;  %v1096_v12 = vld [vmem:[%s8978_s7] sm:$0x3] }
 0x1d4   :  { %v6964_v15 = vpop.f32.mrf.mxu0  ;;  %v6980_v16 = vpop.f32.mrf.mxu1 }
 0x1d5   :  { %870 = vmatmul.mubr.bf16.vlgmr.msra.gmra.mxu1 %v466_v13  ;;  %1040 = vmatmul.mubr.bf16.vlgmr.msra.gmra.mxu0 %v567_v14  ;;  %v8555_v13 = vsub.s32 1, %v1099_v6 }
 0x1d6   :  { %879 = vmatprep.mubr.bf16.mxu1 %v8251_v33  ;;  %1049 = vmatprep.mubr.bf16.mxu0 %v8251_v33  ;;  %v451_v17 = vpop.f32.mrf.mxu0  ;;  %v552_v18 = vpop.f32.mrf.mxu1 }
 0x1d8   :  { %v6965_v21 = vpop.f32.mrf.mxu0  ;;  %v6981_v22 = vpop.f32.mrf.mxu1 }
 0x1d9   :  { %v469_v27 = vpack.c.bf16 %v6965_v21, %v6964_v15  ;;  %v570_v28 = vpack.c.bf16 %v6981_v22, %v6980_v16  ;;  %v8558_v22 = vrot.slane %v1096_v12, %v8552_v10 }
 0x1da   :  { %v454_v23 = vpop.f32.mrf.mxu0  ;;  %v555_v24 = vpop.f32.mrf.mxu1 }
 0x1db   :  { %v468_v25 = vpack.c.bf16 %v454_v23, %v451_v17  ;;  %v569_v26 = vpack.c.bf16 %v555_v24, %v552_v18 }
 0x1dd   :  { %880 = vmatmul.mubr.bf16.gmra.mxu1 %v467_v19  ;;  %1050 = vmatmul.mubr.bf16.gmra.mxu0 %v568_v20 }
 0x1de   :  { %889 = vmatprep.mubr.bf16.mxu1 %v8251_v33  ;;  %1059 = vmatprep.mubr.bf16.mxu0 %v8251_v33 }
 0x1e5   :  { %890 = vmatmul.mubr.bf16.gmra.mxu1 %v468_v25  ;;  %1060 = vmatmul.mubr.bf16.gmra.mxu0 %v569_v26  ;;  %v1105_v26 = vrot.slane %v1096_v12, %v8555_v13 }
 0x1e6   :  { %899 = vmatprep.mubr.bf16.mxu1 %v8251_v33  ;;  %1069 = vmatprep.mubr.bf16.mxu0 %v8251_v33 }
 0x1ed   :  { %900 = vmatmul.mubr.bf16.gmra.mxu1 %v469_v27  ;;  %1070 = vmatmul.mubr.bf16.gmra.mxu0 %v570_v28  ;;  %v8528_v29 = vpop.f32.mrf.mxu0 }
 0x1ee   :  { %1180 = vmatprep.mubr.bf16.mxu1 %v8251_v33  ;;  %1261 = vmatprep.mubr.bf16.mxu0 %v8251_v33 }
 0x1ef   :  { %v8530_v30 = vpop.f32.mrf.mxu0 }
 0x1f1   :  { %v8532_v31 = vpop.f32.mrf.mxu0 }
 0x1f3   :  { %v8534_v32 = vpop.f32.mrf.mxu0 }
 0x1f5   :  { %v8536_v34 = vpop.f32.mrf.mxu0 }
 0x1f7   :  { %v730_v35 = vpop.f32.mrf.mxu0 }
 0x1f9   :  { %v8538_v36 = vpop.f32.mrf.mxu0 }
 0x1fb   :  { %v734_v37 = vpop.f32.mrf.mxu0 }
 0x1fd   :  { %v738_v38 = vpop.f32.mrf.mxu0 }
 0x1ff   :  { %v740_v39 = vpop.f32.mrf.mxu0 }
 0x201   :  { %v742_v40 = vpop.f32.mrf.mxu0 }
 0x203   :  { %v744_v41 = vpop.f32.mrf.mxu0 }
 0x205   :  { %v748_v42 = vpop.f32.mrf.mxu0 }
 0x207   :  { %v750_v43 = vpop.f32.mrf.mxu0 }
 0x209   :  { %v752_v44 = vpop.f32.mrf.mxu0 }
 0x20b   :  { %v754_v45 = vpop.f32.mrf.mxu0 }
 0x295   :  { %v8540_v46 = vpop.f32.mrf.mxu1  ;;  %v8542_v47 = vpop.f32.mrf.mxu0 }
 0x297   :  { %v873_v48 = vpop.f32.mrf.mxu1  ;;  %v8544_v49 = vpop.f32.mrf.mxu0 }
 0x299   :  { %v875_v50 = vpop.f32.mrf.mxu1  ;;  %v8546_v51 = vpop.f32.mrf.mxu0 }
 0x29b   :  { %v877_v52 = vpop.f32.mrf.mxu1  ;;  %v8548_v53 = vpop.f32.mrf.mxu0 }
 0x29d   :  { %v881_v54 = vpop.f32.mrf.mxu1  ;;  %v8550_v55 = vpop.f32.mrf.mxu0 }
 0x29f   :  { %v883_v56 = vpop.f32.mrf.mxu1  ;;  %v1053_v57 = vpop.f32.mrf.mxu0 }
 0x2a0   :  { %v884_v6 = vadd.f32 %v883_v56, %v730_v35  ;;  %v876_v35 = vadd.f32 %v875_v50, %v8532_v31 }
 0x2a1   :  { %v885_v58 = vpop.f32.mrf.mxu1  ;;  %v1055_v59 = vpop.f32.mrf.mxu0 }
 0x2a2   :  { %v1082_v12 = vadd.f32 %v8546_v51, %v876_v35  ;;  %v7243_v35 = vld [vmem:[%s8979_s2 + $0x50] ss:$8 sps:$4 sm:$0xff]  }
 0x2a3   :  { %v887_v60 = vpop.f32.mrf.mxu1  ;;  %v1057_v61 = vpop.f32.mrf.mxu0 }
 0x2a4   :  { %v888_v23 = vadd.f32 %v887_v60, %v734_v37 }
 0x2a5   :  { %v891_v62 = vpop.f32.mrf.mxu1  ;;  %v1061_v63 = vpop.f32.mrf.mxu0 }
 0x2a6   :  { %v892_v27 = vadd.f32 %v891_v62, %v738_v38  ;;  %v1087_v60 = vadd.f32 %v1057_v61, %v888_v23  ;;  %v882_v38 = vadd.f32 %v881_v54, %v8536_v34  ;;  %v872_v54 = vadd.f32 %v8540_v46, %v8528_v29 }
 0x2a7   :  { %v893_v1 = vpop.f32.mrf.mxu1  ;;  %v1063_v2 = vpop.f32.mrf.mxu0 }
 0x2a8   :  { %v894_v17 = vadd.f32 %v893_v1, %v740_v39  ;;  %v886_v1 = vadd.f32 %v885_v58, %v8538_v36  ;;  %v1115_v61 = vadd.f32 %v1105_v26, %v1087_v60  ;;  %v7186_v60 = vld [vmem:[%s8979_s2 + $0x160] ss:$8 sps:$4 sm:$0xff]  }
 0x2a9   :  { %v895_v4 = vpop.f32.mrf.mxu1  ;;  %v1065_v5 = vpop.f32.mrf.mxu0 }
 0x2aa   :  { %v896_v19 = vadd.f32 %v895_v4, %v742_v40  ;;  %v1089_v39 = vadd.f32 %v1063_v2, %v894_v17  ;;  %v878_v40 = vadd.f32 %v877_v52, %v8534_v32  ;;  %v1086_v52 = vadd.f32 %v1055_v59, %v886_v1  ;;  %v7231_v1 = vld [vmem:[%s8979_s2 + $0x70] ss:$8 sps:$4 sm:$0xff]  }
 0x2ab   :  { %v897_v3 = vpop.f32.mrf.mxu1  ;;  %v1067_v7 = vpop.f32.mrf.mxu0  ;;  %v1131_v29 = vmax.f32 %v1115_v61, 0.0  ;;  %v7840_v61 = vld [vmem:[%s8977_s30 + $0x10] sm:$0xff]  }
 0x2ac   :  { %v898_v11 = vadd.f32 %v897_v3, %v744_v41  ;;  %v1090_v4 = vadd.f32 %v1065_v5, %v896_v19  ;;  %v1117_v32 = vadd.f32 %v1105_v26, %v1089_v39  ;;  %v1083_v36 = vadd.f32 %v8548_v53, %v878_v40  ;;  %v7188_v40 = vld [vmem:[%s8979_s2 + $0x164] ss:$8 sps:$4 sm:$0xff]  }
 0x2ad   :  { %v901_v8 = vpop.f32.mrf.mxu1  ;;  %v1071_v9 = vpop.f32.mrf.mxu0 }
 0x2ae   :  { %v902_v14 = vadd.f32 %v901_v8, %v748_v42  ;;  %v1091_v24 = vadd.f32 %v1067_v7, %v898_v11  ;;  %v874_v42 = vadd.f32 %v873_v48, %v8530_v30  ;;  %v1118_v56 = vadd.f32 %v8558_v22, %v1090_v4  ;;  %v7835_v4 = vld [vmem:[%s8976_s25] sm:$0xff]  }
 0x2af   :  { %v903_v15 = vpop.f32.mrf.mxu1  ;;  %v1073_v16 = vpop.f32.mrf.mxu0  ;;  %v1133_v53 = vmax.f32 %v1117_v32, 0.0  ;;  %v1111_v17 = vadd.f32 %v1105_v26, %v1083_v36  ;;  %v7251_v32 = vld [vmem:[%s8979_s2 + $0x44] ss:$8 sps:$4 sm:$0xff]   ;;  %v7195_v36 = vld [vmem:[%s8979_s2 + $0x130] ss:$8 sps:$4 sm:$0xff]  }
 0x2b0   :  { %v904_v18 = vadd.f32 %v903_v15, %v750_v43  ;;  %v1092_v28 = vadd.f32 %v1071_v9, %v902_v14  ;;  %v1119_v7 = vadd.f32 %v1105_v26, %v1091_v24  ;;  %v1114_v14 = vadd.f32 %v8558_v22, %v1086_v52  ;;  %v7200_v52 = vld [vmem:[%s8979_s2 + $0x124] ss:$8 sps:$4 sm:$0xff]  }
 0x2b1   :  { %v905_v20 = vpop.f32.mrf.mxu1  ;;  %v1075_v21 = vpop.f32.mrf.mxu0  ;;  %v1134_v15 = vmax.f32 %v1118_v56, 0.0  ;;  %v1127_v24 = vmax.f32 %v1111_v17, 0.0  ;;  %v7249_v56 = vld [vmem:[%s8979_s2 + $0x40] ss:$8 sps:$4 sm:$0xff]   ;;  %v7267_v17 = vld [vmem:[%s8979_s2 + $0x10] ss:$8 sps:$4 sm:$0xff]  }
 0x2b2   :  { %v1093_v25 = vadd.f32 %v1073_v16, %v904_v18  ;;  %v906_v41 = vadd.f32 %v905_v20, %v752_v44  ;;  %v1088_v44 = vadd.f32 %v1061_v63, %v892_v27  ;;  %v1120_v62 = vadd.f32 %v8558_v22, %v1092_v28 }
 0x2b3   :  { %v907_v0 = vpop.f32.mrf.mxu1  ;;  %v1077_v37 = vpop.f32.mrf.mxu0  ;;  %v1135_v2 = vmax.f32 %v1119_v7, 0.0  ;;  %v1084_v63 = vadd.f32 %v8550_v55, %v882_v38  ;;  %v1110_v20 = vadd.f32 %v8558_v22, %v1082_v12  ;;  %v7191_v7 = vld [vmem:[%s8979_s2 + $0x154] ss:$8 sps:$4 sm:$0xff]   ;;  %v7194_v38 = vld [vmem:[%s8979_s2 + $0x144] ss:$8 sps:$4 sm:$0xff]  }
 0x2b4   :  { %v908_v43 = vadd.f32 %v907_v0, %v754_v45  ;;  %v1094_v3 = vadd.f32 %v1075_v21, %v906_v41  ;;  %v1121_v8 = vadd.f32 %v1105_v26, %v1093_v25  ;;  %v1085_v45 = vadd.f32 %v1053_v57, %v884_v6  ;;  %v7233_v6 = vld [vmem:[%s8979_s2 + $0x74] ss:$8 sps:$4 sm:$0xff]  }
 0x2b5   :  { %v1116_v31 = vadd.f32 %v8558_v22, %v1088_v44  ;;  %v1136_v50 = vmax.f32 %v1120_v62, 0.0  ;;  %v1081_v57 = vadd.f32 %v8544_v49, %v874_v42  ;;  %v8583_v46 = vpack.c.bf16 %v1135_v2, %v1133_v53  ;;  %v7185_v42 = vld [vmem:[%s8979_s2 + $0x174] ss:$8 sps:$4 sm:$0xff]   ;;  %v7837_v62 = vld [vmem:[%s8976_s25 + $0x8] sm:$0xff]  }
 0x2b6   :  { %v1095_v11 = vadd.f32 %v1077_v37, %v908_v43  ;;  %v1122_v30 = vadd.f32 %v8558_v22, %v1094_v3  ;;  %v1137_v5 = vmax.f32 %v1121_v8, 0.0  ;;  %v1113_v9 = vadd.f32 %v1105_v26, %v1085_v45  ;;  %v7183_v43 = vld [vmem:[%s8979_s2 + $0x170] ss:$8 sps:$4 sm:$0xff]   ;;  %v7836_v3 = vld [vmem:[%s8977_s30] sm:$0xff]   ;;  %v7245_v44 = vld [vmem:[%s8979_s2 + $0x54] ss:$8 sps:$4 sm:$0xff]  }
 0x2b7   :  { %v1080_v49 = vadd.f32 %v8542_v47, %v872_v54  ;;  %v1112_v55 = vadd.f32 %v8558_v22, %v1084_v63  ;;  %v1132_v18 = vmax.f32 %v1116_v31, 0.0  ;;  %v1109_v51 = vadd.f32 %v1105_v26, %v1081_v57  ;;  %v7239_v37 = vld [vmem:[%s8979_s2 + $0x64] ss:$8 sps:$4 sm:$0xff]   ;;  %v7237_v8 = vld [vmem:[%s8979_s2 + $0x60] ss:$8 sps:$4 sm:$0xff]   ;;  %v7842_v53 = vld [vmem:[%s8977_s30 + $0x18] sm:$0xff]  }
 0x2b8   :  { %v1123_v48 = vadd.f32 %v1105_v26, %v1095_v11  ;;  %v1138_v58 = vmax.f32 %v1122_v30, 0.0  ;;  %v1129_v19 = vmax.f32 %v1113_v9, 0.0  ;;  %v1130_v21 = vmax.f32 %v1114_v14, 0.0  ;;  %v7189_v11 = vld [vmem:[%s8979_s2 + $0x150] ss:$8 sps:$4 sm:$0xff]   ;;  %v7838_v30 = vld [vmem:[%s8977_s30 + $0x8] sm:$0xff]  }
 0x2b9   :  { %v8592_v23 = vpack.c.bf16 %v1134_v15, %v1132_v18  ;;  %v1108_v25 = vadd.f32 %v8558_v22, %v1080_v49  ;;  %v1128_v27 = vmax.f32 %v1112_v55, 0.0  ;;  %v1125_v26 = vmax.f32 %v1109_v51, 0.0  ;;  %v7192_v45 = vld [vmem:[%s8979_s2 + $0x140] ss:$8 sps:$4 sm:$0xff]   ;;  %v7257_v2 = vld [vmem:[%s8979_s2 + $0x34] ss:$8 sps:$4 sm:$0xff]  }
 0x2ba   :  { %v1139_v34 = vmax.f32 %v1123_v48, 0.0  ;;  %v8579_v16 = vpack.c.bf16 %v1138_v58, %v1136_v50  ;;  %v8594_v47 = vpack.c.bf16 %v1131_v29, %v1129_v19  ;;  %v1126_v28 = vmax.f32 %v1110_v20, 0.0  ;;  %v7197_v48 = vld [vmem:[%s8979_s2 + $0x134] ss:$8 sps:$4 sm:$0xff]   ;;  %v7255_v54 = vld [vmem:[%s8979_s2 + $0x30] ss:$8 sps:$4 sm:$0xff]  }
 0x2bb   :  { %v8601_v41 = vpack.c.bf16 %v1130_v21, %v1128_v27  ;;  %v8603_v0 = vpack.c.bf16 %v1127_v24, %v1125_v26  ;;  %v1124_v22 = vmax.f32 %v1108_v25, 0.0  ;;  %v7839_v58 = vld [vmem:[%s8976_s25 + $0x10] sm:$0xff]   ;;  %v7206_v31 = vld [vmem:[%s8979_s2 + $0x104] ss:$8 sps:$4 sm:$0xff]   ;;  %v7261_v57 = vld [vmem:[%s8979_s2 + $0x20] ss:$8 sps:$4 sm:$0xff]  }
 0x2bc   :  { %v8575_v59 = vpack.c.bf16 %v1139_v34, %v1137_v5  ;;  %v7198_v5 = vld [vmem:[%s8979_s2 + $0x120] ss:$8 sps:$4 sm:$0xff]   ;;  %v7203_v34 = vld [vmem:[%s8979_s2 + $0x114] ss:$8 sps:$4 sm:$0xff]   ;;  %v7201_v63 = vld [vmem:[%s8979_s2 + $0x110] ss:$8 sps:$4 sm:$0xff]  }
 0x2bd   :  { %v8611_v39 = vpack.c.bf16 %v1126_v28, %v1124_v22  ;;  %v7263_v50 = vld [vmem:[%s8979_s2 + $0x24] ss:$8 sps:$4 sm:$0xff]   ;;  %v7841_v9 = vld [vmem:[%s8976_s25 + $0x18] sm:$0xff]   ;;  %v7204_v14 = vld [vmem:[%s8979_s2 + $0x100] ss:$8 sps:$4 sm:$0xff]  }
 0x2be   :  { %1156 = vmatprep.subr.bf16.mxu1 %v8575_v59  ;;  %1237 = vmatprep.subr.bf16.mxu0 %v8575_v59  ;;  %v7269_v12 = vld [vmem:[%s8979_s2 + $0x14] ss:$8 sps:$4 sm:$0xff]   ;;  %v7275_v29 = vld [vmem:[%s8979_s2 + $0x4] ss:$8 sps:$4 sm:$0xff]   ;;  %v7207_v49 = vld [vmem:[%s8979_s2 + $0x1f0] ss:$8 sps:$4 sm:$0xff]  }
 0x2bf   :  { %1157 = vmatpush1.bf16.msra.mxu1 %v8579_v16  ;;  %1238 = vmatpush1.bf16.msra.mxu0 %v8579_v16  ;;  %v7209_v15 = vld [vmem:[%s8979_s2 + $0x1f4] ss:$8 sps:$4 sm:$0xff]   ;;  %v7212_v55 = vld [vmem:[%s8979_s2 + $0x1e4] ss:$8 sps:$4 sm:$0xff]   ;;  %v7273_v18 = vld [vmem:[%s8979_s2] ss:$8 sps:$4 sm:$0xff]  }
 0x2c0   :  { %1158 = vmatprep.subr.bf16.mxu1 %v8583_v46  ;;  %1239 = vmatprep.subr.bf16.mxu0 %v8583_v46  ;;  %v7281_v51 = vld [vmem:[%s8979_s2 + $0xf4] ss:$8 sps:$4 sm:$0xff]   ;;  %v7210_v19 = vld [vmem:[%s8979_s2 + $0x1e0] ss:$8 sps:$4 sm:$0xff]   ;;  %v7279_v21 = vld [vmem:[%s8979_s2 + $0xf0] ss:$8 sps:$4 sm:$0xff]  }
 0x2c1   :  { %v7215_v20 = vld [vmem:[%s8979_s2 + $0x1d4] ss:$8 sps:$4 sm:$0xff]   ;;  %v7287_v24 = vld [vmem:[%s8979_s2 + $0xe4] ss:$8 sps:$4 sm:$0xff]   ;;  %v7213_v25 = vld [vmem:[%s8979_s2 + $0x1d0] ss:$8 sps:$4 sm:$0xff]  }
 0x2c2   :  { %v7218_v27 = vld [vmem:[%s8979_s2 + $0x1c4] ss:$8 sps:$4 sm:$0xff]   ;;  %v7285_v26 = vld [vmem:[%s8979_s2 + $0xe0] ss:$8 sps:$4 sm:$0xff]   ;;  %v7293_v28 = vld [vmem:[%s8979_s2 + $0xd4] ss:$8 sps:$4 sm:$0xff]  }
 0x2c3   :  { %1159 = vmatpush1.bf16.msra.mxu1 %v8592_v23  ;;  %1240 = vmatpush1.bf16.msra.mxu0 %v8592_v23  ;;  %v7221_v22 = vld [vmem:[%s8979_s2 + $0x1b4] ss:$8 sps:$4 sm:$0xff]  }
 0x2c4   :  { %1160 = vmatprep.subr.bf16.mxu1 %v8594_v47  ;;  %1241 = vmatprep.subr.bf16.mxu0 %v8594_v47 }
 0x2c7   :  { %1161 = vmatpush1.bf16.msra.mxu1 %v8601_v41  ;;  %1242 = vmatpush1.bf16.msra.mxu0 %v8601_v41 }
 0x2c8   :  { %1162 = vmatprep.subr.bf16.mxu1 %v8603_v0  ;;  %1243 = vmatprep.subr.bf16.mxu0 %v8603_v0 }
 0x2cb   :  { %1163 = vmatpush1.bf16.msra.mxu1 %v8611_v39  ;;  %1244 = vmatpush1.bf16.msra.mxu0 %v8611_v39 }
 0x2cc   :  { %1535 = vmatprep.subr.bf16.mxu1 %v7185_v42  ;;  %1768 = vmatprep.subr.bf16.mxu0 %v7233_v6  ;;  %v7291_v42 = vld [vmem:[%s8979_s2 + $0xd0] ss:$8 sps:$4 sm:$0xff]   ;;  %v7299_v6 = vld [vmem:[%s8979_s2 + $0xc4] ss:$8 sps:$4 sm:$0xff]  }
 0x2ce   :  { %6218 = vmatmul.mubr.msk.bf16.vlgmr.msra.gmra.mxu1 %vm388_vm0, %v7835_v4  ;;  %6222 = vmatmul.mubr.msk.bf16.vlgmr.msra.gmra.mxu0 %vm388_vm0, %v7836_v3  ;;  %v7305_v4 = vld [vmem:[%s8979_s2 + $0xb4] ss:$8 sps:$4 sm:$0xff]   ;;  %v7222_v3 = vld [vmem:[%s8979_s2 + $0x1a0] ss:$8 sps:$4 sm:$0xff]  }
 0x2cf   :  { %1536 = vmatpush1.bf16.msra.mxu1 %v7183_v43  ;;  %1190 = vmatprep.mubr.bf16.mxu1 %v8251_v33  ;;  %v7219_v43 = vld [vmem:[%s8979_s2 + $0x1b0] ss:$8 sps:$4 sm:$0xff]  }
 0x2d0   :  { %1537 = vmatprep.subr.bf16.mxu1 %v7188_v40  ;;  %1271 = vmatprep.mubr.bf16.mxu0 %v8251_v33  ;;  %v7224_v40 = vld [vmem:[%s8979_s2 + $0x1a4] ss:$8 sps:$4 sm:$0xff]  }
 0x2d1   :  { %1769 = vmatpush1.bf16.msra.mxu0 %v7231_v1  ;;  %v7297_v1 = vld [vmem:[%s8979_s2 + $0xc0] ss:$8 sps:$4 sm:$0xff]  }
 0x2d2   :  { %1770 = vmatprep.subr.bf16.mxu0 %v7239_v37  ;;  %v7227_v37 = vld [vmem:[%s8979_s2 + $0x194] ss:$8 sps:$4 sm:$0xff]  }
 0x2d3   :  { %1538 = vmatpush1.bf16.msra.mxu1 %v7186_v60  ;;  %v7303_v60 = vld [vmem:[%s8979_s2 + $0xb0] ss:$8 sps:$4 sm:$0xff]  }
 0x2d4   :  { %1539 = vmatprep.subr.bf16.mxu1 %v7191_v7  ;;  %v7311_v7 = vld [vmem:[%s8979_s2 + $0xa4] ss:$8 sps:$4 sm:$0xff]  }
 0x2d5   :  { %1771 = vmatpush1.bf16.msra.mxu0 %v7237_v8  ;;  %v7225_v8 = vld [vmem:[%s8979_s2 + $0x190] ss:$8 sps:$4 sm:$0xff]  }
 0x2d6   :  { %6219 = vmatmul.mubr.msk.bf16.gmra.mxu1 %vm388_vm0, %v7837_v62  ;;  %6223 = vmatmul.mubr.msk.bf16.gmra.mxu0 %vm388_vm0, %v7838_v30  ;;  %v7236_v62 = vld [vmem:[%s8979_s2 + $0x274] ss:$8 sps:$4 sm:$0xff]   ;;  %v7234_v30 = vld [vmem:[%s8979_s2 + $0x270] ss:$8 sps:$4 sm:$0xff]  }
 0x2d7   :  { %1540 = vmatpush1.bf16.msra.mxu1 %v7189_v11  ;;  %1200 = vmatprep.mubr.bf16.mxu1 %v8251_v33  ;;  %v7230_v11 = vld [vmem:[%s8979_s2 + $0x184] ss:$8 sps:$4 sm:$0xff]  }
 0x2d8   :  { %1541 = vmatprep.subr.bf16.mxu1 %v7194_v38  ;;  %1281 = vmatprep.mubr.bf16.mxu0 %v8251_v33  ;;  %v7309_v38 = vld [vmem:[%s8979_s2 + $0xa0] ss:$8 sps:$4 sm:$0xff]  }
 0x2d9   :  { %1772 = vmatprep.subr.bf16.mxu0 %v7245_v44  ;;  %v7228_v44 = vld [vmem:[%s8979_s2 + $0x180] ss:$8 sps:$4 sm:$0xff]  }
 0x2da   :  { %1773 = vmatpush1.bf16.msra.mxu0 %v7243_v35  ;;  %v7242_v35 = vld [vmem:[%s8979_s2 + $0x264] ss:$8 sps:$4 sm:$0xff]  }
 0x2db   :  { %1542 = vmatpush1.bf16.msra.mxu1 %v7192_v45  ;;  %1774 = vmatprep.subr.bf16.mxu0 %v7251_v32  ;;  %v7240_v45 = vld [vmem:[%s8979_s2 + $0x260] ss:$8 sps:$4 sm:$0xff]   ;;  %v7317_v32 = vld [vmem:[%s8979_s2 + $0x94] ss:$8 sps:$4 sm:$0xff]  }
 0x2dc   :  { %1543 = vmatprep.subr.bf16.mxu1 %v7197_v48  ;;  %v7248_v48 = vld [vmem:[%s8979_s2 + $0x254] ss:$8 sps:$4 sm:$0xff]  }
 0x2de   :  { %6220 = vmatmul.mubr.msk.bf16.gmra.mxu1 %vm388_vm0, %v7839_v58  ;;  %6224 = vmatmul.mubr.msk.bf16.gmra.mxu0 %vm388_vm0, %v7840_v61  ;;  %v7254_v58 = vld [vmem:[%s8979_s2 + $0x244] ss:$8 sps:$4 sm:$0xff]   ;;  %v7260_v61 = vld [vmem:[%s8979_s2 + $0x234] ss:$8 sps:$4 sm:$0xff]  }
 0x2df   :  { %1544 = vmatpush1.bf16.msra.mxu1 %v7195_v36  ;;  %1210 = vmatprep.mubr.bf16.mxu1 %v8251_v33  ;;  %v7315_v36 = vld [vmem:[%s8979_s2 + $0x90] ss:$8 sps:$4 sm:$0xff]  }
 0x2e0   :  { %1545 = vmatprep.subr.bf16.mxu1 %v7200_v52  ;;  %1291 = vmatprep.mubr.bf16.mxu0 %v8251_v33  ;;  %v7246_v52 = vld [vmem:[%s8979_s2 + $0x250] ss:$8 sps:$4 sm:$0xff]  }
 0x2e1   :  { %1775 = vmatpush1.bf16.msra.mxu0 %v7249_v56  ;;  %v7323_v56 = vld [vmem:[%s8979_s2 + $0x84] ss:$8 sps:$4 sm:$0xff]  }
 0x2e2   :  { %1776 = vmatprep.subr.bf16.mxu0 %v7257_v2  ;;  %v7258_v2 = vld [vmem:[%s8979_s2 + $0x230] ss:$8 sps:$4 sm:$0xff]  }
 0x2e3   :  { %1546 = vmatpush1.bf16.msra.mxu1 %v7198_v5  ;;  %v7266_v5 = vld [vmem:[%s8979_s2 + $0x224] ss:$8 sps:$4 sm:$0xff]  }
 0x2e4   :  { %1547 = vmatprep.subr.bf16.mxu1 %v7203_v34  ;;  %v7270_v34 = vld [vmem:[%s8979_s2 + $0x210] ss:$8 sps:$4 sm:$0xff]  }
 0x2e5   :  { %1777 = vmatpush1.bf16.msra.mxu0 %v7255_v54  ;;  %v7278_v54 = vld [vmem:[%s8979_s2 + $0x204] ss:$8 sps:$4 sm:$0xff]  }
 0x2e6   :  { %6221 = vmatmul.mubr.msk.bf16.gmra.mxu1 %vm388_vm0, %v7841_v9  ;;  %6225 = vmatmul.mubr.msk.bf16.gmra.mxu0 %vm388_vm0, %v7842_v53  ;;  %v7302_v9 = vld [vmem:[%s8979_s2 + $0x2c4] ss:$8 sps:$4 sm:$0xff]   ;;  %v7300_v53 = vld [vmem:[%s8979_s2 + $0x2c0] ss:$8 sps:$4 sm:$0xff]  }
 0x2e7   :  { %1548 = vmatpush1.bf16.msra.mxu1 %v7201_v63  ;;  %1567 = vmatprep.mubr.bf16.mxu1 %v8603_v0  ;;  %v7216_v0 = vld [vmem:[%s8979_s2 + $0x1c0] ss:$8 sps:$4 sm:$0xff]   ;;  %v7282_v63 = vld [vmem:[%s8979_s2 + $0x2f0] ss:$8 sps:$4 sm:$0xff]  }
 0x2e8   :  { %1549 = vmatprep.subr.bf16.mxu1 %v7206_v31  ;;  %1778 = vmatprep.subr.bf16.mxu0 %v7263_v50  ;;  %v7290_v31 = vld [vmem:[%s8979_s2 + $0x2e4] ss:$8 sps:$4 sm:$0xff]   ;;  %v7288_v50 = vld [vmem:[%s8979_s2 + $0x2e0] ss:$8 sps:$4 sm:$0xff]  }
 0x2e9   :  { %1779 = vmatpush1.bf16.msra.mxu0 %v7261_v57  ;;  %v7296_v57 = vld [vmem:[%s8979_s2 + $0x2d4] ss:$8 sps:$4 sm:$0xff]  }
 0x2ea   :  { %1780 = vmatprep.subr.bf16.mxu0 %v7269_v12  ;;  %v7308_v12 = vld [vmem:[%s8979_s2 + $0x2b4] ss:$8 sps:$4 sm:$0xff]  }
 0x2eb   :  { %1550 = vmatpush1.bf16.msra.mxu1 %v7204_v14  ;;  %v7306_v14 = vld [vmem:[%s8979_s2 + $0x2b0] ss:$8 sps:$4 sm:$0xff]  }
 0x2ec   :  { %1551 = vmatprep.subr.bf16.mxu1 %v7209_v15  ;;  %v7314_v15 = vld [vmem:[%s8979_s2 + $0x2a4] ss:$8 sps:$4 sm:$0xff]  }
 0x2ed   :  { %1781 = vmatpush1.bf16.msra.mxu0 %v7267_v17  ;;  %v7312_v17 = vld [vmem:[%s8979_s2 + $0x2a0] ss:$8 sps:$4 sm:$0xff]  }
 0x2ee   :  { %1782 = vmatprep.subr.bf16.mxu0 %v7275_v29  ;;  %v7320_v29 = vld [vmem:[%s8979_s2 + $0x294] ss:$8 sps:$4 sm:$0xff]  }
 0x2ef   :  { %1552 = vmatpush2.bf16.msra.mxu1 %v7207_v49  ;;  %v7318_v49 = vld [vmem:[%s8979_s2 + $0x290] ss:$8 sps:$4 sm:$0xff]  }
 0x2f0   :  { %1553 = vmatprep.subr.bf16.mxu1 %v7212_v55  ;;  %v7326_v55 = vld [vmem:[%s8979_s2 + $0x284] ss:$8 sps:$4 sm:$0xff]  }
 0x2f1   :  { %1783 = vmatpush1.bf16.msra.mxu0 %v7273_v18  ;;  %v7324_v18 = vld [vmem:[%s8979_s2 + $0x280] ss:$8 sps:$4 sm:$0xff]  }
 0x2f2   :  { %1784 = vmatprep.subr.bf16.mxu0 %v7281_v51  ;;  %v7327_v51 = vld [vmem:[%s8980_s12 + $0x78] sm:$0xff]  }
 0x2f3   :  { %1554 = vmatpush2.bf16.msra.mxu1 %v7210_v19 }
 0x2f4   :  { %1555 = vmatprep.subr.bf16.mxu1 %v7215_v20 }
 0x2f5   :  { %1785 = vmatpush2.bf16.msra.mxu0 %v7279_v21 }
 0x2f6   :  { %1786 = vmatprep.subr.bf16.mxu0 %v7287_v24 }
 0x2f7   :  { %1556 = vmatpush2.bf16.msra.mxu1 %v7213_v25 }
 0x2f8   :  { %1557 = vmatprep.subr.bf16.mxu1 %v7218_v27 }
 0x2f9   :  { %1787 = vmatpush2.bf16.msra.mxu0 %v7285_v26 }
 0x2fa   :  { %1788 = vmatprep.subr.bf16.mxu0 %v7293_v28 }
 0x2fb   :  { %1558 = vmatpush2.bf16.msra.mxu1 %v7216_v0 }
 0x2fc   :  { %1559 = vmatprep.subr.bf16.mxu1 %v7221_v22 }
 0x2fd   :  { %1789 = vmatpush2.bf16.msra.mxu0 %v7291_v42  ;;  %v7328_v42 = vld [vmem:[%s8980_s12 + $0x38] sm:$0xff]  }
 0x2fe   :  { %1790 = vmatprep.subr.bf16.mxu0 %v7299_v6 }
 0x2ff   :  { %1560 = vmatpush2.bf16.msra.mxu1 %v7219_v43 }
 0x300   :  { %1561 = vmatprep.subr.bf16.mxu1 %v7224_v40 }
 0x301   :  { %1791 = vmatpush2.bf16.msra.mxu0 %v7297_v1 }
 0x302   :  { %1792 = vmatprep.subr.bf16.mxu0 %v7305_v4  ;;  %v7329_v4 = vld [vmem:[%s8980_s12 + $0x70] sm:$0xff]  }
 0x303   :  { %1562 = vmatpush2.bf16.msra.mxu1 %v7222_v3 }
 0x304   :  { %1563 = vmatprep.subr.bf16.mxu1 %v7227_v37 }
 0x305   :  { %1793 = vmatpush2.bf16.msra.mxu0 %v7303_v60  ;;  %v7330_v60 = vld [vmem:[%s8980_s12 + $0x30] sm:$0xff]  }
 0x306   :  { %1794 = vmatprep.subr.bf16.mxu0 %v7311_v7 }
 0x307   :  { %1564 = vmatpush2.bf16.msra.mxu1 %v7225_v8 }
 0x308   :  { %1565 = vmatprep.subr.bf16.mxu1 %v7230_v11  ;;  %v7331_v11 = vld [vmem:[%s8980_s12 + $0x68] sm:$0xff]  }
 0x309   :  { %1795 = vmatpush2.bf16.msra.mxu0 %v7309_v38 }
 0x30a   :  { %1796 = vmatprep.subr.bf16.mxu0 %v7317_v32 }
 0x30b   :  { %1566 = vmatpush2.bf16.msra.mxu1 %v7228_v44 }
 0x30c   :  { %2034 = vmatprep.subr.bf16.mxu1 %v7236_v62 }
 0x30d   :  { %1797 = vmatpush2.bf16.msra.mxu0 %v7315_v36 }
 0x30e   :  { %1568 = vmatmul.mubr.bf16.vlgmr.msra.gmra.mxu1 %v8611_v39  ;;  %v7321_v39 = vld [vmem:[%s8979_s2 + $0x80] ss:$8 sps:$4 sm:$0xff]   ;;  %1798 = vmatprep.subr.bf16.mxu0 %v7323_v56 }
 0x30f   :  { %1577 = vmatprep.mubr.bf16.mxu1 %v8594_v47  ;;  %2035 = vmatpush1.bf16.msra.mxu1 %v7234_v30  ;;  %v7252_v47 = vld [vmem:[%s8979_s2 + $0x240] ss:$8 sps:$4 sm:$0xff]  }
 0x310   :  { %2036 = vmatprep.subr.bf16.mxu1 %v7242_v35  ;;  %v7332_v35 = vld [vmem:[%s8980_s12 + $0x28] sm:$0xff]  }
 0x311   :  { %1799 = vmatpush2.bf16.msra.mxu0 %v7321_v39  ;;  %v7334_v39 = vld [vmem:[%s8980_s12 + $0x20] sm:$0xff]  }
 0x312   :  { %6784 = vmatprep.subr.bf16.mxu0 %v7327_v51  ;;  %v7340_v51 = vld [vmem:[%s8980_s12 + $0x8] sm:$0xff]  }
 0x313   :  { %2037 = vmatpush1.bf16.msra.mxu1 %v7240_v45 }
 0x314   :  { %2038 = vmatprep.subr.bf16.mxu1 %v7248_v48 }
 0x316   :  { %1578 = vmatmul.mubr.bf16.gmra.mxu1 %v8601_v41  ;;  %v7272_v41 = vld [vmem:[%s8979_s2 + $0x214] ss:$8 sps:$4 sm:$0xff]  }
 0x317   :  { %1587 = vmatprep.mubr.bf16.mxu1 %v8583_v46  ;;  %2039 = vmatpush1.bf16.msra.mxu1 %v7246_v52  ;;  %v7264_v46 = vld [vmem:[%s8979_s2 + $0x220] ss:$8 sps:$4 sm:$0xff]  }
 0x318   :  { %2040 = vmatprep.subr.bf16.mxu1 %v7254_v58  ;;  %v7333_v52 = vld [vmem:[%s8980_s12 + $0x60] sm:$0xff]  }
 0x31b   :  { %2041 = vmatpush1.bf16.msra.mxu1 %v7252_v47 }
 0x31c   :  { %2042 = vmatprep.subr.bf16.mxu1 %v7260_v61 }
 0x31e   :  { %1588 = vmatmul.mubr.bf16.gmra.mxu1 %v8592_v23  ;;  %v7276_v23 = vld [vmem:[%s8979_s2 + $0x200] ss:$8 sps:$4 sm:$0xff]  }
 0x31f   :  { %1597 = vmatprep.mubr.bf16.mxu1 %v8575_v59  ;;  %2043 = vmatpush1.bf16.msra.mxu1 %v7258_v2  ;;  %v7284_v59 = vld [vmem:[%s8979_s2 + $0x2f4] ss:$8 sps:$4 sm:$0xff]  }
 0x320   :  { %2044 = vmatprep.subr.bf16.mxu1 %v7266_v5 }
 0x323   :  { %2045 = vmatpush1.bf16.msra.mxu1 %v7264_v46 }
 0x324   :  { %2046 = vmatprep.subr.bf16.mxu1 %v7272_v41 }
 0x326   :  { %1598 = vmatmul.mubr.bf16.gmra.mxu1 %v8579_v16  ;;  %v7294_v16 = vld [vmem:[%s8979_s2 + $0x2d0] ss:$8 sps:$4 sm:$0xff]  }
 0x327   :  { %2047 = vmatpush1.bf16.msra.mxu1 %v7270_v34 }
 0x328   :  { %2048 = vmatprep.subr.bf16.mxu1 %v7278_v54 }
 0x32b   :  { %2049 = vmatpush1.bf16.msra.mxu1 %v7276_v23 }
 0x32c   :  { %2050 = vmatprep.subr.bf16.mxu1 %v7284_v59 }
 0x32f   :  { %2051 = vmatpush2.bf16.msra.mxu1 %v7282_v63 }
 0x330   :  { %2052 = vmatprep.subr.bf16.mxu1 %v7290_v31 }
 0x333   :  { %2053 = vmatpush2.bf16.msra.mxu1 %v7288_v50 }
 0x334   :  { %2054 = vmatprep.subr.bf16.mxu1 %v7296_v57 }
 0x337   :  { %2055 = vmatpush2.bf16.msra.mxu1 %v7294_v16 }
 0x338   :  { %2056 = vmatprep.subr.bf16.mxu1 %v7302_v9 }
 0x33b   :  { %2057 = vmatpush2.bf16.msra.mxu1 %v7300_v53 }
 0x33c   :  { %2058 = vmatprep.subr.bf16.mxu1 %v7308_v12 }
 0x33f   :  { %2059 = vmatpush2.bf16.msra.mxu1 %v7306_v14 }
 0x340   :  { %2060 = vmatprep.subr.bf16.mxu1 %v7314_v15 }
 0x343   :  { %2061 = vmatpush2.bf16.msra.mxu1 %v7312_v17  ;;  %v7335_v17 = vld [vmem:[%s8980_s12 + $0x58] sm:$0xff]  }
 0x344   :  { %2062 = vmatprep.subr.bf16.mxu1 %v7320_v29  ;;  %v7336_v29 = vld [vmem:[%s8980_s12 + $0x18] sm:$0xff]  }
 0x347   :  { %2063 = vmatpush2.bf16.msra.mxu1 %v7318_v49  ;;  %v7337_v49 = vld [vmem:[%s8980_s12 + $0x50] sm:$0xff]  }
 0x348   :  { %2064 = vmatprep.subr.bf16.mxu1 %v7326_v55  ;;  %v7338_v55 = vld [vmem:[%s8980_s12 + $0x10] sm:$0xff]  }
 0x34b   :  { %2065 = vmatpush2.bf16.msra.mxu1 %v7324_v18  ;;  %v7339_v18 = vld [vmem:[%s8980_s12 + $0x48] sm:$0xff]  }
 0x38e   :  { %v1182_v19 = vpop.f32.mrf.mxu1  ;;  %v1263_v20 = vpop.f32.mrf.mxu0 }
 0x390   :  { %v1184_v21 = vpop.f32.mrf.mxu1  ;;  %v1265_v24 = vpop.f32.mrf.mxu0 }
 0x392   :  { %v1186_v25 = vpop.f32.mrf.mxu1  ;;  %v1267_v27 = vpop.f32.mrf.mxu0 }
 0x393   :  { %v1221_v6 = vpack.c.bf16 %v1186_v25, %v1182_v19  ;;  %v1302_v43 = vpack.c.bf16 %v1267_v27, %v1263_v20  ;;  %v7341_v19 = vld [vmem:[%s8980_s12 + $0x40] sm:$0xff]  }
 0x394   :  { %v1188_v26 = vpop.f32.mrf.mxu1  ;;  %v1269_v28 = vpop.f32.mrf.mxu0  ;;  %v7342_v20 = vld [vmem:[%s8980_s12] sm:$0xff]  }
 0x395   :  { %v1222_v0 = vpack.c.bf16 %v1188_v26, %v1184_v21  ;;  %v1303_v22 = vpack.c.bf16 %v1269_v28, %v1265_v24  ;;  %v7343_v21 = vld [vmem:[%s8981_s10 + $0x78] sm:$0xff]  }
 0x396   :  { %v1192_v40 = vpop.f32.mrf.mxu1  ;;  %v1273_v1 = vpop.f32.mrf.mxu0 }
 0x397   :  { %1800 = vmatprep.mubr.bf16.mxu0 %v1222_v0  ;;  %2066 = vmatprep.mubr.bf16.mxu1 %v1303_v22 }
 0x398   :  { %v1194_v3 = vpop.f32.mrf.mxu1  ;;  %v1275_v37 = vpop.f32.mrf.mxu0  ;;  %1801 = vmatmul.mubr.bf16.vlgmr.msra.gmra.mxu0 %v1221_v6  ;;  %2067 = vmatmul.mubr.bf16.vlgmr.msra.gmra.mxu1 %v1302_v43 }
 0x399   :  { %6785 = vmatpush3.bf16.msra.mxu0 %v7328_v42 }
 0x39a   :  { %v1196_v7 = vpop.f32.mrf.mxu1  ;;  %v1277_v8 = vpop.f32.mrf.mxu0  ;;  %6786 = vmatprep.subr.bf16.mxu0 %v7329_v4 }
 0x39b   :  { %v1223_v45 = vpack.c.bf16 %v1196_v7, %v1192_v40  ;;  %v1304_v32 = vpack.c.bf16 %v1277_v8, %v1273_v1  ;;  %v2123_v7 = vld [vmem:[#allocation4] sm:$0x3] }
 0x39c   :  { %v1198_v38 = vpop.f32.mrf.mxu1  ;;  %v1279_v44 = vpop.f32.mrf.mxu0 }
 0x39d   :  { %v1224_v62 = vpack.c.bf16 %v1198_v38, %v1194_v3  ;;  %v1305_v30 = vpack.c.bf16 %v1279_v44, %v1275_v37  ;;  %6787 = vmatpush3.bf16.msra.mxu0 %v7330_v60  ;;  %v8773_v44 = vrot.slane %v2123_v7, %v8552_v10 }
 0x39e   :  { %v1202_v48 = vpop.f32.mrf.mxu1  ;;  %v1283_v36 = vpop.f32.mrf.mxu0  ;;  %6788 = vmatprep.subr.bf16.mxu0 %v7331_v11 }
 0x39f   :  { %1810 = vmatprep.mubr.bf16.mxu0 %v1224_v62  ;;  %2076 = vmatprep.mubr.bf16.mxu1 %v1305_v30 }
 0x3a0   :  { %v1204_v56 = vpop.f32.mrf.mxu1  ;;  %v1285_v58 = vpop.f32.mrf.mxu0  ;;  %1811 = vmatmul.mubr.bf16.gmra.mxu0 %v1223_v45  ;;  %2077 = vmatmul.mubr.bf16.gmra.mxu1 %v1304_v32  ;;  %v8776_v32 = vrot.slane %v2123_v7, %v8555_v13 }
 0x3a1   :  { %6789 = vmatpush3.bf16.msra.mxu0 %v7332_v35 }
 0x3a2   :  { %v1206_v47 = vpop.f32.mrf.mxu1  ;;  %v1287_v61 = vpop.f32.mrf.mxu0  ;;  %6790 = vmatprep.subr.bf16.mxu0 %v7333_v52 }
 0x3a3   :  { %v1225_v34 = vpack.c.bf16 %v1206_v47, %v1202_v48  ;;  %v1306_v54 = vpack.c.bf16 %v1287_v61, %v1283_v36 }
 0x3a4   :  { %v1208_v2 = vpop.f32.mrf.mxu1  ;;  %v1289_v5 = vpop.f32.mrf.mxu0 }
 0x3a5   :  { %v1226_v46 = vpack.c.bf16 %v1208_v2, %v1204_v56  ;;  %v1307_v41 = vpack.c.bf16 %v1289_v5, %v1285_v58  ;;  %6791 = vmatpush3.bf16.msra.mxu0 %v7334_v39 }
 0x3a6   :  { %v1212_v23 = vpop.f32.mrf.mxu1  ;;  %v1293_v59 = vpop.f32.mrf.mxu0  ;;  %6792 = vmatprep.subr.bf16.mxu0 %v7335_v17 }
 0x3a7   :  { %1820 = vmatprep.mubr.bf16.mxu0 %v1226_v46  ;;  %2086 = vmatprep.mubr.bf16.mxu1 %v1307_v41 }
 0x3a8   :  { %v1214_v63 = vpop.f32.mrf.mxu1  ;;  %v1295_v31 = vpop.f32.mrf.mxu0  ;;  %1821 = vmatmul.mubr.bf16.gmra.mxu0 %v1225_v34  ;;  %2087 = vmatmul.mubr.bf16.gmra.mxu1 %v1306_v54 }
 0x3a9   :  { %6793 = vmatpush3.bf16.msra.mxu0 %v7336_v29 }
 0x3aa   :  { %v1216_v50 = vpop.f32.mrf.mxu1  ;;  %v1297_v57 = vpop.f32.mrf.mxu0  ;;  %6794 = vmatprep.subr.bf16.mxu0 %v7337_v49 }
 0x3ab   :  { %v1227_v14 = vpack.c.bf16 %v1216_v50, %v1212_v23  ;;  %v1308_v15 = vpack.c.bf16 %v1297_v57, %v1293_v59 }
 0x3ac   :  { %v1218_v16 = vpop.f32.mrf.mxu1  ;;  %v1299_v9 = vpop.f32.mrf.mxu0 }
 0x3ad   :  { %v1228_v53 = vpack.c.bf16 %v1218_v16, %v1214_v63  ;;  %v1309_v12 = vpack.c.bf16 %v1299_v9, %v1295_v31  ;;  %6795 = vmatpush3.bf16.msra.mxu0 %v7338_v55 }
 0x3ae   :  { %6796 = vmatprep.subr.bf16.mxu0 %v7339_v18 }
 0x3af   :  { %1830 = vmatprep.mubr.bf16.mxu0 %v1228_v53  ;;  %2096 = vmatprep.mubr.bf16.mxu1 %v1309_v12 }
 0x3b0   :  { %1831 = vmatmul.mubr.bf16.gmra.mxu0 %v1227_v14  ;;  %2097 = vmatmul.mubr.bf16.gmra.mxu1 %v1308_v15 }
 0x3b1   :  { %6797 = vmatpush3.bf16.msra.mxu0 %v7340_v51 }
 0x3b2   :  { %6798 = vmatprep.subr.bf16.mxu0 %v7341_v19 }
 0x3b5   :  { %6799 = vmatpush3.bf16.msra.mxu0 %v7342_v20 }
 0x3b6   :  { %6824 = vmatprep.subr.bf16.mxu0 %v7343_v21 }
 0x3ce   :  { %v1569_v24 = vpop.f32.mrf.mxu1 }
 0x3d0   :  { %v1571_v25 = vpop.f32.mrf.mxu1 }
 0x3d2   :  { %v1573_v27 = vpop.f32.mrf.mxu1 }
 0x3d4   :  { %v1575_v26 = vpop.f32.mrf.mxu1 }
 0x3d6   :  { %v1579_v28 = vpop.f32.mrf.mxu1 }
 0x3d8   :  { %v1581_v0 = vpop.f32.mrf.mxu1 }
 0x3da   :  { %v1583_v22 = vpop.f32.mrf.mxu1 }
 0x3dc   :  { %v1585_v42 = vpop.f32.mrf.mxu1 }
 0x3de   :  { %v8756_v6 = vpop.f32.mrf.mxu1 }
 0x3e0   :  { %v8758_v43 = vpop.f32.mrf.mxu1 }
 0x3e2   :  { %v8760_v40 = vpop.f32.mrf.mxu1 }
 0x3e4   :  { %v8762_v1 = vpop.f32.mrf.mxu1 }
 0x3e6   :  { %v8764_v4 = vpop.f32.mrf.mxu1 }
 0x3e8   :  { %v8766_v3 = vpop.f32.mrf.mxu1 }
 0x3ea   :  { %v8768_v37 = vpop.f32.mrf.mxu1 }
 0x3ec   :  { %v8770_v60 = vpop.f32.mrf.mxu1 }
 0x458   :  { %v1802_v8 = vpop.f32.mrf.mxu0  ;;  %v2068_v11 = vpop.f32.mrf.mxu1 }
 0x459   :  { %v1803_v38 = vadd.f32 %v1802_v8, %v1569_v24  ;;  %v7344_v24 = vld [vmem:[%s8981_s10 + $0x38] sm:$0xff]  }
 0x45a   :  { %v1804_v62 = vpop.f32.mrf.mxu0  ;;  %v2070_v30 = vpop.f32.mrf.mxu1 }
 0x45b   :  { %v2107_v35 = vadd.f32 %v2068_v11, %v1803_v38  ;;  %v1805_v45 = vadd.f32 %v1804_v62, %v1571_v25 }
 0x45c   :  { %v1806_v48 = vpop.f32.mrf.mxu0  ;;  %v2072_v36 = vpop.f32.mrf.mxu1 }
 0x45d   :  { %v2135_v52 = vadd.f32 %v8773_v44, %v2107_v35  ;;  %v2108_v56 = vadd.f32 %v2070_v30, %v1805_v45  ;;  %v1807_v58 = vadd.f32 %v1806_v48, %v1573_v27  ;;  %v7346_v45 = vld [vmem:[%s8981_s10 + $0x30] sm:$0xff]  }
 0x45e   :  { %v1808_v39 = vpop.f32.mrf.mxu0  ;;  %v2074_v47 = vpop.f32.mrf.mxu1 }
 0x45f   :  { %v2151_v61 = vmax.f32 %v2135_v52, 0.0  ;;  %v2136_v2 = vadd.f32 %v8776_v32, %v2108_v56  ;;  %v2109_v5 = vadd.f32 %v2072_v36, %v1807_v58  ;;  %v1809_v46 = vadd.f32 %v1808_v39, %v1575_v26  ;;  %v7347_v52 = vld [vmem:[%s8981_s10 + $0x68] sm:$0xff]  }
 0x460   :  { %v1812_v41 = vpop.f32.mrf.mxu0  ;;  %v2078_v34 = vpop.f32.mrf.mxu1 }
 0x461   :  { %2167 = vst [vmem:[%s8397_s5] sm:$0xff] %v2151_v61  ;;  %v2152_v54 = vmax.f32 %v2136_v2, 0.0  ;;  %v2137_v23 = vadd.f32 %v8773_v44, %v2109_v5  ;;  %v2110_v59 = vadd.f32 %v2074_v47, %v1809_v46  ;;  %v1813_v63 = vadd.f32 %v1812_v41, %v1579_v28 }
 0x462   :  { %v1814_v31 = vpop.f32.mrf.mxu0  ;;  %v2080_v50 = vpop.f32.mrf.mxu1 }
 0x463   :  { %2168 = vst [vmem:[%s8397_s5 + $0x8] sm:$0xff] %v2152_v54  ;;  %v2153_v57 = vmax.f32 %v2137_v23, 0.0  ;;  %v2138_v16 = vadd.f32 %v8776_v32, %v2110_v59  ;;  %v2111_v9 = vadd.f32 %v2078_v34, %v1813_v63  ;;  %v1815_v53 = vadd.f32 %v1814_v31, %v1581_v0  ;;  %v7345_v0 = vld [vmem:[%s8981_s10 + $0x70] sm:$0xff]  }
 0x464   :  { %v1816_v12 = vpop.f32.mrf.mxu0  ;;  %v2082_v14 = vpop.f32.mrf.mxu1 }
 0x465   :  { %2169 = vst [vmem:[%s8397_s5 + $0x10] sm:$0xff] %v2153_v57  ;;  %v2154_v15 = vmax.f32 %v2138_v16, 0.0  ;;  %v2139_v17 = vadd.f32 %v8773_v44, %v2111_v9  ;;  %v2112_v29 = vadd.f32 %v2080_v50, %v1815_v53  ;;  %v1817_v49 = vadd.f32 %v1816_v12, %v1583_v22 }
 0x466   :  { %v1818_v55 = vpop.f32.mrf.mxu0  ;;  %v2084_v18 = vpop.f32.mrf.mxu1  ;;  %v8791_v25 = vpack.c.bf16 %v2153_v57, %v2151_v61 }
 0x467   :  { %2170 = vst [vmem:[%s8397_s5 + $0x18] sm:$0xff] %v2154_v15  ;;  %v2155_v51 = vmax.f32 %v2139_v17, 0.0  ;;  %v2140_v19 = vadd.f32 %v8776_v32, %v2112_v29  ;;  %v1819_v20 = vadd.f32 %v1818_v55, %v1585_v42  ;;  %v8788_v21 = vpack.c.bf16 %v2154_v15, %v2152_v54 }
 0x468   :  { %v2113_v27 = vadd.f32 %v2082_v14, %v1817_v49  ;;  %v1822_v26 = vpop.f32.mrf.mxu0  ;;  %v2088_v28 = vpop.f32.mrf.mxu1 }
 0x469   :  { %2171 = vst [vmem:[%s8397_s5 + $0x20] sm:$0xff] %v2155_v51  ;;  %v2156_v22 = vmax.f32 %v2140_v19, 0.0  ;;  %v2114_v7 = vadd.f32 %v2084_v18, %v1819_v20  ;;  %v1823_v8 = vadd.f32 %v1822_v26, %v8756_v6  ;;  %2351 = vmatprep.mubr.bf16.mxu0 %v8788_v21  ;;  %v7351_v19 = vld [vmem:[%s8981_s10 + $0x58] sm:$0xff]  }
 0x46a   :  { %v2141_v42 = vadd.f32 %v8773_v44, %v2113_v27  ;;  %v1824_v11 = vpop.f32.mrf.mxu0  ;;  %v2090_v38 = vpop.f32.mrf.mxu1  ;;  %2352 = vmatmul.mubr.bf16.vlgmr.msra.gmra.mxu0 %v8791_v25 }
 0x46b   :  { %2172 = vst [vmem:[%s8397_s5 + $0x28] sm:$0xff] %v2156_v22  ;;  %v2142_v62 = vadd.f32 %v8776_v32, %v2114_v7  ;;  %v2115_v30 = vadd.f32 %v2088_v28, %v1823_v8  ;;  %v1825_v35 = vadd.f32 %v1824_v11, %v8758_v43  ;;  %6825 = vmatpush3.bf16.msra.mxu0 %v7344_v24  ;;  %v7353_v11 = vld [vmem:[%s8981_s10 + $0x50] sm:$0xff]  }
 0x46c   :  { %v2157_v6 = vmax.f32 %v2141_v42, 0.0  ;;  %v1826_v48 = vpop.f32.mrf.mxu0  ;;  %v2092_v36 = vpop.f32.mrf.mxu1  ;;  %6826 = vmatprep.subr.bf16.mxu0 %v7345_v0 }
 0x46d   :  { %v2158_v56 = vmax.f32 %v2142_v62, 0.0  ;;  %v2143_v58 = vadd.f32 %v8773_v44, %v2115_v30  ;;  %v2116_v39 = vadd.f32 %v2090_v38, %v1825_v35  ;;  %v1827_v47 = vadd.f32 %v1826_v48, %v8760_v40  ;;  %v7348_v40 = vld [vmem:[%s8981_s10 + $0x28] sm:$0xff]   ;;  %v7354_v62 = vld [vmem:[%s8981_s10 + $0x10] sm:$0xff]   ;;  %v7357_v48 = vld [vmem:[%s8981_s10 + $0x40] sm:$0xff]  }
 0x46e   :  { %2173 = vst [vmem:[%s8397_s5 + $0x30] sm:$0xff] %v2157_v6  ;;  %v1828_v61 = vpop.f32.mrf.mxu0  ;;  %v2094_v2 = vpop.f32.mrf.mxu1  ;;  %v8812_v59 = vpack.c.bf16 %v2157_v6, %v2155_v51 }
 0x46f   :  { %2174 = vst [vmem:[%s8397_s5 + $0x38] sm:$0xff] %v2158_v56  ;;  %v2159_v43 = vmax.f32 %v2143_v58, 0.0  ;;  %v2144_v5 = vadd.f32 %v8776_v32, %v2116_v39  ;;  %v2117_v46 = vadd.f32 %v2092_v36, %v1827_v47  ;;  %v1829_v41 = vadd.f32 %v1828_v61, %v8762_v1  ;;  %6827 = vmatpush3.bf16.msra.mxu0 %v7346_v45  ;;  %v7349_v1 = vld [vmem:[%s8981_s10 + $0x60] sm:$0xff]   ;;  %v7356_v45 = vld [vmem:[%s8981_s10 + $0x8] sm:$0xff]  }
 0x470   :  { %v1832_v34 = vpop.f32.mrf.mxu0  ;;  %v2098_v54 = vpop.f32.mrf.mxu1  ;;  %v8810_v23 = vpack.c.bf16 %v2158_v56, %v2156_v22  ;;  %6828 = vmatprep.subr.bf16.mxu0 %v7347_v52  ;;  %v7352_v22 = vld [vmem:[%s8981_s10 + $0x18] sm:$0xff]   ;;  %v7359_v36 = vld [vmem:[%s8982_s29] sm:$0xff]  }
 0x471   :  { %2175 = vst [vmem:[%s8397_s5 + $0x40] sm:$0xff] %v2159_v43  ;;  %v2160_v63 = vmax.f32 %v2144_v5, 0.0  ;;  %v2145_v31 = vadd.f32 %v8773_v44, %v2117_v46  ;;  %v2118_v50 = vadd.f32 %v2094_v2, %v1829_v41  ;;  %v1833_v57 = vadd.f32 %v1832_v34, %v8764_v4  ;;  %v7350_v4 = vld [vmem:[%s8981_s10 + $0x20] sm:$0xff]   ;;  %6990 = vmatprep.mubr.msk.bf16.mxu1 %vm388_vm0, %v7359_v36  ;;  %v7360_v36 = vld [vmem:[%s8982_s29 + $0x8] sm:$0xff]  }
 0x472   :  { %2359 = vmatprep.mubr.bf16.mxu0 %v8810_v23  ;;  %v1834_v16 = vpop.f32.mrf.mxu0  ;;  %v2100_v9 = vpop.f32.mrf.mxu1 }
 0x473   :  { %2176 = vst [vmem:[%s8397_s5 + $0x48] sm:$0xff] %v2160_v63  ;;  %v2161_v53 = vmax.f32 %v2145_v31, 0.0  ;;  %v2146_v12 = vadd.f32 %v8776_v32, %v2118_v50  ;;  %v2119_v14 = vadd.f32 %v2098_v54, %v1833_v57  ;;  %v1835_v15 = vadd.f32 %v1834_v16, %v8766_v3  ;;  %2360 = vmatmul.mubr.bf16.gmra.mxu0 %v8812_v59 }
 0x474   :  { %6829 = vmatpush3.bf16.msra.mxu0 %v7348_v40  ;;  %v1836_v17 = vpop.f32.mrf.mxu0  ;;  %v2102_v29 = vpop.f32.mrf.mxu1 }
 0x475   :  { %2177 = vst [vmem:[%s8397_s5 + $0x50] sm:$0xff] %v2161_v53  ;;  %v2162_v49 = vmax.f32 %v2146_v12, 0.0  ;;  %v2147_v55 = vadd.f32 %v8773_v44, %v2119_v14  ;;  %v2120_v18 = vadd.f32 %v2100_v9, %v1835_v15  ;;  %v1837_v51 = vadd.f32 %v1836_v17, %v8768_v37  ;;  %6830 = vmatprep.subr.bf16.mxu0 %v7349_v1 }
 0x476   :  { %v1838_v20 = vpop.f32.mrf.mxu0  ;;  %v2104_v28 = vpop.f32.mrf.mxu1  ;;  %v2187_v42 = vpack.c.bf16 %v2161_v53, %v2159_v43 }
 0x477   :  { %2178 = vst [vmem:[%s8397_s5 + $0x58] sm:$0xff] %v2162_v49  ;;  %v2163_v3 = vmax.f32 %v2147_v55, 0.0  ;;  %v2148_v24 = vadd.f32 %v8776_v32, %v2120_v18  ;;  %v2121_v27 = vadd.f32 %v2102_v29, %v1837_v51  ;;  %v1839_v26 = vadd.f32 %v1838_v20, %v8770_v60 }
 0x478   :  { %6831 = vmatpush3.bf16.msra.mxu0 %v7350_v4  ;;  %v2188_v0 = vpack.c.bf16 %v2162_v49, %v2160_v63 }
 0x479   :  { %2179 = vst [vmem:[%s8397_s5 + $0x60] sm:$0xff] %v2163_v3  ;;  %v2164_v37 = vmax.f32 %v2148_v24, 0.0  ;;  %v2149_v7 = vadd.f32 %v8773_v44, %v2121_v27  ;;  %v2122_v8 = vadd.f32 %v2104_v28, %v1839_v26  ;;  %6832 = vmatprep.subr.bf16.mxu0 %v7351_v19  ;;  %v7355_v44 = vld [vmem:[%s8981_s10 + $0x48] sm:$0xff]  }
 0x47a   :  { %2367 = vmatprep.mubr.bf16.mxu0 %v2188_v0 }
 0x47b   :  { %2180 = vst [vmem:[%s8397_s5 + $0x68] sm:$0xff] %v2164_v37  ;;  %v2165_v60 = vmax.f32 %v2149_v7, 0.0  ;;  %v2150_v38 = vadd.f32 %v8776_v32, %v2122_v8  ;;  %2368 = vmatmul.mubr.bf16.gmra.mxu0 %v2187_v42  ;;  %v7358_v32 = vld [vmem:[%s8981_s10] sm:$0xff]  }
 0x47c   :  { %6833 = vmatpush3.bf16.msra.mxu0 %v7352_v22 }
 0x47d   :  { %2181 = vst [vmem:[%s8397_s5 + $0x70] sm:$0xff] %v2165_v60  ;;  %v2166_v30 = vmax.f32 %v2150_v38, 0.0  ;;  %6834 = vmatprep.subr.bf16.mxu0 %v7353_v11  ;;  %v2189_v6 = vpack.c.bf16 %v2165_v60, %v2163_v3 }
 0x47f   :  { %2182 = vst [vmem:[%s8397_s5 + $0x78] sm:$0xff] %v2166_v30  ;;  %v2190_v35 = vpack.c.bf16 %v2166_v30, %v2164_v37  ;;  %s8983_s5 = sld [smem:[#allocation45_spill]] }
 0x480   :  { %6835 = vmatpush3.bf16.msra.mxu0 %v7354_v62 }
 0x481   :  { %2375 = vmatprep.mubr.bf16.mxu0 %v2190_v35  ;;  %6836 = vmatprep.subr.bf16.mxu0 %v7355_v44 }
 0x483   :  { %2376 = vmatmul.mubr.bf16.gmra.mxu0 %v2189_v6 }
 0x484   :  { %6837 = vmatpush3.bf16.msra.mxu0 %v7356_v45  ;;  %2544 = vmatprep.mubr.bf16.mxu0 %v8788_v21 }
 0x485   :  { %6838 = vmatprep.subr.bf16.mxu0 %v7357_v48 }
 0x488   :  { %6839 = vmatpush3.bf16.msra.mxu0 %v7358_v32 }
 0x48b   :  { %2545 = vmatmul.mubr.bf16.vlgmr.msra.gmra.mxu0 %v8791_v25 }
 0x48c   :  { %2552 = vmatprep.mubr.bf16.mxu0 %v8810_v23 }
 0x493   :  { %2553 = vmatmul.mubr.bf16.gmra.mxu0 %v8812_v59 }
 0x494   :  { %2560 = vmatprep.mubr.bf16.mxu0 %v2188_v0 }
 0x49b   :  { %2561 = vmatmul.mubr.bf16.gmra.mxu0 %v2187_v42 }
 0x49c   :  { %2568 = vmatprep.mubr.bf16.mxu0 %v2190_v35 }
 0x4a3   :  { %2569 = vmatmul.mubr.bf16.gmra.mxu0 %v2189_v6 }
 0x4a4   :  { %3154 = vmatprep.mubr.bf16.mxu0 %v8251_v33 }
 0x52a   :  { %v6800_v52 = vpop.f32.mrf.mxu0 }
 0x52c   :  { %v6801_v21 = vpop.f32.mrf.mxu0 }
 0x52d   :  { %v6802_v56 = vadd.f32 %v6801_v21, %v6800_v52  ;;  %v7361_v52 = vld [vmem:[%s8983_s5] sm:$0xff]   ;;  %v7362_v21 = vld [vmem:[%s8983_s5 + $0x8] sm:$0xff]  }
 0x52e   :  { %v6803_v58 = vpop.f32.mrf.mxu0 }
 0x530   :  { %v6804_v39 = vpop.f32.mrf.mxu0 }
 0x531   :  { %v6805_v47 = vadd.f32 %v6804_v39, %v6803_v58  ;;  %v7391_v58 = vld [vmem:[#allocation6 + $0x70] ss:$8 sps:$4 sm:$0xff]   ;;  %v7393_v39 = vld [vmem:[#allocation6 + $0x74] ss:$8 sps:$4 sm:$0xff]  }
 0x532   :  { %3122 = vmatprep.subr.bf16.mxu0 %v7393_v39  ;;  %v7435_v39 = vld [vmem:[#allocation6 + $0x114] ss:$8 sps:$4 sm:$0xff]  }
 0x533   :  { %v6806_v25 = vpop.f32.mrf.mxu0  ;;  %3123 = vmatpush1.bf16.msra.mxu0 %v7391_v58  ;;  %v7430_v58 = vld [vmem:[#allocation6 + $0x120] ss:$8 sps:$4 sm:$0xff]  }
 0x535   :  { %v6807_v61 = vpop.f32.mrf.mxu0 }
 0x536   :  { %v6808_v35 = vadd.f32 %v6807_v61, %v6806_v25  ;;  %v7394_v25 = vld [vmem:[#allocation6 + $0x60] ss:$8 sps:$4 sm:$0xff]   ;;  %v7399_v61 = vld [vmem:[#allocation6 + $0x54] ss:$8 sps:$4 sm:$0xff]  }
 0x537   :  { %v6809_v2 = vpop.f32.mrf.mxu0 }
 0x539   :  { %v6810_v43 = vpop.f32.mrf.mxu0 }
 0x53a   :  { %v6811_v38 = vadd.f32 %v6810_v43, %v6809_v2  ;;  %v7397_v2 = vld [vmem:[#allocation6 + $0x50] ss:$8 sps:$4 sm:$0xff]   ;;  %v7405_v43 = vld [vmem:[#allocation6 + $0x44] ss:$8 sps:$4 sm:$0xff]  }
 0x53b   :  { %v6812_v5 = vpop.f32.mrf.mxu0 }
 0x53d   :  { %v6813_v46 = vpop.f32.mrf.mxu0 }
 0x53e   :  { %v6814_v7 = vadd.f32 %v6813_v46, %v6812_v5  ;;  %v7403_v5 = vld [vmem:[#allocation6 + $0x40] ss:$8 sps:$4 sm:$0xff]   ;;  %v7411_v46 = vld [vmem:[#allocation6 + $0x34] ss:$8 sps:$4 sm:$0xff]  }
 0x53f   :  { %v6815_v41 = vpop.f32.mrf.mxu0 }
 0x541   :  { %v6816_v34 = vpop.f32.mrf.mxu0 }
 0x542   :  { %v6817_v27 = vadd.f32 %v6816_v34, %v6815_v41  ;;  %v7409_v41 = vld [vmem:[#allocation6 + $0x30] ss:$8 sps:$4 sm:$0xff]   ;;  %v7417_v34 = vld [vmem:[#allocation6 + $0x24] ss:$8 sps:$4 sm:$0xff]  }
 0x543   :  { %v6818_v54 = vpop.f32.mrf.mxu0 }
 0x545   :  { %v6819_v23 = vpop.f32.mrf.mxu0 }
 0x546   :  { %v6820_v28 = vadd.f32 %v6819_v23, %v6818_v54  ;;  %v7415_v54 = vld [vmem:[#allocation6 + $0x20] ss:$8 sps:$4 sm:$0xff]  }
 0x547   :  { %v6821_v59 = vpop.f32.mrf.mxu0 }
 0x549   :  { %v6822_v40 = vpop.f32.mrf.mxu0 }
 0x54a   :  { %v6823_v0 = vadd.f32 %v6822_v40, %v6821_v59 }
 0x54b   :  { %v6840_v63 = vpop.f32.mrf.mxu0 }
 0x54d   :  { %v6841_v31 = vpop.f32.mrf.mxu0 }
 0x54e   :  { %v6842_v57 = vadd.f32 %v6841_v31, %v6840_v63 }
 0x54f   :  { %v6843_v50 = vpop.f32.mrf.mxu0 }
 0x550   :  { %v2577_v53 = vmax.f32 %v6802_v56, %v6842_v57  ;;  %v8858_v56 = vld [vmem:[#allocation12] sm:$0xff]  }
 0x551   :  { %v6844_v1 = vpop.f32.mrf.mxu0 }
 0x552   :  { %v6845_v16 = vadd.f32 %v6844_v1, %v6843_v50 }
 0x553   :  { %v6846_v9 = vpop.f32.mrf.mxu0 }
 0x554   :  { %v2578_v12 = vmax.f32 %v6805_v47, %v6845_v16  ;;  %v7396_v47 = vld [vmem:[#allocation6 + $0x64] ss:$8 sps:$4 sm:$0xff]  }
 0x555   :  { %v6847_v14 = vpop.f32.mrf.mxu0  ;;  %3124 = vmatprep.subr.bf16.mxu0 %v7396_v47  ;;  %v7433_v47 = vld [vmem:[#allocation6 + $0x110] ss:$8 sps:$4 sm:$0xff]  }
 0x556   :  { %v2585_v15 = vpack.c.bf16 %v2578_v12, %v2577_v53  ;;  %v6848_v62 = vadd.f32 %v6847_v14, %v6846_v9  ;;  %3125 = vmatpush1.bf16.msra.mxu0 %v7394_v25  ;;  %v7438_v25 = vld [vmem:[#allocation6 + $0x104] ss:$8 sps:$4 sm:$0xff]  }
 0x557   :  { %v6849_v17 = vpop.f32.mrf.mxu0  ;;  %3126 = vmatprep.subr.bf16.mxu0 %v7399_v61  ;;  %v7436_v61 = vld [vmem:[#allocation6 + $0x100] ss:$8 sps:$4 sm:$0xff]  }
 0x558   :  { %v2579_v48 = vmax.f32 %v6808_v35, %v6848_v62  ;;  %v7414_v62 = vld [vmem:[#allocation6 + $0x154] ss:$8 sps:$4 sm:$0xff]   ;;  %v7418_v35 = vld [vmem:[#allocation6 + $0x140] ss:$8 sps:$4 sm:$0xff]  }
 0x559   :  { %v6850_v29 = vpop.f32.mrf.mxu0 }
 0x55a   :  { %v6851_v8 = vadd.f32 %v6850_v29, %v6849_v17  ;;  %3127 = vmatpush1.bf16.msra.mxu0 %v7397_v2  ;;  %v8866_v17 = vld [vmem:[#allocation12 + $0x8] sm:$0xff]   ;;  %v8868_v29 = vld [vmem:[#allocation13] sm:$0xff]  }
 0x55b   :  { %v6852_v4 = vpop.f32.mrf.mxu0  ;;  %3128 = vmatprep.subr.bf16.mxu0 %v7405_v43  ;;  %v7441_v2 = vld [vmem:[#allocation9 + $0x174] ss:$8 sps:$4 sm:$0xff]  }
 0x55c   :  { %v2580_v45 = vmax.f32 %v6811_v38, %v6851_v8  ;;  %v7388_v8 = vld [vmem:[#allocation6 + $0x80] ss:$8 sps:$4 sm:$0xff]  }
 0x55d   :  { %v6853_v49 = vpop.f32.mrf.mxu0  ;;  %v7406_v38 = vld [vmem:[#allocation6 + $0x160] ss:$8 sps:$4 sm:$0xff]  }
 0x55e   :  { %v6854_v22 = vadd.f32 %v6853_v49, %v6852_v4  ;;  %v2586_v32 = vpack.c.bf16 %v2580_v45, %v2579_v48  ;;  %3129 = vmatpush1.bf16.msra.mxu0 %v7403_v5  ;;  %v7369_v4 = vld [vmem:[#allocation6 + $0xf4] ss:$8 sps:$4 sm:$0xff]   ;;  %v7421_v48 = vld [vmem:[#allocation6 + $0x10] ss:$8 sps:$4 sm:$0xff]  }
 0x55f   :  { %v6855_v55 = vpop.f32.mrf.mxu0  ;;  %3130 = vmatprep.subr.bf16.mxu0 %v7411_v46  ;;  %v8876_v49 = vld [vmem:[#allocation13 + $0x8] sm:$0xff]  }
 0x560   :  { %v2581_v30 = vmax.f32 %v6814_v7, %v6854_v22  ;;  %v7387_v22 = vld [vmem:[#allocation6 + $0x94] ss:$8 sps:$4 sm:$0xff]   ;;  %v7390_v7 = vld [vmem:[#allocation6 + $0x84] ss:$8 sps:$4 sm:$0xff]  }
 0x561   :  { %v6856_v18 = vpop.f32.mrf.mxu0  ;;  %v7423_v45 = vld [vmem:[#allocation6 + $0x14] ss:$8 sps:$4 sm:$0xff]  }
 0x562   :  { %v6857_v3 = vadd.f32 %v6856_v18, %v6855_v55  ;;  %3131 = vmatpush1.bf16.msra.mxu0 %v7409_v41  ;;  %v7367_v55 = vld [vmem:[#allocation6 + $0xf0] ss:$8 sps:$4 sm:$0xff]   ;;  %v7372_v18 = vld [vmem:[#allocation6 + $0xe4] ss:$8 sps:$4 sm:$0xff]  }
 0x563   :  { %v6858_v51 = vpop.f32.mrf.mxu0  ;;  %3132 = vmatprep.subr.bf16.mxu0 %v7417_v34 }
 0x564   :  { %v2582_v42 = vmax.f32 %v6817_v27, %v6857_v3  ;;  %v7378_v3 = vld [vmem:[#allocation6 + $0xc4] ss:$8 sps:$4 sm:$0xff]   ;;  %v7381_v27 = vld [vmem:[#allocation6 + $0xb4] ss:$8 sps:$4 sm:$0xff]  }
 0x565   :  { %v6859_v19 = vpop.f32.mrf.mxu0 }
 0x566   :  { %v6860_v24 = vadd.f32 %v6859_v19, %v6858_v51  ;;  %v2587_v6 = vpack.c.bf16 %v2582_v42, %v2581_v30  ;;  %3133 = vmatpush1.bf16.msra.mxu0 %v7415_v54  ;;  %v7370_v51 = vld [vmem:[#allocation6 + $0xe0] ss:$8 sps:$4 sm:$0xff]   ;;  %v7375_v19 = vld [vmem:[#allocation6 + $0xd4] ss:$8 sps:$4 sm:$0xff]   ;;  %v7412_v30 = vld [vmem:[#allocation6 + $0x150] ss:$8 sps:$4 sm:$0xff]  }
 0x567   :  { %v6861_v20 = vpop.f32.mrf.mxu0  ;;  %v7402_v42 = vld [vmem:[#allocation6 + $0x174] ss:$8 sps:$4 sm:$0xff]   ;;  %3134 = vmatprep.subr.bf16.mxu0 %v7423_v45 }
 0x568   :  { %v2583_v11 = vmax.f32 %v6820_v28, %v6860_v24  ;;  %v7376_v24 = vld [vmem:[#allocation6 + $0xc0] ss:$8 sps:$4 sm:$0xff]   ;;  %v7384_v28 = vld [vmem:[#allocation6 + $0xa4] ss:$8 sps:$4 sm:$0xff]  }
 0x569   :  { %v6862_v26 = vpop.f32.mrf.mxu0 }
 0x56a   :  { %v6863_v37 = vadd.f32 %v6862_v26, %v6861_v20  ;;  %v7373_v20 = vld [vmem:[#allocation6 + $0xd0] ss:$8 sps:$4 sm:$0xff]   ;;  %3135 = vmatpush1.bf16.msra.mxu0 %v7421_v48 }
 0x56b   :  { %v7379_v26 = vld [vmem:[#allocation6 + $0xb0] ss:$8 sps:$4 sm:$0xff]  }
 0x56c   :  { %v2584_v60 = vmax.f32 %v6823_v0, %v6863_v37  ;;  %v7382_v0 = vld [vmem:[#allocation6 + $0xa0] ss:$8 sps:$4 sm:$0xff]   ;;  %v7385_v37 = vld [vmem:[#allocation6 + $0x90] ss:$8 sps:$4 sm:$0xff]  }
 0x56e   :  { %v2588_v44 = vpack.c.bf16 %v2584_v60, %v2583_v11  ;;  %v7400_v11 = vld [vmem:[#allocation6 + $0x170] ss:$8 sps:$4 sm:$0xff]   ;;  %v7408_v60 = vld [vmem:[#allocation6 + $0x164] ss:$8 sps:$4 sm:$0xff]  }
 0x570   :  { %6982 = vmatprep.subr.bf16.mxu1 %v2588_v44 }
 0x571   :  { %6983 = vmatpush3.bf16.msra.mxu1 %v2588_v44 }
 0x572   :  { %6984 = vmatprep.subr.bf16.mxu1 %v2587_v6 }
 0x575   :  { %6985 = vmatpush3.bf16.msra.mxu1 %v2587_v6 }
 0x576   :  { %6986 = vmatprep.subr.bf16.mxu1 %v2586_v32 }
 0x579   :  { %6987 = vmatpush3.bf16.msra.mxu1 %v2586_v32 }
 0x57a   :  { %6988 = vmatprep.subr.bf16.mxu1 %v2585_v15 }
 0x57d   :  { %6989 = vmatpush3.bf16.msra.mxu1 %v2585_v15 }
 0x57e   :  { %6994 = vmatprep.subr.bf16.mxu1 %v2588_v44 }
 0x580   :  { %6991 = vmatmul.mubr.msk.bf16.vlgmr.msra.gmra.mxu1 %vm388_vm0, %v7360_v36  ;;  %v7429_v36 = vld [vmem:[#allocation6 + $0x4] ss:$8 sps:$4 sm:$0xff]  }
 0x581   :  { %6995 = vmatpush3.bf16.msra.mxu1 %v2588_v44  ;;  %7002 = vmatprep.mubr.msk.bf16.mxu1 %vm388_vm0, %v7361_v52  ;;  %v7420_v44 = vld [vmem:[#allocation6 + $0x144] ss:$8 sps:$4 sm:$0xff]  }
 0x582   :  { %6996 = vmatprep.subr.bf16.mxu1 %v2587_v6  ;;  %v7432_v52 = vld [vmem:[#allocation6 + $0x124] ss:$8 sps:$4 sm:$0xff]   ;;  %3136 = vmatprep.subr.bf16.mxu0 %v7429_v36 }
 0x585   :  { %6997 = vmatpush3.bf16.msra.mxu1 %v2587_v6  ;;  %v7426_v6 = vld [vmem:[#allocation6 + $0x134] ss:$8 sps:$4 sm:$0xff]  }
 0x586   :  { %6998 = vmatprep.subr.bf16.mxu1 %v2586_v32 }
 0x589   :  { %6999 = vmatpush3.bf16.msra.mxu1 %v2586_v32  ;;  %v7424_v32 = vld [vmem:[#allocation6 + $0x130] ss:$8 sps:$4 sm:$0xff]  }
 0x58a   :  { %7000 = vmatprep.subr.bf16.mxu1 %v2585_v15 }
 0x58d   :  { %7001 = vmatpush3.bf16.msra.mxu1 %v2585_v15 }
 0x590   :  { %7003 = vmatmul.mubr.msk.bf16.vlgmr.msra.gmra.mxu1 %vm388_vm0, %v7362_v21  ;;  %v7427_v21 = vld [vmem:[#allocation6] ss:$8 sps:$4 sm:$0xff]  }
 0x591   :  { %7010 = vmatprep.mubr.msk.bf16.mxu1 %vm2751_vm1, %v8858_v56  ;;  %3137 = vmatpush1.bf16.msra.mxu0 %v7427_v21 }
 0x640   :  { %v6992_v23 = vpop.f32.mrf.mxu1 }
 0x642   :  { %v2643_v59 = vpop.f32.mrf.mxu1 }
 0x644   :  { %v6993_v40 = vpop.f32.mrf.mxu1 }
 0x646   :  { %v2646_v63 = vpop.f32.mrf.mxu1 }
 0x650   :  { %v7004_v31 = vpop.f32.mrf.mxu1 }
 0x651   :  { %v2729_v1 = vmax.f32 %v6992_v23, %v7004_v31 }
 0x652   :  { %v2712_v50 = vpop.f32.mrf.mxu1 }
 0x653   :  { %v2727_v53 = vmax.f32 %v2643_v59, %v2712_v50 }
 0x654   :  { %v7005_v57 = vpop.f32.mrf.mxu1 }
 0x655   :  { %v2730_v16 = vmax.f32 %v6993_v40, %v7005_v57  ;;  %v7444_v57 = vld [vmem:[#allocation9 + $0x164] ss:$8 sps:$4 sm:$0xff]  }
 0x656   :  { %v2715_v9 = vpop.f32.mrf.mxu1 }
 0x657   :  { %v8862_v12 = vpack.c.bf16 %v2730_v16, %v2729_v1  ;;  %v2728_v14 = vmax.f32 %v2646_v63, %v2715_v9  ;;  %v7439_v63 = vld [vmem:[#allocation9 + $0x170] ss:$8 sps:$4 sm:$0xff]   ;;  %v7442_v1 = vld [vmem:[#allocation9 + $0x160] ss:$8 sps:$4 sm:$0xff]   ;;  %v7447_v16 = vld [vmem:[#allocation9 + $0x154] ss:$8 sps:$4 sm:$0xff]  }
 0x658   :  { %v7445_v9 = vld [vmem:[#allocation9 + $0x150] ss:$8 sps:$4 sm:$0xff]  }
 0x659   :  { %v2739_v15 = vpack.c.bf16 %v2728_v14, %v2727_v53  ;;  %7006 = vmatprep.subr.bf16.mxu1 %v8862_v12  ;;  %v7448_v14 = vld [vmem:[#allocation9 + $0x140] ss:$8 sps:$4 sm:$0xff]  }
 0x65a   :  { %7007 = vmatpush3.bf16.msra.mxu1 %v8862_v12 }
 0x65b   :  { %7008 = vmatprep.subr.bf16.mxu1 %v2739_v15 }
 0x65e   :  { %7009 = vmatpush3.bf16.msra.mxu1 %v2739_v15 }
 0x65f   :  { %7014 = vmatprep.subr.bf16.mxu1 %v8862_v12 }
 0x661   :  { %7011 = vmatmul.mubr.msk.bf16.vlgmr.msra.gmra.mxu1 %vm2751_vm1, %v8866_v17 }
 0x662   :  { %7015 = vmatpush3.bf16.msra.mxu1 %v8862_v12  ;;  %7018 = vmatprep.mubr.msk.bf16.mxu1 %vm2751_vm1, %v8868_v29 }
 0x663   :  { %7016 = vmatprep.subr.bf16.mxu1 %v2739_v15 }
 0x666   :  { %7017 = vmatpush3.bf16.msra.mxu1 %v2739_v15 }
 0x667   :  { %2989 = vmatprep.subr.bf16.mxu1 %v7369_v4  ;;  %v7451_v4 = vld [vmem:[#allocation9 + $0x130] ss:$8 sps:$4 sm:$0xff]  }
 0x669   :  { %7019 = vmatmul.mubr.msk.bf16.vlgmr.msra.gmra.mxu1 %vm2751_vm1, %v8876_v49 }
 0x66a   :  { %2990 = vmatpush1.bf16.msra.mxu1 %v7367_v55  ;;  %3021 = vmatprep.mubr.bf16.mxu1 %v8251_v33  ;;  %v7456_v55 = vld [vmem:[#allocation9 + $0x124] ss:$8 sps:$4 sm:$0xff]  }
 0x66b   :  { %2991 = vmatprep.subr.bf16.mxu1 %v7372_v18  ;;  %v7454_v18 = vld [vmem:[#allocation9 + $0x120] ss:$8 sps:$4 sm:$0xff]  }
 0x66e   :  { %2992 = vmatpush1.bf16.msra.mxu1 %v7370_v51  ;;  %v7459_v51 = vld [vmem:[#allocation9 + $0x114] ss:$8 sps:$4 sm:$0xff]  }
 0x66f   :  { %2993 = vmatprep.subr.bf16.mxu1 %v7375_v19  ;;  %v7457_v19 = vld [vmem:[#allocation9 + $0x110] ss:$8 sps:$4 sm:$0xff]  }
 0x672   :  { %2994 = vmatpush1.bf16.msra.mxu1 %v7373_v20  ;;  %v7462_v20 = vld [vmem:[#allocation9 + $0x104] ss:$8 sps:$4 sm:$0xff]  }
 0x673   :  { %2995 = vmatprep.subr.bf16.mxu1 %v7378_v3  ;;  %v7460_v3 = vld [vmem:[#allocation9 + $0x100] ss:$8 sps:$4 sm:$0xff]  }
 0x676   :  { %2996 = vmatpush1.bf16.msra.mxu1 %v7376_v24  ;;  %v7465_v24 = vld [vmem:[#allocation9 + $0x1f4] ss:$8 sps:$4 sm:$0xff]  }
 0x677   :  { %2997 = vmatprep.subr.bf16.mxu1 %v7381_v27  ;;  %v7463_v27 = vld [vmem:[#allocation9 + $0x1f0] ss:$8 sps:$4 sm:$0xff]  }
 0x67a   :  { %2998 = vmatpush1.bf16.msra.mxu1 %v7379_v26  ;;  %v7468_v26 = vld [vmem:[#allocation9 + $0x1e4] ss:$8 sps:$4 sm:$0xff]  }
 0x67b   :  { %2999 = vmatprep.subr.bf16.mxu1 %v7384_v28  ;;  %v7466_v28 = vld [vmem:[#allocation9 + $0x1e0] ss:$8 sps:$4 sm:$0xff]  }
 0x67e   :  { %3000 = vmatpush1.bf16.msra.mxu1 %v7382_v0  ;;  %v7471_v0 = vld [vmem:[#allocation9 + $0x1d4] ss:$8 sps:$4 sm:$0xff]  }
 0x67f   :  { %3001 = vmatprep.subr.bf16.mxu1 %v7387_v22  ;;  %v7469_v22 = vld [vmem:[#allocation9 + $0x1d0] ss:$8 sps:$4 sm:$0xff]  }
 0x682   :  { %3002 = vmatpush1.bf16.msra.mxu1 %v7385_v37  ;;  %v7474_v37 = vld [vmem:[#allocation9 + $0x1c4] ss:$8 sps:$4 sm:$0xff]  }
 0x683   :  { %3003 = vmatprep.subr.bf16.mxu1 %v7390_v7  ;;  %v7472_v7 = vld [vmem:[#allocation9 + $0x1c0] ss:$8 sps:$4 sm:$0xff]  }
 0x686   :  { %3004 = vmatpush1.bf16.msra.mxu1 %v7388_v8  ;;  %v7477_v8 = vld [vmem:[#allocation9 + $0x1b4] ss:$8 sps:$4 sm:$0xff]  }
 0x687   :  { %3272 = vmatprep.subr.bf16.mxu1 %v7402_v42  ;;  %v7475_v42 = vld [vmem:[#allocation9 + $0x1b0] ss:$8 sps:$4 sm:$0xff]  }
 0x689   :  { %3022 = vmatmul.mubr.bf16.vlgmr.msra.gmra.mxu1 %v2739_v15  ;;  %v7453_v15 = vld [vmem:[#allocation9 + $0x134] ss:$8 sps:$4 sm:$0xff]  }
 0x68a   :  { %3031 = vmatprep.mubr.bf16.mxu1 %v8251_v33  ;;  %3273 = vmatpush1.bf16.msra.mxu1 %v7400_v11  ;;  %v7480_v11 = vld [vmem:[#allocation9 + $0x1a4] ss:$8 sps:$4 sm:$0xff]  }
 0x68b   :  { %3274 = vmatprep.subr.bf16.mxu1 %v7408_v60  ;;  %v7478_v60 = vld [vmem:[#allocation9 + $0x1a0] ss:$8 sps:$4 sm:$0xff]  }
 0x68e   :  { %3275 = vmatpush1.bf16.msra.mxu1 %v7406_v38  ;;  %v7483_v38 = vld [vmem:[#allocation9 + $0x194] ss:$8 sps:$4 sm:$0xff]  }
 0x68f   :  { %3276 = vmatprep.subr.bf16.mxu1 %v7414_v62  ;;  %v7481_v62 = vld [vmem:[#allocation9 + $0x190] ss:$8 sps:$4 sm:$0xff]  }
 0x691   :  { %3032 = vmatmul.mubr.bf16.gmra.mxu1 %v8862_v12  ;;  %v7450_v12 = vld [vmem:[#allocation9 + $0x144] ss:$8 sps:$4 sm:$0xff]  }
 0x692   :  { %3277 = vmatpush1.bf16.msra.mxu1 %v7412_v30  ;;  %3304 = vmatprep.mubr.bf16.mxu1 %v8251_v33  ;;  %v7486_v30 = vld [vmem:[#allocation9 + $0x184] ss:$8 sps:$4 sm:$0xff]  }
 0x693   :  { %3278 = vmatprep.subr.bf16.mxu1 %v7420_v44  ;;  %v7484_v44 = vld [vmem:[#allocation9 + $0x180] ss:$8 sps:$4 sm:$0xff]  }
 0x696   :  { %3279 = vmatpush1.bf16.msra.mxu1 %v7418_v35  ;;  %v7504_v35 = vld [vmem:[#allocation9 + $0x274] ss:$8 sps:$4 sm:$0xff]  }
 0x697   :  { %3280 = vmatprep.subr.bf16.mxu1 %v7426_v6 }
 0x69a   :  { %3281 = vmatpush1.bf16.msra.mxu1 %v7424_v32 }
 0x69b   :  { %3282 = vmatprep.subr.bf16.mxu1 %v7432_v52 }
 0x69e   :  { %3283 = vmatpush1.bf16.msra.mxu1 %v7430_v58 }
 0x69f   :  { %3284 = vmatprep.subr.bf16.mxu1 %v7435_v39 }
 0x6a2   :  { %3285 = vmatpush1.bf16.msra.mxu1 %v7433_v47 }
 0x6a3   :  { %3286 = vmatprep.subr.bf16.mxu1 %v7438_v25 }
 0x6a6   :  { %3287 = vmatpush1.bf16.msra.mxu1 %v7436_v61 }
 0x6a7   :  { %3704 = vmatprep.subr.bf16.mxu1 %v7441_v2 }
 0x721   :  { %v7012_v43 = vpop.f32.mrf.mxu1 }
 0x723   :  { %v2792_v5 = vpop.f32.mrf.mxu1 }
 0x725   :  { %v7013_v46 = vpop.f32.mrf.mxu1 }
 0x726   :  { %v2808_v31 = vpack.c.bf16 %v7013_v46, %v7012_v43  ;;  %v3333_v46 = vld [vmem:[#allocation7] sm:$0x3] }
 0x727   :  { %v2795_v41 = vpop.f32.mrf.mxu1 }
 0x728   :  { %v2807_v34 = vpack.c.bf16 %v2795_v41, %v2792_v5 }
 0x729   :  { %v7020_v54 = vpop.f32.mrf.mxu1 }
 0x72a   :  { %3155 = vmatmul.mubr.bf16.vlgmr.msra.gmra.mxu0 %v2807_v34 }
 0x72b   :  { %v2859_v23 = vpop.f32.mrf.mxu1  ;;  %3164 = vmatprep.mubr.bf16.mxu0 %v8251_v33 }
 0x72d   :  { %v7021_v59 = vpop.f32.mrf.mxu1 }
 0x72e   :  { %v2875_v53 = vpack.c.bf16 %v7021_v59, %v7020_v54 }
 0x72f   :  { %v2862_v40 = vpop.f32.mrf.mxu1 }
 0x730   :  { %v2874_v50 = vpack.c.bf16 %v2862_v40, %v2859_v23  ;;  %v3342_v40 = vrot.slane %v3333_v46, %v8555_v13 }
 0x732   :  { %3165 = vmatmul.mubr.bf16.gmra.mxu0 %v2808_v31  ;;  %3305 = vmatmul.mubr.bf16.vlgmr.msra.gmra.mxu1 %v2874_v50  ;;  %v3338_v31 = vrot.slane %v3333_v46, %v8552_v10  ;;  %v7534_v46 = vld [vmem:[#allocation9 + $0x224] ss:$8 sps:$4 sm:$0xff]  }
 0x733   :  { %3314 = vmatprep.mubr.bf16.mxu1 %v8251_v33  ;;  %3705 = vmatpush1.bf16.msra.mxu1 %v7439_v63 }
 0x734   :  { %3706 = vmatprep.subr.bf16.mxu1 %v7444_v57  ;;  %3397 = vmatprep.mubr.bf16.mxu0 %v8251_v33 }
 0x737   :  { %3707 = vmatpush1.bf16.msra.mxu1 %v7442_v1 }
 0x738   :  { %3708 = vmatprep.subr.bf16.mxu1 %v7447_v16 }
 0x73a   :  { %3315 = vmatmul.mubr.bf16.gmra.mxu1 %v2875_v53 }
 0x73b   :  { %3709 = vmatpush1.bf16.msra.mxu1 %v7445_v9 }
 0x73c   :  { %3710 = vmatprep.subr.bf16.mxu1 %v7450_v12 }
 0x73f   :  { %3711 = vmatpush1.bf16.msra.mxu1 %v7448_v14 }
 0x740   :  { %3712 = vmatprep.subr.bf16.mxu1 %v7453_v15 }
 0x743   :  { %3713 = vmatpush1.bf16.msra.mxu1 %v7451_v4 }
 0x744   :  { %3714 = vmatprep.subr.bf16.mxu1 %v7456_v55 }
 0x747   :  { %3715 = vmatpush1.bf16.msra.mxu1 %v7454_v18 }
 0x748   :  { %3716 = vmatprep.subr.bf16.mxu1 %v7459_v51 }
 0x749   :  { %v3023_v45 = vpop.f32.mrf.mxu1 }
 0x74b   :  { %3717 = vmatpush1.bf16.msra.mxu1 %v7457_v19  ;;  %v3025_v6 = vpop.f32.mrf.mxu1 }
 0x74c   :  { %3718 = vmatprep.subr.bf16.mxu1 %v7462_v20 }
 0x74d   :  { %v3027_v48 = vpop.f32.mrf.mxu1 }
 0x74f   :  { %3719 = vmatpush1.bf16.msra.mxu1 %v7460_v3  ;;  %v3029_v32 = vpop.f32.mrf.mxu1 }
 0x750   :  { %3720 = vmatprep.subr.bf16.mxu1 %v7465_v24 }
 0x751   :  { %v3033_v36 = vpop.f32.mrf.mxu1 }
 0x753   :  { %3721 = vmatpush2.bf16.msra.mxu1 %v7463_v27  ;;  %v3035_v52 = vpop.f32.mrf.mxu1 }
 0x754   :  { %3722 = vmatprep.subr.bf16.mxu1 %v7468_v26 }
 0x755   :  { %v3037_v58 = vpop.f32.mrf.mxu1 }
 0x757   :  { %3723 = vmatpush2.bf16.msra.mxu1 %v7466_v28  ;;  %v3039_v25 = vpop.f32.mrf.mxu1 }
 0x758   :  { %3724 = vmatprep.subr.bf16.mxu1 %v7471_v0 }
 0x75b   :  { %3725 = vmatpush2.bf16.msra.mxu1 %v7469_v22 }
 0x75c   :  { %3726 = vmatprep.subr.bf16.mxu1 %v7474_v37 }
 0x75f   :  { %3727 = vmatpush2.bf16.msra.mxu1 %v7472_v7 }
 0x760   :  { %3728 = vmatprep.subr.bf16.mxu1 %v7477_v8 }
 0x763   :  { %3729 = vmatpush2.bf16.msra.mxu1 %v7475_v42 }
 0x764   :  { %3730 = vmatprep.subr.bf16.mxu1 %v7480_v11  ;;  %v7502_v11 = vld [vmem:[#allocation9 + $0x270] ss:$8 sps:$4 sm:$0xff]  }
 0x767   :  { %3731 = vmatpush2.bf16.msra.mxu1 %v7478_v60 }
 0x768   :  { %3732 = vmatprep.subr.bf16.mxu1 %v7483_v38 }
 0x76b   :  { %3733 = vmatpush2.bf16.msra.mxu1 %v7481_v62  ;;  %v7510_v62 = vld [vmem:[#allocation9 + $0x264] ss:$8 sps:$4 sm:$0xff]  }
 0x76c   :  { %3734 = vmatprep.subr.bf16.mxu1 %v7486_v30 }
 0x76f   :  { %3735 = vmatpush2.bf16.msra.mxu1 %v7484_v44 }
 0x770   :  { %4163 = vmatprep.subr.bf16.mxu1 %v7504_v35 }
 0x7ea   :  { %v3156_v21 = vpop.f32.mrf.mxu0 }
 0x7eb   :  { %v3157_v41 = vadd.f32 %v3156_v21, %v3023_v45 }
 0x7ec   :  { %v3158_v39 = vpop.f32.mrf.mxu0 }
 0x7ed   :  { %v3159_v5 = vadd.f32 %v3158_v39, %v3025_v6 }
 0x7ee   :  { %v3160_v47 = vpop.f32.mrf.mxu0 }
 0x7ef   :  { %v3161_v23 = vadd.f32 %v3160_v47, %v3027_v48  ;;  %v7508_v48 = vld [vmem:[#allocation9 + $0x260] ss:$8 sps:$4 sm:$0xff]   ;;  %v7514_v47 = vld [vmem:[#allocation9 + $0x250] ss:$8 sps:$4 sm:$0xff]  }
 0x7f0   :  { %v3162_v61 = vpop.f32.mrf.mxu0 }
 0x7f1   :  { %v3163_v57 = vadd.f32 %v3162_v61, %v3029_v32  ;;  %v7522_v61 = vld [vmem:[#allocation9 + $0x244] ss:$8 sps:$4 sm:$0xff]  }
 0x7f2   :  { %v3166_v2 = vpop.f32.mrf.mxu0  ;;  %v3306_v43 = vpop.f32.mrf.mxu1 }
 0x7f3   :  { %v3325_v63 = vadd.f32 %v3306_v43, %v3157_v41  ;;  %v3167_v51 = vadd.f32 %v3166_v2, %v3033_v36  ;;  %v7516_v36 = vld [vmem:[#allocation9 + $0x254] ss:$8 sps:$4 sm:$0xff]   ;;  %v7520_v2 = vld [vmem:[#allocation9 + $0x240] ss:$8 sps:$4 sm:$0xff]  }
 0x7f4   :  { %v3168_v34 = vpop.f32.mrf.mxu0  ;;  %v3308_v54 = vpop.f32.mrf.mxu1  ;;  %v7528_v43 = vld [vmem:[#allocation9 + $0x234] ss:$8 sps:$4 sm:$0xff]  }
 0x7f5   :  { %v3326_v59 = vadd.f32 %v3308_v54, %v3159_v5  ;;  %v3345_v15 = vadd.f32 %v3338_v31, %v3325_v63  ;;  %v3169_v55 = vadd.f32 %v3168_v34, %v3035_v52  ;;  %v7526_v5 = vld [vmem:[#allocation9 + $0x230] ss:$8 sps:$4 sm:$0xff]   ;;  %v7489_v41 = vld [vmem:[#allocation9 + $0x74] ss:$8 sps:$4 sm:$0xff]   ;;  %v7532_v34 = vld [vmem:[#allocation9 + $0x220] ss:$8 sps:$4 sm:$0xff]  }
 0x7f6   :  { %v3310_v50 = vpop.f32.mrf.mxu1  ;;  %v3170_v16 = vpop.f32.mrf.mxu0  ;;  %v7487_v54 = vld [vmem:[#allocation9 + $0x70] ss:$8 sps:$4 sm:$0xff]   ;;  %v7498_v63 = vld [vmem:[#allocation9 + $0x44] ss:$8 sps:$4 sm:$0xff]  }
 0x7f7   :  { %v3327_v1 = vadd.f32 %v3310_v50, %v3161_v23  ;;  %v3346_v53 = vadd.f32 %v3342_v40, %v3326_v59  ;;  %v3171_v27 = vadd.f32 %v3170_v16, %v3037_v58  ;;  %v3353_v0 = vmax.f32 %v3345_v15, 0.0  ;;  %v7492_v23 = vld [vmem:[#allocation9 + $0x64] ss:$8 sps:$4 sm:$0xff]   ;;  %v7495_v59 = vld [vmem:[#allocation9 + $0x54] ss:$8 sps:$4 sm:$0xff]  }
 0x7f8   :  { %v3312_v9 = vpop.f32.mrf.mxu1  ;;  %v3172_v20 = vpop.f32.mrf.mxu0  ;;  %v7499_v50 = vld [vmem:[#allocation9 + $0x30] ss:$8 sps:$4 sm:$0xff]   ;;  %v7540_v15 = vld [vmem:[#allocation9 + $0x214] ss:$8 sps:$4 sm:$0xff]  }
 0x7f9   :  { %v3347_v12 = vadd.f32 %v3338_v31, %v3327_v1  ;;  %v3328_v14 = vadd.f32 %v3312_v9, %v3163_v57  ;;  %v3354_v24 = vmax.f32 %v3346_v53, 0.0  ;;  %v3173_v7 = vadd.f32 %v3172_v20, %v3039_v25  ;;  %v7505_v57 = vld [vmem:[#allocation9 + $0x20] ss:$8 sps:$4 sm:$0xff]   ;;  %v7513_v1 = vld [vmem:[#allocation9 + $0x14] ss:$8 sps:$4 sm:$0xff]  }
 0x7fa   :  { %v3316_v4 = vpop.f32.mrf.mxu1  ;;  %v7511_v16 = vld [vmem:[#allocation9 + $0x10] ss:$8 sps:$4 sm:$0xff]   ;;  %v7519_v9 = vld [vmem:[#allocation9 + $0x4] ss:$8 sps:$4 sm:$0xff]   ;;  %v7517_v53 = vld [vmem:[#allocation9] ss:$8 sps:$4 sm:$0xff]  }
 0x7fb   :  { %v3348_v18 = vadd.f32 %v3342_v40, %v3328_v14  ;;  %v3355_v19 = vmax.f32 %v3347_v12, 0.0  ;;  %v3329_v22 = vadd.f32 %v3316_v4, %v3167_v51  ;;  %v7523_v12 = vld [vmem:[#allocation9 + $0xf0] ss:$8 sps:$4 sm:$0xff]   ;;  %v7531_v14 = vld [vmem:[#allocation9 + $0xe4] ss:$8 sps:$4 sm:$0xff]  }
 0x7fc   :  { %v3318_v3 = vpop.f32.mrf.mxu1  ;;  %v7529_v4 = vld [vmem:[#allocation9 + $0xe0] ss:$8 sps:$4 sm:$0xff]   ;;  %v7546_v51 = vld [vmem:[#allocation9 + $0x204] ss:$8 sps:$4 sm:$0xff]  }
 0x7fd   :  { %v3356_v26 = vmax.f32 %v3348_v18, 0.0  ;;  %v3330_v28 = vadd.f32 %v3318_v3, %v3169_v55  ;;  %v3361_v60 = vpack.c.bf16 %v3355_v19, %v3353_v0  ;;  %v3349_v45 = vadd.f32 %v3338_v31, %v3329_v22  ;;  %v7538_v55 = vld [vmem:[#allocation9 + $0x210] ss:$8 sps:$4 sm:$0xff]   ;;  %v7537_v18 = vld [vmem:[#allocation9 + $0xd4] ss:$8 sps:$4 sm:$0xff]  }
 0x7fe   :  { %v3320_v37 = vpop.f32.mrf.mxu1  ;;  %v7535_v19 = vld [vmem:[#allocation9 + $0xd0] ss:$8 sps:$4 sm:$0xff]   ;;  %v7544_v20 = vld [vmem:[#allocation9 + $0x200] ss:$8 sps:$4 sm:$0xff]   ;;  %v7543_v3 = vld [vmem:[#allocation9 + $0xc4] ss:$8 sps:$4 sm:$0xff]  }
 0x7ff   :  { %v3331_v8 = vadd.f32 %v3320_v37, %v3171_v27  ;;  %v3362_v42 = vpack.c.bf16 %v3356_v26, %v3354_v24  ;;  %v3350_v30 = vadd.f32 %v3342_v40, %v3330_v28  ;;  %v3357_v58 = vmax.f32 %v3349_v45, 0.0  ;;  %v7552_v24 = vld [vmem:[#allocation9 + $0x2f4] ss:$8 sps:$4 sm:$0xff]   ;;  %v7541_v27 = vld [vmem:[#allocation9 + $0xc0] ss:$8 sps:$4 sm:$0xff]  }
 0x800   :  { %v3322_v38 = vpop.f32.mrf.mxu1  ;;  %v7550_v26 = vld [vmem:[#allocation9 + $0x2f0] ss:$8 sps:$4 sm:$0xff]   ;;  %v7549_v28 = vld [vmem:[#allocation9 + $0xb4] ss:$8 sps:$4 sm:$0xff]   ;;  %v7558_v0 = vld [vmem:[#allocation9 + $0x2e4] ss:$8 sps:$4 sm:$0xff]  }
 0x801   :  { %v3351_v44 = vadd.f32 %v3338_v31, %v3331_v8  ;;  %v3332_v35 = vadd.f32 %v3322_v38, %v3173_v7  ;;  %3736 = vmatprep.mubr.bf16.mxu1 %v3362_v42  ;;  %v3358_v52 = vmax.f32 %v3350_v30, 0.0  ;;  %v7501_v31 = vld [vmem:[#allocation9 + $0x34] ss:$8 sps:$4 sm:$0xff]   ;;  %v7547_v22 = vld [vmem:[#allocation9 + $0xb0] ss:$8 sps:$4 sm:$0xff]  }
 0x802   :  { %3737 = vmatmul.mubr.bf16.vlgmr.msra.gmra.mxu1 %v3361_v60  ;;  %v7556_v37 = vld [vmem:[#allocation9 + $0x2e0] ss:$8 sps:$4 sm:$0xff]   ;;  %v7555_v7 = vld [vmem:[#allocation9 + $0xa4] ss:$8 sps:$4 sm:$0xff]   ;;  %v7564_v8 = vld [vmem:[#allocation9 + $0x2d4] ss:$8 sps:$4 sm:$0xff]  }
 0x803   :  { %v3352_v6 = vadd.f32 %v3342_v40, %v3332_v35  ;;  %4164 = vmatpush1.bf16.msra.mxu1 %v7502_v11  ;;  %v3359_v32 = vmax.f32 %v3351_v44, 0.0  ;;  %v7493_v40 = vld [vmem:[#allocation9 + $0x50] ss:$8 sps:$4 sm:$0xff]   ;;  %v7570_v38 = vld [vmem:[#allocation9 + $0x2c4] ss:$8 sps:$4 sm:$0xff]  }
 0x804   :  { %4165 = vmatprep.subr.bf16.mxu1 %v7510_v62  ;;  %v7562_v11 = vld [vmem:[#allocation9 + $0x2d0] ss:$8 sps:$4 sm:$0xff]   ;;  %v7568_v30 = vld [vmem:[#allocation9 + $0x2c0] ss:$8 sps:$4 sm:$0xff]   ;;  %v7567_v44 = vld [vmem:[#allocation9 + $0x84] ss:$8 sps:$4 sm:$0xff]  }
 0x805   :  { %v3360_v21 = vmax.f32 %v3352_v6, 0.0  ;;  %v3363_v25 = vpack.c.bf16 %v3359_v32, %v3357_v58  ;;  %v7559_v62 = vld [vmem:[#allocation9 + $0x90] ss:$8 sps:$4 sm:$0xff]   ;;  %v7573_v35 = vld [vmem:[#allocation9 + $0x2b4] ss:$8 sps:$4 sm:$0xff]  }
 0x806   :  { %v7565_v45 = vld [vmem:[#allocation9 + $0x80] ss:$8 sps:$4 sm:$0xff]   ;;  %v7571_v6 = vld [vmem:[#allocation9 + $0x2b0] ss:$8 sps:$4 sm:$0xff]  }
 0x807   :  { %v3364_v39 = vpack.c.bf16 %v3360_v21, %v3358_v52  ;;  %4166 = vmatpush1.bf16.msra.mxu1 %v7508_v48  ;;  %v7576_v48 = vld [vmem:[#allocation9 + $0x2a4] ss:$8 sps:$4 sm:$0xff]   ;;  %v7574_v32 = vld [vmem:[#allocation9 + $0x2a0] ss:$8 sps:$4 sm:$0xff]   ;;  %v7577_v52 = vld [vmem:[#allocation9 + $0x290] ss:$8 sps:$4 sm:$0xff]  }
 0x808   :  { %4167 = vmatprep.subr.bf16.mxu1 %v7516_v36  ;;  %v7579_v36 = vld [vmem:[#allocation9 + $0x294] ss:$8 sps:$4 sm:$0xff]   ;;  %v7582_v21 = vld [vmem:[#allocation9 + $0x284] ss:$8 sps:$4 sm:$0xff]   ;;  %v7580_v58 = vld [vmem:[#allocation9 + $0x280] ss:$8 sps:$4 sm:$0xff]  }
 0x809   :  { %3377 = vmatprep.subr.bf16.mxu0 %v3364_v39  ;;  %3746 = vmatprep.mubr.bf16.mxu1 %v3364_v39 }
 0x80a   :  { %3378 = vmatpush1.bf16.msra.mxu0 %v3363_v25  ;;  %3747 = vmatmul.mubr.bf16.gmra.mxu1 %v3363_v25 }
 0x80b   :  { %3379 = vmatprep.subr.bf16.mxu0 %v3362_v42  ;;  %4168 = vmatpush1.bf16.msra.mxu1 %v7514_v47 }
 0x80c   :  { %4169 = vmatprep.subr.bf16.mxu1 %v7522_v61 }
 0x80e   :  { %3380 = vmatpush1.bf16.msra.mxu0 %v3361_v60 }
 0x80f   :  { %3434 = vmatprep.subr.bf16.mxu0 %v3364_v39  ;;  %4170 = vmatpush1.bf16.msra.mxu1 %v7520_v2  ;;  %v7583_v39 = vld [vmem:[#allocation15 + $0x78] sm:$0xff]  }
 0x810   :  { %4171 = vmatprep.subr.bf16.mxu1 %v7528_v43 }
 0x811   :  { %6482 = vmatmul.mubr.msk.bf16.vlgmr.msra.gmra.mxu0 %vm2751_vm1, %v8858_v56  ;;  %v7490_v56 = vld [vmem:[#allocation9 + $0x60] ss:$8 sps:$4 sm:$0xff]  }
 0x812   :  { %3435 = vmatpush1.bf16.msra.mxu0 %v3363_v25  ;;  %3407 = vmatprep.mubr.bf16.mxu0 %v8251_v33 }
 0x813   :  { %3436 = vmatprep.subr.bf16.mxu0 %v3362_v42  ;;  %4172 = vmatpush1.bf16.msra.mxu1 %v7526_v5  ;;  %v7553_v42 = vld [vmem:[#allocation9 + $0xa0] ss:$8 sps:$4 sm:$0xff]  }
 0x814   :  { %4173 = vmatprep.subr.bf16.mxu1 %v7534_v46 }
 0x816   :  { %3437 = vmatpush1.bf16.msra.mxu0 %v3361_v60  ;;  %v7561_v60 = vld [vmem:[#allocation9 + $0x94] ss:$8 sps:$4 sm:$0xff]  }
 0x817   :  { %3917 = vmatprep.subr.bf16.mxu0 %v7489_v41  ;;  %4174 = vmatpush1.bf16.msra.mxu1 %v7532_v34 }
 0x818   :  { %4175 = vmatprep.subr.bf16.mxu1 %v7540_v15  ;;  %v7587_v15 = vld [vmem:[#allocation15 + $0x68] sm:$0xff]  }
 0x819   :  { %6483 = vmatmul.mubr.msk.bf16.gmra.mxu0 %vm2751_vm1, %v8866_v17  ;;  %v7496_v17 = vld [vmem:[#allocation9 + $0x40] ss:$8 sps:$4 sm:$0xff]  }
 0x81a   :  { %3454 = vmatprep.mubr.bf16.mxu0 %v8251_v33 }
 0x81b   :  { %4176 = vmatpush1.bf16.msra.mxu1 %v7538_v55  ;;  %v7589_v55 = vld [vmem:[#allocation15 + $0x60] sm:$0xff]  }
 0x81c   :  { %4177 = vmatprep.subr.bf16.mxu1 %v7546_v51  ;;  %v7591_v51 = vld [vmem:[#allocation15 + $0x58] sm:$0xff]  }
 0x81f   :  { %4178 = vmatpush1.bf16.msra.mxu1 %v7544_v20  ;;  %v7593_v20 = vld [vmem:[#allocation15 + $0x50] sm:$0xff]  }
 0x820   :  { %4179 = vmatprep.subr.bf16.mxu1 %v7552_v24  ;;  %v7595_v24 = vld [vmem:[#allocation15 + $0x48] sm:$0xff]  }
 0x821   :  { %6484 = vmatmul.mubr.msk.bf16.vlgmr.msra.gmra.mxu0 %vm2751_vm1, %v8868_v29  ;;  %v7507_v29 = vld [vmem:[#allocation9 + $0x24] ss:$8 sps:$4 sm:$0xff]  }
 0x822   :  { %3464 = vmatprep.mubr.bf16.mxu0 %v8251_v33  ;;  %3918 = vmatpush1.bf16.msra.mxu0 %v7487_v54 }
 0x823   :  { %3919 = vmatprep.subr.bf16.mxu0 %v7492_v23  ;;  %4180 = vmatpush2.bf16.msra.mxu1 %v7550_v26  ;;  %v7597_v26 = vld [vmem:[#allocation15 + $0x40] sm:$0xff]  }
 0x824   :  { %4181 = vmatprep.subr.bf16.mxu1 %v7558_v0  ;;  %v7599_v0 = vld [vmem:[#allocation16 + $0x78] sm:$0xff]  }
 0x826   :  { %3920 = vmatpush1.bf16.msra.mxu0 %v7490_v56 }
 0x827   :  { %3921 = vmatprep.subr.bf16.mxu0 %v7495_v59  ;;  %4182 = vmatpush2.bf16.msra.mxu1 %v7556_v37 }
 0x828   :  { %4183 = vmatprep.subr.bf16.mxu1 %v7564_v8 }
 0x829   :  { %6485 = vmatmul.mubr.msk.bf16.gmra.mxu0 %vm2751_vm1, %v8876_v49  ;;  %v7525_v49 = vld [vmem:[#allocation9 + $0xf4] ss:$8 sps:$4 sm:$0xff]  }
 0x82a   :  { %3922 = vmatpush1.bf16.msra.mxu0 %v7493_v40 }
 0x82b   :  { %3923 = vmatprep.subr.bf16.mxu0 %v7498_v63  ;;  %4184 = vmatpush2.bf16.msra.mxu1 %v7562_v11 }
 0x82c   :  { %4185 = vmatprep.subr.bf16.mxu1 %v7570_v38 }
 0x82e   :  { %3924 = vmatpush1.bf16.msra.mxu0 %v7496_v17 }
 0x82f   :  { %3925 = vmatprep.subr.bf16.mxu0 %v7501_v31  ;;  %4186 = vmatpush2.bf16.msra.mxu1 %v7568_v30 }
 0x830   :  { %4187 = vmatprep.subr.bf16.mxu1 %v7573_v35  ;;  %v4224_v35 = vld [vmem:[#allocation10] sm:$0x3] }
 0x832   :  { %3926 = vmatpush1.bf16.msra.mxu0 %v7499_v50 }
 0x833   :  { %3927 = vmatprep.subr.bf16.mxu0 %v7507_v29  ;;  %4188 = vmatpush2.bf16.msra.mxu1 %v7571_v6 }
 0x834   :  { %4189 = vmatprep.subr.bf16.mxu1 %v7576_v48 }
 0x836   :  { %3928 = vmatpush1.bf16.msra.mxu0 %v7505_v57 }
 0x837   :  { %3929 = vmatprep.subr.bf16.mxu0 %v7513_v1  ;;  %4190 = vmatpush2.bf16.msra.mxu1 %v7574_v32  ;;  %v4229_v32 = vrot.slane %v4224_v35, %v8552_v10 }
 0x838   :  { %4191 = vmatprep.subr.bf16.mxu1 %v7579_v36 }
 0x83a   :  { %3930 = vmatpush1.bf16.msra.mxu0 %v7511_v16 }
 0x83b   :  { %3931 = vmatprep.subr.bf16.mxu0 %v7519_v9  ;;  %4192 = vmatpush2.bf16.msra.mxu1 %v7577_v52 }
 0x83c   :  { %4193 = vmatprep.subr.bf16.mxu1 %v7582_v21 }
 0x83e   :  { %3932 = vmatpush1.bf16.msra.mxu0 %v7517_v53 }
 0x83f   :  { %3933 = vmatprep.subr.bf16.mxu0 %v7525_v49  ;;  %4194 = vmatpush2.bf16.msra.mxu1 %v7580_v58  ;;  %v7584_v49 = vld [vmem:[#allocation15 + $0x38] sm:$0xff]  }
 0x842   :  { %3934 = vmatpush2.bf16.msra.mxu0 %v7523_v12  ;;  %v7585_v12 = vld [vmem:[#allocation15 + $0x70] sm:$0xff]  }
 0x843   :  { %3935 = vmatprep.subr.bf16.mxu0 %v7531_v14  ;;  %v7586_v14 = vld [vmem:[#allocation15 + $0x30] sm:$0xff]  }
 0x846   :  { %3936 = vmatpush2.bf16.msra.mxu0 %v7529_v4  ;;  %v7588_v4 = vld [vmem:[#allocation15 + $0x28] sm:$0xff]  }
 0x847   :  { %3937 = vmatprep.subr.bf16.mxu0 %v7537_v18  ;;  %v7590_v18 = vld [vmem:[#allocation15 + $0x20] sm:$0xff]  }
 0x84a   :  { %3938 = vmatpush2.bf16.msra.mxu0 %v7535_v19  ;;  %v7592_v19 = vld [vmem:[#allocation15 + $0x18] sm:$0xff]  }
 0x84b   :  { %3939 = vmatprep.subr.bf16.mxu0 %v7543_v3  ;;  %v7594_v3 = vld [vmem:[#allocation15 + $0x10] sm:$0xff]  }
 0x84e   :  { %3940 = vmatpush2.bf16.msra.mxu0 %v7541_v27  ;;  %v7596_v27 = vld [vmem:[#allocation15 + $0x8] sm:$0xff]  }
 0x84f   :  { %3941 = vmatprep.subr.bf16.mxu0 %v7549_v28  ;;  %v7598_v28 = vld [vmem:[#allocation15] sm:$0xff]  }
 0x852   :  { %3942 = vmatpush2.bf16.msra.mxu0 %v7547_v22 }
 0x853   :  { %3943 = vmatprep.subr.bf16.mxu0 %v7555_v7 }
 0x856   :  { %3944 = vmatpush2.bf16.msra.mxu0 %v7553_v42 }
 0x857   :  { %3945 = vmatprep.subr.bf16.mxu0 %v7561_v60 }
 0x85a   :  { %3946 = vmatpush2.bf16.msra.mxu0 %v7559_v62 }
 0x85b   :  { %3947 = vmatprep.subr.bf16.mxu0 %v7567_v44 }
 0x85e   :  { %3948 = vmatpush2.bf16.msra.mxu0 %v7565_v45 }
 0x85f   :  { %6884 = vmatprep.subr.bf16.mxu0 %v7583_v39  ;;  %v4233_v39 = vrot.slane %v4224_v35, %v8555_v13  ;;  %v7609_v35 = vld [vmem:[#allocation16 + $0x50] sm:$0xff]  }
 0x8c2   :  { %v3738_v22 = vpop.f32.mrf.mxu1 }
 0x8c4   :  { %v3740_v37 = vpop.f32.mrf.mxu1 }
 0x8c6   :  { %v3742_v7 = vpop.f32.mrf.mxu1 }
 0x8c8   :  { %v3744_v8 = vpop.f32.mrf.mxu1 }
 0x8ca   :  { %v3748_v11 = vpop.f32.mrf.mxu1 }
 0x8cc   :  { %v3750_v62 = vpop.f32.mrf.mxu1 }
 0x8ce   :  { %v3752_v44 = vpop.f32.mrf.mxu1 }
 0x8d0   :  { %v3754_v6 = vpop.f32.mrf.mxu1 }
 0x8d1   :  { %v3399_v47 = vpop.f32.mrf.mxu0 }
 0x8d3   :  { %v3401_v25 = vpop.f32.mrf.mxu0 }
 0x8d5   :  { %v3403_v61 = vpop.f32.mrf.mxu0 }
 0x8d6   :  { %v3418_v5 = vpack.c.bf16 %v3403_v61, %v3399_v47 }
 0x8d7   :  { %v3405_v2 = vpop.f32.mrf.mxu0 }
 0x8d8   :  { %v3419_v43 = vpack.c.bf16 %v3405_v2, %v3401_v25 }
 0x8d9   :  { %v3409_v46 = vpop.f32.mrf.mxu0 }
 0x8da   :  { %3949 = vmatprep.mubr.bf16.mxu0 %v3419_v43 }
 0x8db   :  { %v3411_v41 = vpop.f32.mrf.mxu0  ;;  %3950 = vmatmul.mubr.bf16.vlgmr.msra.gmra.mxu0 %v3418_v5 }
 0x8dc   :  { %6885 = vmatpush3.bf16.msra.mxu0 %v7584_v49 }
 0x8dd   :  { %v3413_v34 = vpop.f32.mrf.mxu0  ;;  %6886 = vmatprep.subr.bf16.mxu0 %v7585_v12 }
 0x8de   :  { %v3420_v56 = vpack.c.bf16 %v3413_v34, %v3409_v46 }
 0x8df   :  { %v3415_v54 = vpop.f32.mrf.mxu0 }
 0x8e0   :  { %v3421_v23 = vpack.c.bf16 %v3415_v54, %v3411_v41  ;;  %6887 = vmatpush3.bf16.msra.mxu0 %v7586_v14 }
 0x8e1   :  { %v3456_v59 = vpop.f32.mrf.mxu0  ;;  %6888 = vmatprep.subr.bf16.mxu0 %v7587_v15 }
 0x8e2   :  { %3959 = vmatprep.mubr.bf16.mxu0 %v3421_v23 }
 0x8e3   :  { %v3458_v40 = vpop.f32.mrf.mxu0  ;;  %3960 = vmatmul.mubr.bf16.gmra.mxu0 %v3420_v56 }
 0x8e4   :  { %6889 = vmatpush3.bf16.msra.mxu0 %v7588_v4 }
 0x8e5   :  { %v3460_v63 = vpop.f32.mrf.mxu0  ;;  %6890 = vmatprep.subr.bf16.mxu0 %v7589_v55 }
 0x8e6   :  { %v3475_v50 = vpack.c.bf16 %v3460_v63, %v3456_v59 }
 0x8e7   :  { %v3462_v17 = vpop.f32.mrf.mxu0 }
 0x8e8   :  { %v3476_v31 = vpack.c.bf16 %v3462_v17, %v3458_v40  ;;  %6891 = vmatpush3.bf16.msra.mxu0 %v7590_v18 }
 0x8e9   :  { %v3466_v29 = vpop.f32.mrf.mxu0  ;;  %6892 = vmatprep.subr.bf16.mxu0 %v7591_v51 }
 0x8ea   :  { %4195 = vmatprep.mubr.bf16.mxu1 %v3476_v31 }
 0x8eb   :  { %v3468_v57 = vpop.f32.mrf.mxu0  ;;  %4196 = vmatmul.mubr.bf16.vlgmr.msra.gmra.mxu1 %v3475_v50 }
 0x8ec   :  { %6893 = vmatpush3.bf16.msra.mxu0 %v7592_v19  ;;  %v7600_v19 = vld [vmem:[#allocation16 + $0x38] sm:$0xff]  }
 0x8ed   :  { %v3470_v1 = vpop.f32.mrf.mxu0  ;;  %6894 = vmatprep.subr.bf16.mxu0 %v7593_v20 }
 0x8ee   :  { %v3477_v16 = vpack.c.bf16 %v3470_v1, %v3466_v29 }
 0x8ef   :  { %v3472_v9 = vpop.f32.mrf.mxu0 }
 0x8f0   :  { %v3478_v53 = vpack.c.bf16 %v3472_v9, %v3468_v57  ;;  %6895 = vmatpush3.bf16.msra.mxu0 %v7594_v3 }
 0x8f1   :  { %6896 = vmatprep.subr.bf16.mxu0 %v7595_v24  ;;  %v7601_v24 = vld [vmem:[#allocation16 + $0x70] sm:$0xff]  }
 0x8f2   :  { %4205 = vmatprep.mubr.bf16.mxu1 %v3478_v53 }
 0x8f3   :  { %4206 = vmatmul.mubr.bf16.gmra.mxu1 %v3477_v16 }
 0x8f4   :  { %6897 = vmatpush3.bf16.msra.mxu0 %v7596_v27 }
 0x8f5   :  { %6898 = vmatprep.subr.bf16.mxu0 %v7597_v26 }
 0x8f8   :  { %6899 = vmatpush3.bf16.msra.mxu0 %v7598_v28 }
 0x8f9   :  { %6912 = vmatprep.subr.bf16.mxu0 %v7599_v0 }
 0x99b   :  { %v3951_v42 = vpop.f32.mrf.mxu0 }
 0x99c   :  { %v3952_v48 = vadd.f32 %v3951_v42, %v3738_v22 }
 0x99d   :  { %v3953_v60 = vpop.f32.mrf.mxu0 }
 0x99e   :  { %v3954_v52 = vadd.f32 %v3953_v60, %v3740_v37  ;;  %v7602_v37 = vld [vmem:[#allocation16 + $0x30] sm:$0xff]  }
 0x99f   :  { %v3955_v38 = vpop.f32.mrf.mxu0 }
 0x9a0   :  { %v3956_v25 = vadd.f32 %v3955_v38, %v3742_v7  ;;  %v7603_v7 = vld [vmem:[#allocation16 + $0x68] sm:$0xff]   ;;  %v7605_v38 = vld [vmem:[#allocation16 + $0x60] sm:$0xff]  }
 0x9a1   :  { %v3957_v30 = vpop.f32.mrf.mxu0 }
 0x9a2   :  { %v3958_v5 = vadd.f32 %v3957_v30, %v3744_v8  ;;  %v7607_v30 = vld [vmem:[#allocation16 + $0x58] sm:$0xff]  }
 0x9a3   :  { %v3961_v45 = vpop.f32.mrf.mxu0 }
 0x9a4   :  { %v3962_v56 = vadd.f32 %v3961_v45, %v3748_v11  ;;  %v7604_v11 = vld [vmem:[#allocation16 + $0x28] sm:$0xff]   ;;  %v7610_v45 = vld [vmem:[#allocation16 + $0x10] sm:$0xff]  }
 0x9a5   :  { %v3963_v21 = vpop.f32.mrf.mxu0 }
 0x9a6   :  { %v3964_v31 = vadd.f32 %v3963_v21, %v3750_v62  ;;  %v7606_v62 = vld [vmem:[#allocation16 + $0x20] sm:$0xff]  }
 0x9a7   :  { %v3965_v46 = vpop.f32.mrf.mxu0 }
 0x9a8   :  { %v3966_v9 = vadd.f32 %v3965_v46, %v3752_v44  ;;  %v7608_v44 = vld [vmem:[#allocation16 + $0x18] sm:$0xff]  }
 0x9a9   :  { %v3967_v50 = vpop.f32.mrf.mxu0 }
 0x9aa   :  { %v3968_v14 = vadd.f32 %v3967_v50, %v3754_v6  ;;  %v7611_v6 = vld [vmem:[#allocation16 + $0x48] sm:$0xff]  }
 0x9ab   :  { %v4197_v36 = vpop.f32.mrf.mxu1 }
 0x9ac   :  { %v4216_v58 = vadd.f32 %v4197_v36, %v3952_v48  ;;  %v7612_v48 = vld [vmem:[#allocation16 + $0x8] sm:$0xff]   ;;  %v7614_v36 = vld [vmem:[#allocation16] sm:$0xff]  }
 0x9ad   :  { %v4199_v47 = vpop.f32.mrf.mxu1 }
 0x9ae   :  { %v4236_v61 = vadd.f32 %v4229_v32, %v4216_v58  ;;  %v4217_v2 = vadd.f32 %v4199_v47, %v3954_v52  ;;  %v8252_v52 = vmov 0.0  }
 0x9af   :  { %v4201_v43 = vpop.f32.mrf.mxu1  ;;  %7022 = vmatprep.subr.bf16.mxu1 %v8252_v52  ;;  %7026 = vmatprep.mubr.msk.bf16.mxu1 %vm8253_vm2, %v8252_v52 }
 0x9b0   :  { %v4244_v41 = vmax.f32 %v4236_v61, 0.0  ;;  %v4237_v34 = vadd.f32 %v4233_v39, %v4217_v2  ;;  %v4218_v54 = vadd.f32 %v4201_v43, %v3956_v25 }
 0x9b1   :  { %v4203_v23 = vpop.f32.mrf.mxu1 }
 0x9b2   :  { %4252 = vst [vmem:[%s8402_s13] sm:$0xff] %v4244_v41  ;;  %v4245_v59 = vmax.f32 %v4237_v34, 0.0  ;;  %v4238_v40 = vadd.f32 %v4229_v32, %v4218_v54  ;;  %v4219_v63 = vadd.f32 %v4203_v23, %v3958_v5 }
 0x9b3   :  { %v4207_v17 = vpop.f32.mrf.mxu1 }
 0x9b4   :  { %4253 = vst [vmem:[%s8402_s13 + $0x8] sm:$0xff] %v4245_v59  ;;  %v4246_v29 = vmax.f32 %v4238_v40, 0.0  ;;  %v4239_v57 = vadd.f32 %v4233_v39, %v4219_v63  ;;  %v4220_v1 = vadd.f32 %v4207_v17, %v3962_v56 }
 0x9b5   :  { %v4209_v16 = vpop.f32.mrf.mxu1 }
 0x9b6   :  { %4254 = vst [vmem:[%s8402_s13 + $0x10] sm:$0xff] %v4246_v29  ;;  %v4247_v53 = vmax.f32 %v4239_v57, 0.0  ;;  %v4240_v49 = vadd.f32 %v4229_v32, %v4220_v1  ;;  %v4221_v12 = vadd.f32 %v4209_v16, %v3964_v31  ;;  %v4260_v20 = vpack.c.bf16 %v4246_v29, %v4244_v41 }
 0x9b7   :  { %v4211_v15 = vpop.f32.mrf.mxu1 }
 0x9b8   :  { %4255 = vst [vmem:[%s8402_s13 + $0x18] sm:$0xff] %v4247_v53  ;;  %v4248_v4 = vmax.f32 %v4240_v49, 0.0  ;;  %v4241_v55 = vadd.f32 %v4233_v39, %v4221_v12  ;;  %v4222_v18 = vadd.f32 %v4211_v15, %v3966_v9  ;;  %v4261_v51 = vpack.c.bf16 %v4247_v53, %v4245_v59 }
 0x9b9   :  { %v4213_v3 = vpop.f32.mrf.mxu1 }
 0x9ba   :  { %4256 = vst [vmem:[%s8402_s13 + $0x20] sm:$0xff] %v4248_v4  ;;  %v4249_v27 = vmax.f32 %v4241_v55, 0.0  ;;  %v4242_v26 = vadd.f32 %v4229_v32, %v4222_v18  ;;  %v4223_v28 = vadd.f32 %v4213_v3, %v3968_v14  ;;  %4424 = vmatprep.mubr.bf16.mxu0 %v4261_v51  ;;  %v7613_v32 = vld [vmem:[#allocation16 + $0x40] sm:$0xff]  }
 0x9bb   :  { %4425 = vmatmul.mubr.bf16.vlgmr.msra.gmra.mxu0 %v4260_v20 }
 0x9bc   :  { %4257 = vst [vmem:[%s8402_s13 + $0x28] sm:$0xff] %v4249_v27  ;;  %v4250_v0 = vmax.f32 %v4242_v26, 0.0  ;;  %v4243_v22 = vadd.f32 %v4233_v39, %v4223_v28  ;;  %6913 = vmatpush3.bf16.msra.mxu0 %v7600_v19 }
 0x9bd   :  { %6914 = vmatprep.subr.bf16.mxu0 %v7601_v24 }
 0x9be   :  { %4258 = vst [vmem:[%s8402_s13 + $0x30] sm:$0xff] %v4250_v0  ;;  %v4251_v8 = vmax.f32 %v4243_v22, 0.0  ;;  %v4262_v60 = vpack.c.bf16 %v4250_v0, %v4248_v4  ;;  %v7616_v4 = vld [vmem:[#allocation18] sm:$0xff]  }
 0x9bf   :  { %v7620_v0 = vld [vmem:[#allocation19 + $0xf4] ss:$8 sps:$4 sm:$0xff]  }
 0x9c0   :  { %4259 = vst [vmem:[%s8402_s13 + $0x38] sm:$0xff] %v4251_v8  ;;  %6915 = vmatpush3.bf16.msra.mxu0 %v7602_v37  ;;  %v4263_v42 = vpack.c.bf16 %v4251_v8, %v4249_v27  ;;  %s8984_s13 = sld [smem:[#allocation46_spill]]  ;;  %v7645_v22 = vld [vmem:[#allocation19 + $0x74] ss:$8 sps:$4 sm:$0xff]   ;;  %v8921_v8 = vld [vmem:[#allocation27] sm:$0xff]  }
 0x9c1   :  { %6916 = vmatprep.subr.bf16.mxu0 %v7603_v7  ;;  %v8919_v7 = vld [vmem:[#allocation25] sm:$0xff]  }
 0x9c2   :  { %4432 = vmatprep.mubr.bf16.mxu0 %v4263_v42 }
 0x9c3   :  { %4433 = vmatmul.mubr.bf16.gmra.mxu0 %v4262_v60 }
 0x9c4   :  { %6917 = vmatpush3.bf16.msra.mxu0 %v7604_v11  ;;  %4601 = vmatprep.mubr.bf16.mxu0 %v4261_v51  ;;  %v7624_v11 = vld [vmem:[#allocation19 + $0xe4] ss:$8 sps:$4 sm:$0xff]  }
 0x9c5   :  { %6918 = vmatprep.subr.bf16.mxu0 %v7605_v38  ;;  %v7651_v38 = vld [vmem:[#allocation19 + $0x64] ss:$8 sps:$4 sm:$0xff]  }
 0x9c6   :  { %v7615_v15 = vld [vmem:[%s8984_s13] sm:$0xff]  }
 0x9c8   :  { %6919 = vmatpush3.bf16.msra.mxu0 %v7606_v62  ;;  %v7622_v62 = vld [vmem:[#allocation19 + $0xe0] ss:$8 sps:$4 sm:$0xff]  }
 0x9c9   :  { %6920 = vmatprep.subr.bf16.mxu0 %v7607_v30  ;;  %v7627_v30 = vld [vmem:[#allocation19 + $0xd4] ss:$8 sps:$4 sm:$0xff]  }
 0x9cc   :  { %6921 = vmatpush3.bf16.msra.mxu0 %v7608_v44  ;;  %v7649_v44 = vld [vmem:[#allocation19 + $0x60] ss:$8 sps:$4 sm:$0xff]  }
 0x9cd   :  { %6922 = vmatprep.subr.bf16.mxu0 %v7609_v35  ;;  %v7657_v35 = vld [vmem:[#allocation19 + $0x54] ss:$8 sps:$4 sm:$0xff]  }
 0x9d0   :  { %6923 = vmatpush3.bf16.msra.mxu0 %v7610_v45  ;;  %v7625_v45 = vld [vmem:[#allocation19 + $0xd0] ss:$8 sps:$4 sm:$0xff]  }
 0x9d1   :  { %6924 = vmatprep.subr.bf16.mxu0 %v7611_v6  ;;  %v7630_v6 = vld [vmem:[#allocation19 + $0xc4] ss:$8 sps:$4 sm:$0xff]  }
 0x9d4   :  { %6925 = vmatpush3.bf16.msra.mxu0 %v7612_v48  ;;  %v7655_v48 = vld [vmem:[#allocation19 + $0x50] ss:$8 sps:$4 sm:$0xff]  }
 0x9d5   :  { %6926 = vmatprep.subr.bf16.mxu0 %v7613_v32  ;;  %v7663_v32 = vld [vmem:[#allocation19 + $0x44] ss:$8 sps:$4 sm:$0xff]  }
 0x9d8   :  { %6927 = vmatpush3.bf16.msra.mxu0 %v7614_v36  ;;  %v7628_v36 = vld [vmem:[#allocation19 + $0xc0] ss:$8 sps:$4 sm:$0xff]  }
 0x9d9   :  { %7044 = vmatprep.subr.bf16.mxu0 %v8252_v52 }
 0x9db   :  { %4602 = vmatmul.mubr.bf16.vlgmr.msra.gmra.mxu0 %v4260_v20 }
 0x9dc   :  { %4609 = vmatprep.mubr.bf16.mxu0 %v4263_v42  ;;  %v7618_v42 = vld [vmem:[#allocation19 + $0xf0] ss:$8 sps:$4 sm:$0xff]  }
 0x9e3   :  { %4610 = vmatmul.mubr.bf16.gmra.mxu0 %v4262_v60  ;;  %v7643_v60 = vld [vmem:[#allocation19 + $0x70] ss:$8 sps:$4 sm:$0xff]  }
 0x9e4   :  { %7046 = vmatprep.mubr.msk.bf16.mxu0 %vm8253_vm2, %v8252_v52 }
 0xa7b   :  { %v6900_v21 = vpop.f32.mrf.mxu0 }
 0xa7d   :  { %v6901_v58 = vpop.f32.mrf.mxu0 }
 0xa7e   :  { %v6902_v9 = vadd.f32 %v6901_v58, %v6900_v21  ;;  %v7661_v21 = vld [vmem:[#allocation19 + $0x40] ss:$8 sps:$4 sm:$0xff]   ;;  %v7669_v58 = vld [vmem:[#allocation19 + $0x34] ss:$8 sps:$4 sm:$0xff]  }
 0xa7f   :  { %v6903_v39 = vpop.f32.mrf.mxu0 }
 0xa81   :  { %v6904_v47 = vpop.f32.mrf.mxu0 }
 0xa82   :  { %v6905_v29 = vadd.f32 %v6904_v47, %v6903_v39  ;;  %v7631_v39 = vld [vmem:[#allocation19 + $0xb0] ss:$8 sps:$4 sm:$0xff]   ;;  %v7636_v47 = vld [vmem:[#allocation19 + $0xa4] ss:$8 sps:$4 sm:$0xff]  }
 0xa83   :  { %v6906_v25 = vpop.f32.mrf.mxu0 }
 0xa85   :  { %v6907_v61 = vpop.f32.mrf.mxu0 }
 0xa86   :  { %v6908_v63 = vadd.f32 %v6907_v61, %v6906_v25  ;;  %v7667_v25 = vld [vmem:[#allocation19 + $0x30] ss:$8 sps:$4 sm:$0xff]   ;;  %v7675_v61 = vld [vmem:[#allocation19 + $0x24] ss:$8 sps:$4 sm:$0xff]  }
 0xa87   :  { %v6909_v2 = vpop.f32.mrf.mxu0 }
 0xa89   :  { %v6910_v43 = vpop.f32.mrf.mxu0 }
 0xa8a   :  { %v6911_v17 = vadd.f32 %v6910_v43, %v6909_v2  ;;  %v7634_v2 = vld [vmem:[#allocation19 + $0xa0] ss:$8 sps:$4 sm:$0xff]   ;;  %v7639_v43 = vld [vmem:[#allocation19 + $0x94] ss:$8 sps:$4 sm:$0xff]  }
 0xa9b   :  { %v6928_v5 = vpop.f32.mrf.mxu0 }
 0xa9d   :  { %v6929_v46 = vpop.f32.mrf.mxu0 }
 0xa9e   :  { %v6930_v57 = vadd.f32 %v6929_v46, %v6928_v5  ;;  %v7673_v5 = vld [vmem:[#allocation19 + $0x20] ss:$8 sps:$4 sm:$0xff]   ;;  %v7681_v46 = vld [vmem:[#allocation19 + $0x14] ss:$8 sps:$4 sm:$0xff]  }
 0xa9f   :  { %v6931_v41 = vpop.f32.mrf.mxu0 }
 0xaa0   :  { %v4618_v12 = vmax.f32 %v6902_v9, %v6930_v57  ;;  %v7672_v57 = vld [vmem:[#allocation19 + $0x134] ss:$8 sps:$4 sm:$0xff]   ;;  %v7676_v9 = vld [vmem:[#allocation19 + $0x120] ss:$8 sps:$4 sm:$0xff]  }
 0xaa1   :  { %v6932_v34 = vpop.f32.mrf.mxu0 }
 0xaa2   :  { %v6933_v31 = vadd.f32 %v6932_v34, %v6931_v41  ;;  %v7637_v41 = vld [vmem:[#allocation19 + $0x90] ss:$8 sps:$4 sm:$0xff]   ;;  %v7642_v34 = vld [vmem:[#allocation19 + $0x84] ss:$8 sps:$4 sm:$0xff]  }
 0xaa3   :  { %v6934_v54 = vpop.f32.mrf.mxu0 }
 0xaa4   :  { %v4619_v53 = vmax.f32 %v6905_v29, %v6933_v31  ;;  %v7658_v31 = vld [vmem:[#allocation19 + $0x150] ss:$8 sps:$4 sm:$0xff]   ;;  %v7664_v29 = vld [vmem:[#allocation19 + $0x140] ss:$8 sps:$4 sm:$0xff]  }
 0xaa5   :  { %v6935_v23 = vpop.f32.mrf.mxu0 }
 0xaa6   :  { %v6936_v59 = vadd.f32 %v6935_v23, %v6934_v54  ;;  %v4622_v14 = vpack.c.bf16 %v4619_v53, %v4618_v12  ;;  %v7679_v54 = vld [vmem:[#allocation19 + $0x10] ss:$8 sps:$4 sm:$0xff]   ;;  %v7640_v23 = vld [vmem:[#allocation19 + $0x80] ss:$8 sps:$4 sm:$0xff]   ;;  %v7684_v53 = vld [vmem:[#allocation19 + $0x114] ss:$8 sps:$4 sm:$0xff]  }
 0xaa7   :  { %v6937_v56 = vpop.f32.mrf.mxu0  ;;  %v7687_v12 = vld [vmem:[#allocation19 + $0x4] ss:$8 sps:$4 sm:$0xff]  }
 0xaa8   :  { %v4620_v1 = vmax.f32 %v6908_v63, %v6936_v59  ;;  %v7646_v59 = vld [vmem:[#allocation19 + $0x170] ss:$8 sps:$4 sm:$0xff]   ;;  %v7652_v63 = vld [vmem:[#allocation19 + $0x160] ss:$8 sps:$4 sm:$0xff]  }
 0xaa9   :  { %v6938_v40 = vpop.f32.mrf.mxu0 }
 0xaaa   :  { %v6939_v50 = vadd.f32 %v6938_v40, %v6937_v56  ;;  %v7648_v56 = vld [vmem:[#allocation19 + $0x174] ss:$8 sps:$4 sm:$0xff]   ;;  %v7654_v40 = vld [vmem:[#allocation19 + $0x164] ss:$8 sps:$4 sm:$0xff]  }
 0xaac   :  { %v4621_v16 = vmax.f32 %v6911_v17, %v6939_v50  ;;  %v7660_v17 = vld [vmem:[#allocation19 + $0x154] ss:$8 sps:$4 sm:$0xff]   ;;  %v7666_v50 = vld [vmem:[#allocation19 + $0x144] ss:$8 sps:$4 sm:$0xff]  }
 0xaae   :  { %v4623_v49 = vpack.c.bf16 %v4621_v16, %v4620_v1  ;;  %v7670_v1 = vld [vmem:[#allocation19 + $0x130] ss:$8 sps:$4 sm:$0xff]   ;;  %v7678_v16 = vld [vmem:[#allocation19 + $0x124] ss:$8 sps:$4 sm:$0xff]  }
 0xab0   :  { %7023 = vmatpush3.bf16.msra.mxu1 %v4623_v49 }
 0xab1   :  { %7024 = vmatprep.subr.bf16.mxu1 %v8252_v52 }
 0xab4   :  { %7025 = vmatpush3.bf16.msra.mxu1 %v4622_v14 }
 0xab5   :  { %7030 = vmatprep.subr.bf16.mxu1 %v8252_v52 }
 0xab7   :  { %7027 = vmatmul.mubr.msk.bf16.vlgmr.msra.gmra.mxu1 %vm2751_vm1, %v7615_v15  ;;  %v7685_v15 = vld [vmem:[#allocation19] ss:$8 sps:$4 sm:$0xff]  }
 0xab8   :  { %7031 = vmatpush3.bf16.msra.mxu1 %v4623_v49  ;;  %7034 = vmatprep.mubr.msk.bf16.mxu1 %vm8253_vm2, %v8252_v52  ;;  %v7682_v49 = vld [vmem:[#allocation19 + $0x110] ss:$8 sps:$4 sm:$0xff]  }
 0xab9   :  { %7032 = vmatprep.subr.bf16.mxu1 %v8252_v52 }
 0xabc   :  { %7033 = vmatpush3.bf16.msra.mxu1 %v4622_v14  ;;  %v7690_v14 = vld [vmem:[#allocation19 + $0x104] ss:$8 sps:$4 sm:$0xff]  }
 0xabd   :  { %7038 = vmatprep.subr.bf16.mxu1 %v8252_v52 }
 0xabf   :  { %7035 = vmatmul.mubr.msk.bf16.vlgmr.msra.gmra.mxu1 %vm2751_vm1, %v7616_v4  ;;  %v7688_v4 = vld [vmem:[#allocation19 + $0x100] ss:$8 sps:$4 sm:$0xff]  }
 0xac0   :  { %7040 = vmatprep.mubr.msk.bf16.mxu1 %vm8253_vm2, %v8252_v52  ;;  %v7633_v52 = vld [vmem:[#allocation19 + $0xb4] ss:$8 sps:$4 sm:$0xff]  }
 0xb77   :  { %v4668_v55 = vpop.f32.mrf.mxu1 }
 0xb79   :  { %v7028_v18 = vpop.f32.mrf.mxu1 }
 0xb7b   :  { %v4671_v51 = vpop.f32.mrf.mxu1 }
 0xb7d   :  { %v7029_v19 = vpop.f32.mrf.mxu1 }
 0xb7f   :  { %v4719_v20 = vpop.f32.mrf.mxu1 }
 0xb80   :  { %v4726_v27 = vmax.f32 %v4668_v55, %v4719_v20 }
 0xb81   :  { %v7036_v3 = vpop.f32.mrf.mxu1 }
 0xb83   :  { %v4722_v24 = vpop.f32.mrf.mxu1 }
 0xb84   :  { %v4727_v26 = vmax.f32 %v4671_v51, %v4722_v24 }
 0xb85   :  { %v7037_v28 = vpop.f32.mrf.mxu1 }
 0xb86   :  { %v8917_v37 = vpack.c.bf16 %v4727_v26, %v4726_v27 }
 0xb88   :  { %7039 = vmatpush3.bf16.msra.mxu1 %v8917_v37  ;;  %7045 = vmatpush3.bf16.msra.mxu0 %v8917_v37 }
 0xb89   :  { %4947 = vmatprep.subr.bf16.mxu1 %v7620_v0  ;;  %5070 = vmatprep.subr.bf16.mxu0 %v7645_v22  ;;  %v7739_v0 = vld [vmem:[#allocation22 + $0x70] ss:$8 sps:$4 sm:$0xff]   ;;  %v7741_v22 = vld [vmem:[#allocation22 + $0x74] ss:$8 sps:$4 sm:$0xff]  }
 0xb8b   :  { %7041 = vmatmul.mubr.msk.bf16.vlgmr.msra.gmra.mxu1 %vm4738_vm3, %v8919_v7  ;;  %7047 = vmatmul.mubr.msk.bf16.vlgmr.msra.gmra.mxu0 %vm4738_vm3, %v8921_v8 }
 0xb8c   :  { %4948 = vmatpush1.bf16.msra.mxu1 %v7618_v42  ;;  %4979 = vmatprep.mubr.bf16.mxu1 %v8251_v33  ;;  %v7742_v42 = vld [vmem:[#allocation22 + $0x60] ss:$8 sps:$4 sm:$0xff]  }
 0xb8d   :  { %4949 = vmatprep.subr.bf16.mxu1 %v7624_v11  ;;  %5071 = vmatpush1.bf16.msra.mxu0 %v7643_v60  ;;  %v7747_v11 = vld [vmem:[#allocation22 + $0x54] ss:$8 sps:$4 sm:$0xff]   ;;  %v7745_v60 = vld [vmem:[#allocation22 + $0x50] ss:$8 sps:$4 sm:$0xff]  }
 0xb8e   :  { %5072 = vmatprep.subr.bf16.mxu0 %v7651_v38  ;;  %5102 = vmatprep.mubr.bf16.mxu0 %v8251_v33  ;;  %v7753_v38 = vld [vmem:[#allocation22 + $0x44] ss:$8 sps:$4 sm:$0xff]  }
 0xb90   :  { %4950 = vmatpush1.bf16.msra.mxu1 %v7622_v62  ;;  %v7751_v62 = vld [vmem:[#allocation22 + $0x40] ss:$8 sps:$4 sm:$0xff]  }
 0xb91   :  { %4951 = vmatprep.subr.bf16.mxu1 %v7627_v30  ;;  %5073 = vmatpush1.bf16.msra.mxu0 %v7649_v44  ;;  %v7759_v30 = vld [vmem:[#allocation22 + $0x34] ss:$8 sps:$4 sm:$0xff]   ;;  %v7757_v44 = vld [vmem:[#allocation22 + $0x30] ss:$8 sps:$4 sm:$0xff]  }
 0xb92   :  { %5074 = vmatprep.subr.bf16.mxu0 %v7657_v35  ;;  %v7765_v35 = vld [vmem:[#allocation22 + $0x24] ss:$8 sps:$4 sm:$0xff]  }
 0xb94   :  { %4952 = vmatpush1.bf16.msra.mxu1 %v7625_v45  ;;  %v7763_v45 = vld [vmem:[#allocation22 + $0x20] ss:$8 sps:$4 sm:$0xff]  }
 0xb95   :  { %4953 = vmatprep.subr.bf16.mxu1 %v7630_v6  ;;  %5075 = vmatpush1.bf16.msra.mxu0 %v7655_v48  ;;  %v7771_v6 = vld [vmem:[#allocation22 + $0x14] ss:$8 sps:$4 sm:$0xff]  }
 0xb96   :  { %5076 = vmatprep.subr.bf16.mxu0 %v7663_v32  ;;  %v7769_v32 = vld [vmem:[#allocation22 + $0x10] ss:$8 sps:$4 sm:$0xff]  }
 0xb98   :  { %4954 = vmatpush1.bf16.msra.mxu1 %v7628_v36  ;;  %v7777_v36 = vld [vmem:[#allocation22 + $0x4] ss:$8 sps:$4 sm:$0xff]  }
 0xb99   :  { %4955 = vmatprep.subr.bf16.mxu1 %v7633_v52  ;;  %5077 = vmatpush1.bf16.msra.mxu0 %v7661_v21  ;;  %v7775_v21 = vld [vmem:[#allocation22] ss:$8 sps:$4 sm:$0xff]  }
 0xb9a   :  { %5078 = vmatprep.subr.bf16.mxu0 %v7669_v58  ;;  %v7783_v58 = vld [vmem:[#allocation22 + $0xf4] ss:$8 sps:$4 sm:$0xff]  }
 0xb9c   :  { %4956 = vmatpush1.bf16.msra.mxu1 %v7631_v39 }
 0xb9d   :  { %4957 = vmatprep.subr.bf16.mxu1 %v7636_v47  ;;  %5079 = vmatpush1.bf16.msra.mxu0 %v7667_v25  ;;  %v7781_v47 = vld [vmem:[#allocation22 + $0xf0] ss:$8 sps:$4 sm:$0xff]   ;;  %v7789_v25 = vld [vmem:[#allocation22 + $0xe4] ss:$8 sps:$4 sm:$0xff]  }
 0xb9e   :  { %5080 = vmatprep.subr.bf16.mxu0 %v7675_v61 }
 0xba0   :  { %4958 = vmatpush1.bf16.msra.mxu1 %v7634_v2 }
 0xba1   :  { %4959 = vmatprep.subr.bf16.mxu1 %v7639_v43  ;;  %5081 = vmatpush1.bf16.msra.mxu0 %v7673_v5  ;;  %v7787_v5 = vld [vmem:[#allocation22 + $0xe0] ss:$8 sps:$4 sm:$0xff]  }
 0xba2   :  { %5082 = vmatprep.subr.bf16.mxu0 %v7681_v46  ;;  %v7795_v46 = vld [vmem:[#allocation22 + $0xd4] ss:$8 sps:$4 sm:$0xff]  }
 0xba4   :  { %4960 = vmatpush1.bf16.msra.mxu1 %v7637_v41 }
 0xba5   :  { %4961 = vmatprep.subr.bf16.mxu1 %v7642_v34  ;;  %5083 = vmatpush1.bf16.msra.mxu0 %v7679_v54 }
 0xba6   :  { %5084 = vmatprep.subr.bf16.mxu0 %v7687_v12  ;;  %v7799_v12 = vld [vmem:[#allocation22 + $0xc0] ss:$8 sps:$4 sm:$0xff]  }
 0xba8   :  { %4962 = vmatpush1.bf16.msra.mxu1 %v7640_v23 }
 0xba9   :  { %5210 = vmatprep.subr.bf16.mxu1 %v7648_v56  ;;  %5085 = vmatpush1.bf16.msra.mxu0 %v7685_v15  ;;  %v5257_v56 = vld [vmem:[#allocation21] sm:$0x3] }
 0xbab   :  { %4980 = vmatmul.mubr.bf16.vlgmr.msra.gmra.mxu1 %v8917_v37  ;;  %v7744_v37 = vld [vmem:[#allocation22 + $0x64] ss:$8 sps:$4 sm:$0xff]  }
 0xbac   :  { %5211 = vmatpush1.bf16.msra.mxu1 %v7646_v59  ;;  %5242 = vmatprep.mubr.bf16.mxu1 %v8251_v33 }
 0xbad   :  { %5212 = vmatprep.subr.bf16.mxu1 %v7654_v40 }
 0xbb0   :  { %5213 = vmatpush1.bf16.msra.mxu1 %v7652_v63  ;;  %v7793_v63 = vld [vmem:[#allocation22 + $0xd0] ss:$8 sps:$4 sm:$0xff]  }
 0xbb1   :  { %5214 = vmatprep.subr.bf16.mxu1 %v7660_v17 }
 0xbb4   :  { %5215 = vmatpush1.bf16.msra.mxu1 %v7658_v31 }
 0xbb5   :  { %5216 = vmatprep.subr.bf16.mxu1 %v7666_v50  ;;  %v5266_v50 = vrot.slane %v5257_v56, %v8555_v13 }
 0xbb8   :  { %5217 = vmatpush1.bf16.msra.mxu1 %v7664_v29  ;;  %v7801_v29 = vld [vmem:[#allocation22 + $0xc4] ss:$8 sps:$4 sm:$0xff]  }
 0xbb9   :  { %5218 = vmatprep.subr.bf16.mxu1 %v7672_v57 }
 0xbbc   :  { %5219 = vmatpush1.bf16.msra.mxu1 %v7670_v1  ;;  %v5262_v1 = vrot.slane %v5257_v56, %v8552_v10  ;;  %v7819_v56 = vld [vmem:[#allocation22 + $0x94] ss:$8 sps:$4 sm:$0xff]  }
 0xbbd   :  { %5220 = vmatprep.subr.bf16.mxu1 %v7678_v16 }
 0xbc0   :  { %5221 = vmatpush1.bf16.msra.mxu1 %v7676_v9 }
 0xbc1   :  { %5222 = vmatprep.subr.bf16.mxu1 %v7684_v53 }
 0xbc4   :  { %5223 = vmatpush1.bf16.msra.mxu1 %v7682_v49 }
 0xbc5   :  { %5224 = vmatprep.subr.bf16.mxu1 %v7690_v14 }
 0xbc8   :  { %5225 = vmatpush1.bf16.msra.mxu1 %v7688_v4 }
 0xbc9   :  { %5797 = vmatprep.subr.bf16.mxu1 %v7741_v22  ;;  %v7811_v22 = vld [vmem:[#allocation22 + $0xa0] ss:$8 sps:$4 sm:$0xff]  }
 0xc4b   :  { %v4776_v55 = vpop.f32.mrf.mxu1  ;;  %v4826_v18 = vpop.f32.mrf.mxu0 }
 0xc4d   :  { %v7042_v51 = vpop.f32.mrf.mxu1  ;;  %v7048_v19 = vpop.f32.mrf.mxu0 }
 0xc4f   :  { %v4779_v20 = vpop.f32.mrf.mxu1  ;;  %v4829_v3 = vpop.f32.mrf.mxu0 }
 0xc50   :  { %v4783_v24 = vpack.c.bf16 %v4779_v20, %v4776_v55  ;;  %v4833_v27 = vpack.c.bf16 %v4829_v3, %v4826_v18  ;;  %v7807_v55 = vld [vmem:[#allocation22 + $0xb4] ss:$8 sps:$4 sm:$0xff]   ;;  %v7805_v20 = vld [vmem:[#allocation22 + $0xb0] ss:$8 sps:$4 sm:$0xff]  }
 0xc51   :  { %v7043_v26 = vpop.f32.mrf.mxu1  ;;  %v7049_v28 = vpop.f32.mrf.mxu0 }
 0xc52   :  { %5103 = vmatmul.mubr.bf16.vlgmr.msra.gmra.mxu0 %v4783_v24  ;;  %5243 = vmatmul.mubr.bf16.vlgmr.msra.gmra.mxu1 %v4833_v27  ;;  %v7813_v27 = vld [vmem:[#allocation22 + $0xa4] ss:$8 sps:$4 sm:$0xff]  }
 0xc53   :  { %5311 = vmatprep.mubr.bf16.mxu0 %v8251_v33  ;;  %5798 = vmatpush1.bf16.msra.mxu1 %v7739_v0 }
 0xc54   :  { %5799 = vmatprep.subr.bf16.mxu1 %v7744_v37  ;;  %v7693_v37 = vld [vmem:[#allocation22 + $0x174] ss:$8 sps:$4 sm:$0xff]  }
 0xc57   :  { %5800 = vmatpush1.bf16.msra.mxu1 %v7742_v42  ;;  %v7691_v42 = vld [vmem:[#allocation22 + $0x170] ss:$8 sps:$4 sm:$0xff]  }
 0xc58   :  { %5801 = vmatprep.subr.bf16.mxu1 %v7747_v11  ;;  %v7696_v11 = vld [vmem:[#allocation22 + $0x164] ss:$8 sps:$4 sm:$0xff]  }
 0xc5b   :  { %5802 = vmatpush1.bf16.msra.mxu1 %v7745_v60  ;;  %v7694_v60 = vld [vmem:[#allocation22 + $0x160] ss:$8 sps:$4 sm:$0xff]  }
 0xc5c   :  { %5803 = vmatprep.subr.bf16.mxu1 %v7753_v38  ;;  %v7699_v38 = vld [vmem:[#allocation22 + $0x154] ss:$8 sps:$4 sm:$0xff]  }
 0xc5f   :  { %5804 = vmatpush1.bf16.msra.mxu1 %v7751_v62  ;;  %v7697_v62 = vld [vmem:[#allocation22 + $0x150] ss:$8 sps:$4 sm:$0xff]  }
 0xc60   :  { %5805 = vmatprep.subr.bf16.mxu1 %v7759_v30  ;;  %v7702_v30 = vld [vmem:[#allocation22 + $0x144] ss:$8 sps:$4 sm:$0xff]  }
 0xc63   :  { %5806 = vmatpush1.bf16.msra.mxu1 %v7757_v44  ;;  %v7705_v44 = vld [vmem:[#allocation22 + $0x134] ss:$8 sps:$4 sm:$0xff]  }
 0xc64   :  { %5807 = vmatprep.subr.bf16.mxu1 %v7765_v35  ;;  %v7708_v35 = vld [vmem:[#allocation22 + $0x124] ss:$8 sps:$4 sm:$0xff]  }
 0xc67   :  { %5808 = vmatpush1.bf16.msra.mxu1 %v7763_v45  ;;  %v7706_v45 = vld [vmem:[#allocation22 + $0x120] ss:$8 sps:$4 sm:$0xff]  }
 0xc68   :  { %5809 = vmatprep.subr.bf16.mxu1 %v7771_v6  ;;  %v7709_v6 = vld [vmem:[#allocation22 + $0x110] ss:$8 sps:$4 sm:$0xff]  }
 0xc6b   :  { %v4981_v48 = vpop.f32.mrf.mxu1  ;;  %5810 = vmatpush1.bf16.msra.mxu1 %v7769_v32  ;;  %v7712_v32 = vld [vmem:[#allocation22 + $0x100] ss:$8 sps:$4 sm:$0xff]  }
 0xc6c   :  { %5811 = vmatprep.subr.bf16.mxu1 %v7777_v36  ;;  %v7717_v36 = vld [vmem:[#allocation22 + $0x1f4] ss:$8 sps:$4 sm:$0xff]  }
 0xc6d   :  { %v4983_v52 = vpop.f32.mrf.mxu1 }
 0xc6f   :  { %v4985_v39 = vpop.f32.mrf.mxu1  ;;  %5812 = vmatpush1.bf16.msra.mxu1 %v7775_v21  ;;  %v7720_v21 = vld [vmem:[#allocation22 + $0x1e4] ss:$8 sps:$4 sm:$0xff]  }
 0xc70   :  { %5813 = vmatprep.subr.bf16.mxu1 %v7783_v58  ;;  %v7718_v58 = vld [vmem:[#allocation22 + $0x1e0] ss:$8 sps:$4 sm:$0xff]  }
 0xc71   :  { %v4987_v61 = vpop.f32.mrf.mxu1 }
 0xc73   :  { %5814 = vmatpush2.bf16.msra.mxu1 %v7781_v47  ;;  %v7721_v47 = vld [vmem:[#allocation22 + $0x1d0] ss:$8 sps:$4 sm:$0xff]  }
 0xc74   :  { %5815 = vmatprep.subr.bf16.mxu1 %v7789_v25  ;;  %v7726_v25 = vld [vmem:[#allocation22 + $0x1c4] ss:$8 sps:$4 sm:$0xff]  }
 0xc77   :  { %5816 = vmatpush2.bf16.msra.mxu1 %v7787_v5  ;;  %v7732_v5 = vld [vmem:[#allocation22 + $0x1a4] ss:$8 sps:$4 sm:$0xff]  }
 0xc78   :  { %5817 = vmatprep.subr.bf16.mxu1 %v7795_v46  ;;  %v7730_v46 = vld [vmem:[#allocation22 + $0x1a0] ss:$8 sps:$4 sm:$0xff]  }
 0xc7b   :  { %5818 = vmatpush2.bf16.msra.mxu1 %v7793_v63  ;;  %v7748_v63 = vld [vmem:[#allocation22 + $0x270] ss:$8 sps:$4 sm:$0xff]  }
 0xc7c   :  { %5819 = vmatprep.subr.bf16.mxu1 %v7801_v29  ;;  %v7754_v29 = vld [vmem:[#allocation22 + $0x260] ss:$8 sps:$4 sm:$0xff]  }
 0xc7f   :  { %5820 = vmatpush2.bf16.msra.mxu1 %v7799_v12  ;;  %v7780_v12 = vld [vmem:[#allocation22 + $0x224] ss:$8 sps:$4 sm:$0xff]  }
 0xc80   :  { %5821 = vmatprep.subr.bf16.mxu1 %v7807_v55  ;;  %v7792_v55 = vld [vmem:[#allocation22 + $0x204] ss:$8 sps:$4 sm:$0xff]  }
 0xc83   :  { %5822 = vmatpush2.bf16.msra.mxu1 %v7805_v20  ;;  %v7804_v20 = vld [vmem:[#allocation22 + $0x2e4] ss:$8 sps:$4 sm:$0xff]  }
 0xc84   :  { %5823 = vmatprep.subr.bf16.mxu1 %v7813_v27  ;;  %v7808_v27 = vld [vmem:[#allocation22 + $0x2d0] ss:$8 sps:$4 sm:$0xff]  }
 0xc87   :  { %5824 = vmatpush2.bf16.msra.mxu1 %v7811_v22  ;;  %v7820_v22 = vld [vmem:[#allocation22 + $0x2b0] ss:$8 sps:$4 sm:$0xff]  }
 0xc88   :  { %5825 = vmatprep.subr.bf16.mxu1 %v7819_v56 }
 0xd12   :  { %v5104_v2 = vpop.f32.mrf.mxu0  ;;  %v5244_v43 = vpop.f32.mrf.mxu1 }
 0xd13   :  { %v5105_v41 = vadd.f32 %v5104_v2, %v4981_v48  ;;  %v7714_v48 = vld [vmem:[#allocation22 + $0x104] ss:$8 sps:$4 sm:$0xff]   ;;  %v7729_v2 = vld [vmem:[#allocation22 + $0x1b4] ss:$8 sps:$4 sm:$0xff]  }
 0xd14   :  { %v5106_v34 = vpop.f32.mrf.mxu0  ;;  %v5246_v54 = vpop.f32.mrf.mxu1 }
 0xd15   :  { %v5107_v23 = vadd.f32 %v5106_v34, %v4983_v52  ;;  %v5253_v57 = vadd.f32 %v5244_v43, %v5105_v41  ;;  %v7715_v52 = vld [vmem:[#allocation22 + $0x1f0] ss:$8 sps:$4 sm:$0xff]   ;;  %v7735_v41 = vld [vmem:[#allocation22 + $0x194] ss:$8 sps:$4 sm:$0xff]  }
 0xd16   :  { %v5108_v59 = vpop.f32.mrf.mxu0  ;;  %v5248_v40 = vpop.f32.mrf.mxu1  ;;  %v7727_v43 = vld [vmem:[#allocation22 + $0x1b0] ss:$8 sps:$4 sm:$0xff]  }
 0xd17   :  { %v5109_v17 = vadd.f32 %v5108_v59, %v4985_v39  ;;  %v5254_v31 = vadd.f32 %v5246_v54, %v5107_v23  ;;  %v5269_v18 = vadd.f32 %v5262_v1, %v5253_v57  ;;  %v7723_v39 = vld [vmem:[#allocation22 + $0x1d4] ss:$8 sps:$4 sm:$0xff]   ;;  %v7733_v34 = vld [vmem:[#allocation22 + $0x190] ss:$8 sps:$4 sm:$0xff]   ;;  %v7738_v54 = vld [vmem:[#allocation22 + $0x184] ss:$8 sps:$4 sm:$0xff]  }
 0xd18   :  { %v5110_v16 = vpop.f32.mrf.mxu0  ;;  %v5250_v49 = vpop.f32.mrf.mxu1  ;;  %v7736_v23 = vld [vmem:[#allocation22 + $0x180] ss:$8 sps:$4 sm:$0xff]   ;;  %v7750_v59 = vld [vmem:[#allocation22 + $0x274] ss:$8 sps:$4 sm:$0xff]  }
 0xd19   :  { %v5111_v9 = vadd.f32 %v5110_v16, %v4987_v61  ;;  %v5255_v53 = vadd.f32 %v5248_v40, %v5109_v17  ;;  %v5270_v14 = vadd.f32 %v5266_v50, %v5254_v31  ;;  %v5273_v26 = vmax.f32 %v5269_v18, 0.0  ;;  %v7724_v61 = vld [vmem:[#allocation22 + $0x1c0] ss:$8 sps:$4 sm:$0xff]   ;;  %v7817_v40 = vld [vmem:[#allocation22 + $0x90] ss:$8 sps:$4 sm:$0xff]  }
 0xd1a   :  { %5826 = vmatpush2.bf16.msra.mxu1 %v7817_v40  ;;  %v7825_v17 = vld [vmem:[#allocation22 + $0x84] ss:$8 sps:$4 sm:$0xff]   ;;  %v7762_v57 = vld [vmem:[#allocation22 + $0x254] ss:$8 sps:$4 sm:$0xff]   ;;  %v7790_v18 = vld [vmem:[#allocation22 + $0x200] ss:$8 sps:$4 sm:$0xff]  }
 0xd1b   :  { %v5271_v15 = vadd.f32 %v5262_v1, %v5255_v53  ;;  %v5256_v4 = vadd.f32 %v5250_v49, %v5111_v9  ;;  %v5274_v3 = vmax.f32 %v5270_v14, 0.0  ;;  %v7756_v31 = vld [vmem:[#allocation22 + $0x264] ss:$8 sps:$4 sm:$0xff]   ;;  %5827 = vmatprep.subr.bf16.mxu1 %v7825_v17  ;;  %v7760_v1 = vld [vmem:[#allocation22 + $0x250] ss:$8 sps:$4 sm:$0xff]  }
 0xd1c   :  { %v7768_v16 = vld [vmem:[#allocation22 + $0x244] ss:$8 sps:$4 sm:$0xff]   ;;  %v7766_v9 = vld [vmem:[#allocation22 + $0x240] ss:$8 sps:$4 sm:$0xff]   ;;  %v7774_v53 = vld [vmem:[#allocation22 + $0x234] ss:$8 sps:$4 sm:$0xff]  }
 0xd1d   :  { %v5272_v51 = vadd.f32 %v5266_v50, %v5256_v4  ;;  %v5275_v19 = vmax.f32 %v5271_v15, 0.0  ;;  %v7823_v50 = vld [vmem:[#allocation22 + $0x80] ss:$8 sps:$4 sm:$0xff]   ;;  %v7772_v49 = vld [vmem:[#allocation22 + $0x230] ss:$8 sps:$4 sm:$0xff]  }
 0xd1e   :  { %5828 = vmatpush2.bf16.msra.mxu1 %v7823_v50  ;;  %v7778_v14 = vld [vmem:[#allocation22 + $0x220] ss:$8 sps:$4 sm:$0xff]   ;;  %v7786_v15 = vld [vmem:[#allocation22 + $0x214] ss:$8 sps:$4 sm:$0xff]   ;;  %v7784_v4 = vld [vmem:[#allocation22 + $0x210] ss:$8 sps:$4 sm:$0xff]  }
 0xd1f   :  { %v5276_v24 = vmax.f32 %v5272_v51, 0.0  ;;  %v8936_v0 = vpack.c.bf16 %v5275_v19, %v5273_v26  ;;  %v7798_v51 = vld [vmem:[#allocation22 + $0x2f4] ss:$8 sps:$4 sm:$0xff]   ;;  %v7796_v19 = vld [vmem:[#allocation22 + $0x2f0] ss:$8 sps:$4 sm:$0xff]  }
 0xd20   :  { %v7816_v26 = vld [vmem:[#allocation22 + $0x2c4] ss:$8 sps:$4 sm:$0xff]  }
 0xd21   :  { %v5278_v28 = vpack.c.bf16 %v5276_v24, %v5274_v3  ;;  %v7802_v3 = vld [vmem:[#allocation22 + $0x2e0] ss:$8 sps:$4 sm:$0xff]   ;;  %v7810_v24 = vld [vmem:[#allocation22 + $0x2d4] ss:$8 sps:$4 sm:$0xff]  }
 0xd23   :  { %5293 = vmatprep.subr.bf16.mxu0 %v5278_v28 }
 0xd24   :  { %5294 = vmatpush1.bf16.msra.mxu0 %v8936_v0 }
 0xd25   :  { %5338 = vmatprep.subr.bf16.mxu0 %v5278_v28 }
 0xd27   :  { %6670 = vmatmul.mubr.msk.bf16.vlgmr.msra.gmra.mxu0 %vm4738_vm3, %v8919_v7  ;;  %v7700_v7 = vld [vmem:[#allocation22 + $0x140] ss:$8 sps:$4 sm:$0xff]  }
 0xd28   :  { %5339 = vmatpush1.bf16.msra.mxu0 %v8936_v0  ;;  %5356 = vmatprep.mubr.bf16.mxu0 %v8251_v33  ;;  %v7703_v33 = vld [vmem:[#allocation22 + $0x130] ss:$8 sps:$4 sm:$0xff]  }
 0xd29   :  { %5594 = vmatprep.subr.bf16.mxu0 %v7693_v37  ;;  %v7828_v37 = vld [vmem:[#allocation22 + $0x2a4] ss:$8 sps:$4 sm:$0xff]  }
 0xd2f   :  { %6671 = vmatmul.mubr.msk.bf16.vlgmr.msra.gmra.mxu0 %vm4738_vm3, %v8921_v8  ;;  %v7711_v8 = vld [vmem:[#allocation22 + $0x114] ss:$8 sps:$4 sm:$0xff]  }
 0xd30   :  { %5595 = vmatpush1.bf16.msra.mxu0 %v7691_v42  ;;  %5626 = vmatprep.mubr.bf16.mxu0 %v5278_v28  ;;  %v7814_v28 = vld [vmem:[#allocation22 + $0x2c0] ss:$8 sps:$4 sm:$0xff]  }
 0xd31   :  { %5596 = vmatprep.subr.bf16.mxu0 %v7696_v11  ;;  %v7826_v42 = vld [vmem:[#allocation22 + $0x2a0] ss:$8 sps:$4 sm:$0xff]   ;;  %v7831_v11 = vld [vmem:[#allocation22 + $0x294] ss:$8 sps:$4 sm:$0xff]  }
 0xd34   :  { %5597 = vmatpush1.bf16.msra.mxu0 %v7694_v60  ;;  %v7829_v60 = vld [vmem:[#allocation22 + $0x290] ss:$8 sps:$4 sm:$0xff]  }
 0xd35   :  { %5598 = vmatprep.subr.bf16.mxu0 %v7699_v38  ;;  %v7834_v38 = vld [vmem:[#allocation22 + $0x284] ss:$8 sps:$4 sm:$0xff]  }
 0xd38   :  { %5599 = vmatpush1.bf16.msra.mxu0 %v7697_v62  ;;  %v7832_v62 = vld [vmem:[#allocation22 + $0x280] ss:$8 sps:$4 sm:$0xff]  }
 0xd39   :  { %5600 = vmatprep.subr.bf16.mxu0 %v7702_v30 }
 0xd3c   :  { %5601 = vmatpush1.bf16.msra.mxu0 %v7700_v7 }
 0xd3d   :  { %5602 = vmatprep.subr.bf16.mxu0 %v7705_v44 }
 0xd40   :  { %5603 = vmatpush1.bf16.msra.mxu0 %v7703_v33 }
 0xd41   :  { %5604 = vmatprep.subr.bf16.mxu0 %v7708_v35 }
 0xd44   :  { %5605 = vmatpush1.bf16.msra.mxu0 %v7706_v45 }
 0xd45   :  { %5606 = vmatprep.subr.bf16.mxu0 %v7711_v8 }
 0xd48   :  { %5607 = vmatpush1.bf16.msra.mxu0 %v7709_v6 }
 0xd49   :  { %5608 = vmatprep.subr.bf16.mxu0 %v7714_v48 }
 0xd4c   :  { %5609 = vmatpush1.bf16.msra.mxu0 %v7712_v32 }
 0xd4d   :  { %5610 = vmatprep.subr.bf16.mxu0 %v7717_v36 }
 0xd50   :  { %5611 = vmatpush2.bf16.msra.mxu0 %v7715_v52 }
 0xd51   :  { %5612 = vmatprep.subr.bf16.mxu0 %v7720_v21 }
 0xd54   :  { %5613 = vmatpush2.bf16.msra.mxu0 %v7718_v58 }
 0xd55   :  { %5614 = vmatprep.subr.bf16.mxu0 %v7723_v39 }
 0xd58   :  { %5615 = vmatpush2.bf16.msra.mxu0 %v7721_v47 }
 0xd59   :  { %5616 = vmatprep.subr.bf16.mxu0 %v7726_v25 }
 0xd5c   :  { %5617 = vmatpush2.bf16.msra.mxu0 %v7724_v61  ;;  %v6080_v61 = vld [vmem:[#allocation24] sm:$0x3] }
 0xd5d   :  { %5618 = vmatprep.subr.bf16.mxu0 %v7729_v2 }
 0xd60   :  { %5619 = vmatpush2.bf16.msra.mxu0 %v7727_v43 }
 0xd61   :  { %5620 = vmatprep.subr.bf16.mxu0 %v7732_v5 }
 0xd64   :  { %5621 = vmatpush2.bf16.msra.mxu0 %v7730_v46  ;;  %v6085_v46 = vrot.slane %v6080_v61, %v8552_v10 }
 0xd65   :  { %5622 = vmatprep.subr.bf16.mxu0 %v7735_v41 }
 0xd68   :  { %5623 = vmatpush2.bf16.msra.mxu0 %v7733_v34 }
 0xd69   :  { %5624 = vmatprep.subr.bf16.mxu0 %v7738_v54 }
 0xd6c   :  { %5625 = vmatpush2.bf16.msra.mxu0 %v7736_v23  ;;  %v6089_v23 = vrot.slane %v6080_v61, %v8555_v13 }
 0xd6d   :  { %6033 = vmatprep.subr.bf16.mxu0 %v7750_v59 }
 0xd6f   :  { %5627 = vmatmul.mubr.bf16.vlgmr.msra.gmra.mxu0 %v8936_v0  ;;  %v7822_v0 = vld [vmem:[#allocation22 + $0x2b4] ss:$8 sps:$4 sm:$0xff]  }
 0xd70   :  { %6034 = vmatpush1.bf16.msra.mxu0 %v7748_v63 }
 0xd71   :  { %6035 = vmatprep.subr.bf16.mxu0 %v7756_v31 }
 0xd74   :  { %6036 = vmatpush1.bf16.msra.mxu0 %v7754_v29 }
 0xd75   :  { %6037 = vmatprep.subr.bf16.mxu0 %v7762_v57 }
 0xd78   :  { %6038 = vmatpush1.bf16.msra.mxu0 %v7760_v1 }
 0xd79   :  { %6039 = vmatprep.subr.bf16.mxu0 %v7768_v16 }
 0xd7c   :  { %6040 = vmatpush1.bf16.msra.mxu0 %v7766_v9 }
 0xd7d   :  { %6041 = vmatprep.subr.bf16.mxu0 %v7774_v53 }
 0xd80   :  { %6042 = vmatpush1.bf16.msra.mxu0 %v7772_v49 }
 0xd81   :  { %6043 = vmatprep.subr.bf16.mxu0 %v7780_v12 }
 0xd84   :  { %6044 = vmatpush1.bf16.msra.mxu0 %v7778_v14 }
 0xd85   :  { %6045 = vmatprep.subr.bf16.mxu0 %v7786_v15 }
 0xd88   :  { %6046 = vmatpush1.bf16.msra.mxu0 %v7784_v4 }
 0xd89   :  { %6047 = vmatprep.subr.bf16.mxu0 %v7792_v55 }
 0xd8c   :  { %6048 = vmatpush1.bf16.msra.mxu0 %v7790_v18 }
 0xd8d   :  { %6049 = vmatprep.subr.bf16.mxu0 %v7798_v51 }
 0xd90   :  { %6050 = vmatpush2.bf16.msra.mxu0 %v7796_v19 }
 0xd91   :  { %6051 = vmatprep.subr.bf16.mxu0 %v7804_v20 }
 0xd94   :  { %6052 = vmatpush2.bf16.msra.mxu0 %v7802_v3 }
 0xd95   :  { %6053 = vmatprep.subr.bf16.mxu0 %v7810_v24 }
 0xd98   :  { %6054 = vmatpush2.bf16.msra.mxu0 %v7808_v27 }
 0xd99   :  { %6055 = vmatprep.subr.bf16.mxu0 %v7816_v26 }
 0xd9c   :  { %6056 = vmatpush2.bf16.msra.mxu0 %v7814_v28 }
 0xd9d   :  { %6057 = vmatprep.subr.bf16.mxu0 %v7822_v0 }
 0xda0   :  { %6058 = vmatpush2.bf16.msra.mxu0 %v7820_v22 }
 0xda1   :  { %6059 = vmatprep.subr.bf16.mxu0 %v7828_v37 }
 0xda4   :  { %6060 = vmatpush2.bf16.msra.mxu0 %v7826_v42 }
 0xda5   :  { %6061 = vmatprep.subr.bf16.mxu0 %v7831_v11 }
 0xda8   :  { %6062 = vmatpush2.bf16.msra.mxu0 %v7829_v60 }
 0xda9   :  { %6063 = vmatprep.subr.bf16.mxu0 %v7834_v38 }
 0xdac   :  { %6064 = vmatpush2.bf16.msra.mxu0 %v7832_v62 }
 0xde7   :  { %v5313_v30 = vpop.f32.mrf.mxu0 }
 0xde9   :  { %v5315_v7 = vpop.f32.mrf.mxu0 }
 0xdeb   :  { %v5317_v44 = vpop.f32.mrf.mxu0 }
 0xdec   :  { %v5322_v45 = vpack.c.bf16 %v5317_v44, %v5313_v30 }
 0xded   :  { %v5319_v33 = vpop.f32.mrf.mxu0 }
 0xdee   :  { %v5323_v35 = vpack.c.bf16 %v5319_v33, %v5315_v7 }
 0xdef   :  { %v5358_v8 = vpop.f32.mrf.mxu0 }
 0xdf0   :  { %5829 = vmatprep.mubr.bf16.mxu1 %v5323_v35 }
 0xdf1   :  { %v5360_v6 = vpop.f32.mrf.mxu0  ;;  %5830 = vmatmul.mubr.bf16.vlgmr.msra.gmra.mxu1 %v5322_v45 }
 0xdf3   :  { %v5362_v48 = vpop.f32.mrf.mxu0 }
 0xdf4   :  { %v5367_v52 = vpack.c.bf16 %v5362_v48, %v5358_v8 }
 0xdf5   :  { %v5364_v32 = vpop.f32.mrf.mxu0 }
 0xdf6   :  { %v5368_v36 = vpack.c.bf16 %v5364_v32, %v5360_v6 }
 0xdf8   :  { %6065 = vmatprep.mubr.bf16.mxu0 %v5368_v36 }
 0xdf9   :  { %6066 = vmatmul.mubr.bf16.vlgmr.msra.gmra.mxu0 %v5367_v52 }
 0xe2f   :  { %v5628_v21 = vpop.f32.mrf.mxu0 }
 0xe31   :  { %v5630_v58 = vpop.f32.mrf.mxu0 }
 0xe33   :  { %v5632_v47 = vpop.f32.mrf.mxu0 }
 0xe35   :  { %v5634_v2 = vpop.f32.mrf.mxu0 }
 0xeb1   :  { %v5831_v39 = vpop.f32.mrf.mxu1 }
 0xeb2   :  { %v5832_v5 = vadd.f32 %v5831_v39, %v5628_v21 }
 0xeb3   :  { %v5833_v25 = vpop.f32.mrf.mxu1 }
 0xeb4   :  { %v5834_v34 = vadd.f32 %v5833_v25, %v5630_v58 }
 0xeb5   :  { %v5835_v43 = vpop.f32.mrf.mxu1 }
 0xeb6   :  { %v5836_v40 = vadd.f32 %v5835_v43, %v5632_v47 }
 0xeb7   :  { %v5837_v56 = vpop.f32.mrf.mxu1 }
 0xeb8   :  { %v5838_v50 = vadd.f32 %v5837_v56, %v5634_v2 }
 0xeb9   :  { %v6067_v41 = vpop.f32.mrf.mxu0 }
 0xeba   :  { %v6076_v54 = vadd.f32 %v6067_v41, %v5832_v5 }
 0xebb   :  { %v6069_v59 = vpop.f32.mrf.mxu0 }
 0xebc   :  { %v6092_v63 = vadd.f32 %v6085_v46, %v6076_v54  ;;  %v6077_v17 = vadd.f32 %v6069_v59, %v5834_v34 }
 0xebd   :  { %v6071_v31 = vpop.f32.mrf.mxu0 }
 0xebe   :  { %v6096_v29 = vmax.f32 %v6092_v63, 0.0  ;;  %v6093_v57 = vadd.f32 %v6089_v23, %v6077_v17  ;;  %v6078_v1 = vadd.f32 %v6071_v31, %v5836_v40 }
 0xebf   :  { %v6073_v10 = vpop.f32.mrf.mxu0 }
 0xec0   :  { %6100 = vst [vmem:[%s8407_s17] sm:$0xff] %v6096_v29  ;;  %v6097_v16 = vmax.f32 %v6093_v57, 0.0  ;;  %v6094_v9 = vadd.f32 %v6085_v46, %v6078_v1  ;;  %v6079_v53 = vadd.f32 %v6073_v10, %v5838_v50 }
 0xec2   :  { %6101 = vst [vmem:[%s8407_s17 + $0x8] sm:$0xff] %v6097_v16  ;;  %v6098_v13 = vmax.f32 %v6094_v9, 0.0  ;;  %v6095_v49 = vadd.f32 %v6089_v23, %v6079_v53 }
 0xec4   :  { %6102 = vst [vmem:[%s8407_s17 + $0x10] sm:$0xff] %v6098_v13  ;;  %v6099_v12 = vmax.f32 %v6095_v49, 0.0 }
 0xec6   :  { %6103 = vst [vmem:[%s8407_s17 + $0x18] sm:$0xff] %v6099_v12 }
 0xec7   :  { %6116 = vsyncpa [#allocation3], 1 }
 0xec8   :  { %6117 = vsyncpa [#allocation5], 1 }
 0xec9   :  { %6118 = vsyncpa [#allocation8], 1 }
 0xeca   :  { %6119 = vsyncpa [#allocation11], 1 }
 0xecb   :  { %6120 = vsyncpa [#allocation14], 1 }
 0xecc   :  { %6121 = vsyncpa [#allocation17], 1 }
 0xecd   :  { %6122 = vsyncpa [#allocation20], 1 }
 0xece   :  { %6123 = vsyncpa [#allocation23], 1 }
 0xecf   :  { %6124 = vsyncpa [#allocation26], 1 }

</bundles_post_ra>
